<compile_context>
chip_gen: v7x
topology: tpu7x:2x2x1
jax: 0.10.0
libtpu: 0.0.40
codegen_flags: <defaults>
</compile_context>

<pallas_src>
import numpy as np
import jax
import jax.numpy as jnp
from jax import lax
from jax.experimental import pallas as pl
from jax.experimental.pallas import tpu as pltpu


def _round_up(n, m):
    return -(-n // m) * m


# ----------------------------------------------------------------------------
# Host-side (one-time) weight prep: stride-2 3x3 conv -> dense Toeplitz matrix
# ----------------------------------------------------------------------------
def conv2d_to_toeplitz(w, h, w_in, stride=2, pad=1):
    """Dense T s.t. x.reshape(B,-1) @ T == conv2d(x, w).reshape(B,-1) (NCHW flat)."""
    cout, cin, kh, kw = w.shape
    oh = (h + 2 * pad - kh) // stride + 1
    ow = (w_in + 2 * pad - kw) // stride + 1
    wn = np.asarray(w, np.float32)
    t = np.zeros((cin * h * w_in, cout * oh * ow), np.float32)
    row_base = np.arange(cin) * (h * w_in)
    col_base = np.arange(cout) * (oh * ow)
    for oy in range(oh):
        for ox in range(ow):
            col = oy * ow + ox
            for i in range(kh):
                for j in range(kw):
                    y = oy * stride + i - pad
                    xx = ox * stride + j - pad
                    if 0 <= y < h and 0 <= xx < w_in:
                        rows = row_base + y * w_in + xx
                        t[np.ix_(rows, col_base + col)] = wn[:, :, i, j].T
    return t, oh, ow


# ----------------------------------------------------------------------------
# Fused Pallas kernel: conv1+ReLU -> conv2+ReLU -> log_var head -> MVN log-prob
# All values are laid out as (features, batch_tile) so the per-sample
# reduction is a sublane reduce and the log-prob row is stored lane-dense.
# ----------------------------------------------------------------------------
def _fused_encoder_logprob_kernel(xt_ref, t1_ref, b1_ref, t2_ref, b2_ref,
                                  w3_ref, b3_ref, epst_ref, o_ref):
    xt = xt_ref[...]                                             # (kin, TB) bf16
    h1 = jnp.dot(t1_ref[...], xt, preferred_element_type=jnp.float32)
    h1 = jnp.maximum(h1 + b1_ref[...], 0.0)                      # (n1, TB) conv1+ReLU
    h2 = jnp.dot(t2_ref[...], h1.astype(jnp.bfloat16),
                 preferred_element_type=jnp.float32)
    h2 = jnp.maximum(h2 + b2_ref[...], 0.0)                      # (n2, TB) conv2+ReLU
    # Linear head pre-sliced (host-side) to the log_var columns only.
    log_var = jnp.dot(w3_ref[...], h2,
                      preferred_element_type=jnp.float32) + b3_ref[...]   # (q, TB)
    eps = epst_ref[...]                                          # (q, TB)

    # torch builds MVN(mu, covariance_matrix=diag(exp(0.5*log_var))) and
    # evaluates it at z = mu + exp(0.5*log_var)*eps (the std-vs-covariance
    # inconsistency is inherited faithfully from the original module):
    #   log N = -0.5*(q*log(2*pi) + sum(0.5*log_var) + sum((z-mu)^2 / scale))
    # and (z-mu)^2/scale == scale*eps^2 exactly (mu cancels, no divide).
    scale = jnp.exp(0.5 * log_var)
    contrib = scale * eps * eps + 0.5 * log_var                  # (q, TB)
    q = log_var.shape[0]
    const = np.float32(q * np.log(2.0 * np.pi))
    # Sublane reduce -> (1, TB): lane-dense output store.
    o_ref[...] = -0.5 * (const + jnp.sum(contrib, axis=0, keepdims=True))


@jax.jit
def _fused_log_prob(x2d, eps, t1t, b1c, t2t, b2c, w3t, b3c):
    """One pallas_call for the entire forward(type='log_prob')."""
    batch, kin = x2d.shape
    q = eps.shape[1]
    n1 = t1t.shape[0]
    n2 = t2t.shape[0]

    # Fold the batch into the GEMM lane dimension.  Single block for small
    # batches (no TC split / weight duplication); 256-wide tiles for large B.
    tb = 256 if batch >= 256 else _round_up(batch, 8)
    b_pad = _round_up(batch, tb)
    num_blocks = b_pad // tb

    # Transposed, zero-padded inputs (padding columns produce finite garbage
    # log-probs that are sliced away below).
    xt = jnp.zeros((kin, b_pad), jnp.bfloat16).at[:, :batch].set(
        x2d.T.astype(jnp.bfloat16))
    epst = jnp.zeros((q, b_pad), jnp.float32).at[:, :batch].set(eps.T)

    cost = pl.CostEstimate(
        flops=2 * b_pad * (kin * n1 + n1 * n2 + n2 * q),
        transcendentals=b_pad * q,
        bytes_accessed=int(kin * b_pad * 2 + kin * n1 * 2 + n1 * 4
                           + n1 * n2 * 2 + n2 * 4 + n2 * q * 4 + q * 4
                           + q * b_pad * 4 + b_pad * 4),
    )

    # Weight panels use constant index_maps (VMEM-resident across grid steps);
    # the pipeline still allocates 2 buffers per spec, so budget 2x, then add
    # per-block activations/intermediates and headroom.  Capped at the v7x
    # 64 MiB/TC physical limit.
    weight_bytes = sum(int(np.prod(a.shape)) * a.dtype.itemsize
                       for a in (t1t, b1c, t2t, b2c, w3t, b3c))
    block_io_bytes = tb * (kin * 2 + q * 4 + 4)
    interm_bytes = tb * (n1 + n2 + 2 * q) * 4
    vmem_limit = min(64 * 1024 * 1024,
                     2 * (weight_bytes + block_io_bytes) + interm_bytes
                     + 8 * 1024 * 1024)

    out = pl.pallas_call(
        _fused_encoder_logprob_kernel,
        out_shape=jax.ShapeDtypeStruct((1, b_pad), jnp.float32),
        grid=(num_blocks,),
        in_specs=[
            pl.BlockSpec((kin, tb), lambda i: (0, i)),     # x^T, per batch tile
            pl.BlockSpec((n1, kin), lambda i: (0, 0)),     # T1^T (resident, bf16)
            pl.BlockSpec((n1, 1), lambda i: (0, 0)),       # b1 column
            pl.BlockSpec((n2, n1), lambda i: (0, 0)),      # T2^T (resident, bf16)
            pl.BlockSpec((n2, 1), lambda i: (0, 0)),       # b2 column
            pl.BlockSpec((q, n2), lambda i: (0, 0)),       # W3 log_var slice^T
            pl.BlockSpec((q, 1), lambda i: (0, 0)),        # b3 log_var slice
            pl.BlockSpec((q, tb), lambda i: (0, i)),       # eps^T, per batch tile
        ],
        out_specs=pl.BlockSpec((1, tb), lambda i: (0, i)),  # lane-dense log-probs
        compiler_params=pltpu.CompilerParams(
            dimension_semantics=("parallel",),
            vmem_limit_bytes=int(vmem_limit)),
        cost_estimate=cost,
    )(xt, t1t, b1c, t2t, b2c, w3t, b3c, epst)
    return out[0, :batch]


# ----------------------------------------------------------------------------
# Encoder (mirrors the torch module's forward(type='log_prob'))
# ----------------------------------------------------------------------------
class EncoderPallas:
    """encoder_net = conv(s2,3x3)+ReLU -> conv(s2,3x3)+ReLU -> flatten -> Linear."""

    def __init__(self, params, content_dim, in_shape):
        self.params = params
        self.content_dim = content_dim + 2           # as in the torch __init__
        _cin, h, w = in_shape

        d = params["w3"].shape[1]
        half = d // 2
        q = half // 2

        t1, oh1, ow1 = conv2d_to_toeplitz(params["w1"], h, w)
        t2, oh2, ow2 = conv2d_to_toeplitz(params["w2"], oh1, ow1)

        # Transposed ("features x batch") layout; big panels in bf16.
        self.t1t = jnp.asarray(t1.T).astype(jnp.bfloat16)             # (n1, kin)
        self.t2t = jnp.asarray(t2.T).astype(jnp.bfloat16)             # (n2, n1)
        self.b1c = jnp.asarray(
            np.repeat(np.asarray(params["b1"], np.float32), oh1 * ow1)).reshape(-1, 1)
        self.b2c = jnp.asarray(
            np.repeat(np.asarray(params["b2"], np.float32), oh2 * ow2)).reshape(-1, 1)
        # log_prob only needs the log_var head: pre-slice W3/b3 (f32, tiny).
        w3 = np.asarray(params["w3"], np.float32)
        b3 = np.asarray(params["b3"], np.float32)
        self.w3t = jnp.asarray(w3[:, half + q:].T)                    # (q, n2)
        self.b3c = jnp.asarray(b3[half + q:]).reshape(-1, 1)          # (q, 1)

    def log_prob(self, x, eps):
        b = x.shape[0]
        return _fused_log_prob(x.reshape(b, -1), eps,
                               self.t1t, self.b1c, self.t2t, self.b2c,
                               self.w3t, self.b3c)

    # --- non-log_prob path (not perf-critical): plain JAX -------------------
    def encode(self, x):
        p = self.params

        def conv(z, w, b):
            y = lax.conv_general_dilated(
                z, w, window_strides=(2, 2), padding=[(1, 1), (1, 1)],
                dimension_numbers=("NCHW", "OIHW", "NCHW"))
            return jax.nn.relu(y + b[None, :, None, None])

        h1 = conv(x, p["w1"], p["b1"])
        h2 = conv(h1, p["w2"], p["b2"])
        out = h2.reshape(x.shape[0], -1) @ p["w3"] + p["b3"]
        half = out.shape[1] // 2
        qq = half // 2
        return out[:, :half], out[:, half:half + qq], out[:, half + qq:]

    def forward(self, x, eps, type="log_prob"):
        if type == "log_prob":
            return self.log_prob(x, eps)
        # TODO(synk): the 'sample' path is not perf-critical here; it runs in
        # plain JAX rather than a Pallas kernel.
        content_part, mu, log_var = self.encode(x)
        z = mu + jnp.exp(0.5 * log_var) * eps
        return jnp.concatenate((content_part, z), axis=1)


# ----------------------------------------------------------------------------
# Pure-JAX f32 reference (independent formulation, for correctness check)
# ----------------------------------------------------------------------------
def reference_logprob(params, x, eps):
    def conv(z, w, b):
        y = lax.conv_general_dilated(
            z, w, window_strides=(2, 2), padding=[(1, 1), (1, 1)],
            dimension_numbers=("NCHW", "OIHW", "NCHW"))
        return jax.nn.relu(y + b[None, :, None, None])

    h1 = conv(x, params["w1"], params["b1"])
    h2 = conv(h1, params["w2"], params["b2"])
    out = h2.reshape(x.shape[0], -1) @ params["w3"] + params["b3"]
    half = out.shape[1] // 2
    mu = out[:, half:half + half // 2]
    lv = out[:, half + half // 2:]
    scale = jnp.exp(0.5 * lv)
    z = mu + scale * eps
    k = mu.shape[1]
    quad = jnp.sum((z - mu) ** 2 / scale, axis=-1)
    logdet = jnp.sum(0.5 * lv, axis=-1)
    return -0.5 * (k * jnp.log(2.0 * jnp.pi) + logdet + quad)


# ----------------------------------------------------------------------------
# Main
# ----------------------------------------------------------------------------
if __name__ == "__main__":
    key = jax.random.PRNGKey(0)
    kx, k1, k2, k3, keps = jax.random.split(key, 5)

    B, Cin, H, W = 2, 4, 16, 16
    C1, C2 = 8, 16
    D = 32                      # encoder output: 16 content + 8 mu + 8 log_var
    content_dim = D // 2 - 2    # so self.content_dim == D // 2 (as in torch)

    def init_conv(k, cout, cin, kh, kw):
        fan_in = cin * kh * kw
        return (jax.random.normal(k, (cout, cin, kh, kw), jnp.float32)
                * jnp.sqrt(2.0 / fan_in))

    params = {
        "w1": init_conv(k1, C1, Cin, 3, 3),
        "b1": jnp.zeros((C1,), jnp.float32),
        "w2": init_conv(k2, C2, C1, 3, 3),
        "b2": jnp.zeros((C2,), jnp.float32),
        "w3": jax.random.normal(k3, (C2 * (H // 4) * (W // 4), D), jnp.float32)
              * jnp.sqrt(1.0 / (C2 * (H // 4) * (W // 4))),
        "b3": jnp.zeros((D,), jnp.float32),
    }

    x = jax.random.normal(kx, (B, Cin, H, W), jnp.float32)
    eps = jax.random.normal(keps, (B, D // 4), jnp.float32)   # the torch.randn draw

    enc = EncoderPallas(params, content_dim, in_shape=(Cin, H, W))
    logp = jax.block_until_ready(enc.forward(x, eps, type="log_prob"))

    ref = reference_logprob(params, x, eps)
    # Tolerance loosened vs. pure-f32 because the Toeplitz conv panels and
    # their activations go through the bf16 MXU path (f32 accumulation).
    np.testing.assert_allclose(np.asarray(logp), np.asarray(ref),
                               rtol=2e-2, atol=2e-2)

    print("KERNEL_OK")
</pallas_src>

<mosaic_0001>
module attributes {stable_mosaic.version = 11 : i64} {
  func.func @_fused_encoder_logprob_kernel(%arg0: i32, %arg1: memref<1024x8xbf16, #tpu.memory_space<vmem>>, %arg2: memref<512x1024xbf16, #tpu.memory_space<vmem>>, %arg3: memref<512x1xf32, #tpu.memory_space<vmem>>, %arg4: memref<256x512xbf16, #tpu.memory_space<vmem>>, %arg5: memref<256x1xf32, #tpu.memory_space<vmem>>, %arg6: memref<8x256xf32, #tpu.memory_space<vmem>>, %arg7: memref<8x1xf32, #tpu.memory_space<vmem>>, %arg8: memref<8x8xf32, #tpu.memory_space<vmem>>, %arg9: memref<1x8xf32, #tpu.memory_space<vmem>>) attributes {dimension_semantics = [#tpu.dimension_semantics<parallel>], iteration_bounds = array<i64: 1>, scalar_prefetch = 0 : i64, scratch_operands = 0 : i64, tpu.core_type = #tpu.core_type<tc>, window_params = [{transform_indices = @transform_0, window_bounds = array<i64: 1024, 8>}, {pipeline_mode = #tpu.pipeline_mode<synchronous>, transform_indices = @transform_1, window_bounds = array<i64: 512, 1024>}, {pipeline_mode = #tpu.pipeline_mode<synchronous>, transform_indices = @transform_2, window_bounds = array<i64: 512, 1>}, {pipeline_mode = #tpu.pipeline_mode<synchronous>, transform_indices = @transform_3, window_bounds = array<i64: 256, 512>}, {pipeline_mode = #tpu.pipeline_mode<synchronous>, transform_indices = @transform_4, window_bounds = array<i64: 256, 1>}, {pipeline_mode = #tpu.pipeline_mode<synchronous>, transform_indices = @transform_5, window_bounds = array<i64: 8, 256>}, {pipeline_mode = #tpu.pipeline_mode<synchronous>, transform_indices = @transform_6, window_bounds = array<i64: 8, 1>}, {transform_indices = @transform_7, window_bounds = array<i64: 8, 8>}, {transform_indices = @transform_8, window_bounds = array<i64: 1, 8>}]} {
    %c0 = arith.constant 0 : index
    %c0_0 = arith.constant 0 : index
    %0 = vector.load %arg1[%c0, %c0_0] : memref<1024x8xbf16, #tpu.memory_space<vmem>>, vector<1024x8xbf16>
    %c0_1 = arith.constant 0 : index
    %c0_2 = arith.constant 0 : index
    %1 = vector.load %arg2[%c0_1, %c0_2] : memref<512x1024xbf16, #tpu.memory_space<vmem>>, vector<512x1024xbf16>
    %cst = arith.constant dense<0.000000e+00> : vector<512x8xf32>
    %2 = tpu.matmul %1, %0, %cst {dimension_numbers = #tpu.dot_dimension_numbers<[1], [0], [0], [1], [0, 0, 1, 1], [], []>} : vector<512x1024xbf16>, vector<1024x8xbf16>, vector<512x8xf32> -> vector<512x8xf32>
    %c0_3 = arith.constant 0 : index
    %c0_4 = arith.constant 0 : index
    %3 = vector.load %arg3[%c0_3, %c0_4] : memref<512x1xf32, #tpu.memory_space<vmem>>, vector<512x1xf32>
    %4 = vector.broadcast %3 : vector<512x1xf32> to vector<512x8xf32>
    %5 = arith.addf %2, %4 : vector<512x8xf32>
    %cst_5 = arith.constant 0.000000e+00 : f32
    %6 = vector.broadcast %cst_5 : f32 to vector<512x8xf32>
    %7 = arith.maximumf %5, %6 : vector<512x8xf32>
    %c0_6 = arith.constant 0 : index
    %c0_7 = arith.constant 0 : index
    %8 = vector.load %arg4[%c0_6, %c0_7] : memref<256x512xbf16, #tpu.memory_space<vmem>>, vector<256x512xbf16>
    %9 = arith.truncf %7 : vector<512x8xf32> to vector<512x8xbf16>
    %cst_8 = arith.constant dense<0.000000e+00> : vector<256x8xf32>
    %10 = tpu.matmul %8, %9, %cst_8 {dimension_numbers = #tpu.dot_dimension_numbers<[1], [0], [0], [1], [0, 0, 1, 1], [], []>} : vector<256x512xbf16>, vector<512x8xbf16>, vector<256x8xf32> -> vector<256x8xf32>
    %c0_9 = arith.constant 0 : index
    %c0_10 = arith.constant 0 : index
    %11 = vector.load %arg5[%c0_9, %c0_10] : memref<256x1xf32, #tpu.memory_space<vmem>>, vector<256x1xf32>
    %12 = vector.broadcast %11 : vector<256x1xf32> to vector<256x8xf32>
    %13 = arith.addf %10, %12 : vector<256x8xf32>
    %cst_11 = arith.constant 0.000000e+00 : f32
    %14 = vector.broadcast %cst_11 : f32 to vector<256x8xf32>
    %15 = arith.maximumf %13, %14 : vector<256x8xf32>
    %c0_12 = arith.constant 0 : index
    %c0_13 = arith.constant 0 : index
    %16 = vector.load %arg6[%c0_12, %c0_13] : memref<8x256xf32, #tpu.memory_space<vmem>>, vector<8x256xf32>
    %cst_14 = arith.constant dense<0.000000e+00> : vector<8x8xf32>
    %17 = tpu.matmul %16, %15, %cst_14 {dimension_numbers = #tpu.dot_dimension_numbers<[1], [0], [0], [1], [0, 0, 1, 1], [], []>} : vector<8x256xf32>, vector<256x8xf32>, vector<8x8xf32> -> vector<8x8xf32>
    %c0_15 = arith.constant 0 : index
    %c0_16 = arith.constant 0 : index
    %18 = vector.load %arg7[%c0_15, %c0_16] : memref<8x1xf32, #tpu.memory_space<vmem>>, vector<8x1xf32>
    %19 = vector.broadcast %18 : vector<8x1xf32> to vector<8x8xf32>
    %20 = arith.addf %17, %19 : vector<8x8xf32>
    %c0_17 = arith.constant 0 : index
    %c0_18 = arith.constant 0 : index
    %21 = vector.load %arg8[%c0_17, %c0_18] : memref<8x8xf32, #tpu.memory_space<vmem>>, vector<8x8xf32>
    %cst_19 = arith.constant 5.000000e-01 : f32
    %22 = vector.broadcast %cst_19 : f32 to vector<8x8xf32>
    %23 = arith.mulf %22, %20 : vector<8x8xf32>
    %24 = math.exp %23 : vector<8x8xf32>
    %25 = arith.mulf %24, %21 : vector<8x8xf32>
    %26 = arith.mulf %25, %21 : vector<8x8xf32>
    %cst_20 = arith.constant 5.000000e-01 : f32
    %27 = vector.broadcast %cst_20 : f32 to vector<8x8xf32>
    %28 = arith.mulf %27, %20 : vector<8x8xf32>
    %29 = arith.addf %26, %28 : vector<8x8xf32>
    %cst_21 = arith.constant dense<0.000000e+00> : vector<8xf32>
    %30 = vector.multi_reduction <add>, %29, %cst_21 [0] : vector<8x8xf32> to vector<8xf32>
    %31 = vector.shape_cast %30 : vector<8xf32> to vector<1x8xf32>
    %cst_22 = arith.constant 14.7030163 : f32
    %32 = vector.broadcast %cst_22 : f32 to vector<1x8xf32>
    %33 = arith.addf %32, %31 : vector<1x8xf32>
    %cst_23 = arith.constant -5.000000e-01 : f32
    %34 = vector.broadcast %cst_23 : f32 to vector<1x8xf32>
    %35 = arith.mulf %34, %33 : vector<1x8xf32>
    %c0_24 = arith.constant 0 : index
    %c0_25 = arith.constant 0 : index
    %36 = vector.load %arg9[%c0_24, %c0_25] : memref<1x8xf32, #tpu.memory_space<vmem>>, vector<1x8xf32>
    tpu.vector_store %arg9[%c0_24, %c0_25], %35 {strides = array<i32>} : memref<1x8xf32, #tpu.memory_space<vmem>>, vector<1x8xf32>,
    return
  }
  func.func @transform_0(%arg0: i32) -> (i32, i32) {
    %c0_i32 = arith.constant 0 : i32
    %c0_i32_0 = arith.constant 0 : i32
    return %c0_i32, %arg0 : i32, i32
  }
  func.func @transform_1(%arg0: i32) -> (i32, i32) {
    %c0_i32 = arith.constant 0 : i32
    %c0_i32_0 = arith.constant 0 : i32
    %c0_i32_1 = arith.constant 0 : i32
    return %c0_i32, %c0_i32_0 : i32, i32
  }
  func.func @transform_2(%arg0: i32) -> (i32, i32) {
    %c0_i32 = arith.constant 0 : i32
    %c0_i32_0 = arith.constant 0 : i32
    %c0_i32_1 = arith.constant 0 : i32
    return %c0_i32, %c0_i32_0 : i32, i32
  }
  func.func @transform_3(%arg0: i32) -> (i32, i32) {
    %c0_i32 = arith.constant 0 : i32
    %c0_i32_0 = arith.constant 0 : i32
    %c0_i32_1 = arith.constant 0 : i32
    return %c0_i32, %c0_i32_0 : i32, i32
  }
  func.func @transform_4(%arg0: i32) -> (i32, i32) {
    %c0_i32 = arith.constant 0 : i32
    %c0_i32_0 = arith.constant 0 : i32
    %c0_i32_1 = arith.constant 0 : i32
    return %c0_i32, %c0_i32_0 : i32, i32
  }
  func.func @transform_5(%arg0: i32) -> (i32, i32) {
    %c0_i32 = arith.constant 0 : i32
    %c0_i32_0 = arith.constant 0 : i32
    %c0_i32_1 = arith.constant 0 : i32
    return %c0_i32, %c0_i32_0 : i32, i32
  }
  func.func @transform_6(%arg0: i32) -> (i32, i32) {
    %c0_i32 = arith.constant 0 : i32
    %c0_i32_0 = arith.constant 0 : i32
    %c0_i32_1 = arith.constant 0 : i32
    return %c0_i32, %c0_i32_0 : i32, i32
  }
  func.func @transform_7(%arg0: i32) -> (i32, i32) {
    %c0_i32 = arith.constant 0 : i32
    %c0_i32_0 = arith.constant 0 : i32
    return %c0_i32, %arg0 : i32, i32
  }
  func.func @transform_8(%arg0: i32) -> (i32, i32) {
    %c0_i32 = arith.constant 0 : i32
    %c0_i32_0 = arith.constant 0 : i32
    return %c0_i32, %arg0 : i32, i32
  }
}

</mosaic_0001>

<bundles_post_ra>
// kernel: _fused_log_prob.1
= control target key start
LH: loop header
LB: loop body
LE: loop exit
PB: predicated region body
PF: predicated region fallthrough
CT: control target
= control target key end

     0   :  { %13 = vsyncpa [#allocation3], 0  ;;  %s6043_s27 = smov [#allocation2]   ;;  %s8033_s0 = inlined_call_operand.vmem [shape: bf16[1024,8], index: 0, kind: input, shape index: {}]   ;;  %s8034_s1 = inlined_call_operand.vmem [shape: bf16[512,1024], index: 1, kind: input, shape index: {}]   ;;  %s8035_s2 = inlined_call_operand.vmem [shape: f32[512,1], index: 2, kind: input, shape index: {}]   ;;  %s8036_s3 = inlined_call_operand.hbm [shape: bf16[256,512], index: 3, kind: input, shape index: {}]   ;;  %s8037_s4 = inlined_call_operand.vmem [shape: f32[256,1], index: 4, kind: input, shape index: {}]   ;;  %s8038_s5 = inlined_call_operand.vmem [shape: f32[8,256], index: 5, kind: input, shape index: {}]   ;;  %s8039_s6 = inlined_call_operand.vmem [shape: f32[8,1], index: 6, kind: input, shape index: {}]   ;;  %s8040_s7 = inlined_call_operand.vmem [shape: f32[8,8], index: 7, kind: input, shape index: {}]   ;;  %s8041_s8 = inlined_call_operand.vmem [shape: f32[1,8], index: 8, kind: output, shape index: {}]  }
   0x1   :  { %s25_s28 = sshll.u32 %s6043_s27, 4  ;;  %s6019_s9 = scalar_lea.hbm %s8036_s3, 8192  ;;  %s26_s28 = int_to_ptr.vmem [resolvable:$true] %s25_s28 }
   0x2   :  { %p6020_p0 = scmp.ne.s32.totalorder %s8036_s3, %s6019_s9  ;;  %p6023_p1 = scmp.lt.u32.totalorder %s6019_s9, %s8036_s3 }
   0x4   :  { %p6025_p2 = pnand %p6023_p1, %p6020_p0 }
   0x6   :  { %6028 = shalt.err (!%p6025_p2)
}
   0x7   :  { %s6029_s14 = scalar_lea.vmem %s26_s28, 8192  ;;  %p6034_p4 = scmp.lt.s32.totalorder %s26_s28, %s26_s28 }
   0x8   :  { %p6030_p3 = scmp.ne.s32.totalorder %s26_s28, %s6029_s14  ;;  %p6035_p5 = scmp.lt.s32.totalorder %s6029_s14, %s6029_s14 }
   0xa   :  { %p6036_p6 = por %p6035_p5, %p6034_p4 }
   0xc   :  { %p6037_p7 = pnand %p6036_p6, %p6030_p3 }
   0xe   :  { %6040 = shalt.err (!%p6037_p7)
}
   0xf   :  { %s6044_s15 = smov 256   ;;  %s6045_s16 = smov 16  }
  0x10   :  { %31 = dma.hbm_to_vmem [thread:$0]  %s8036_s3, 8192, %s26_s28, [#allocation3], %s6044_s15, %s6044_s15, %s6045_s16  }
  0x11   :  { %6041 = dma.done.wait [#allocation3], 8192  }
  0x12   :  { %6042 = vsyncadd [#allocation3], 4294959104  ;;  %v6046_v0 = vmov 0   ;;  %v6111_v1 = vld [vmem:[%s8033_s0 + $0x80] sm:$0xff]   ;;  %v6117_v2 = vld [vmem:[%s8033_s0 + $0x88] sm:$0xff]   ;;  %vm4743_vm0 = vcmask 64512  }
  0x13   :  { %2765 = vmatprep.subr.bf16.mxu0 %v6046_v0  ;;  %2476 = vmatprep.subr.bf16.mxu1 %v6046_v0  ;;  %v6124_v3 = vld [vmem:[%s8033_s0 + $0x90] sm:$0xff]   ;;  %v6131_v4 = vld [vmem:[%s8033_s0 + $0x98] sm:$0xff]   ;;  %v6138_v5 = vld [vmem:[%s8033_s0 + $0xa0] sm:$0xff]   ;;  %vm4753_vm1 = vcmask 57344  }
  0x14   :  { %5855 = vset.pattern.permute.xlu0 %v6046_v0  ;;  %5856 = vset.pattern.permute.xlu1 %v6046_v0  ;;  %v6144_v6 = vld [vmem:[%s8034_s1 + $0x8] sm:$0xff]  ;;  %v5873_v10 = vld [vmem:[%s8033_s0] sm:$0xff]   ;;  %v6171_v12 = vld [vmem:[%s8033_s0 + $0xb0] sm:$0xff]  }
  0x15   :  { %2766 = vmatpush1.bf16.msra.mxu0 %v6111_v1  ;;  %v6149_v7 = vld [vmem:[%s8034_s1 + $0x28] sm:$0xff]  ;;  %2477 = vmatpush1.bf16.msra.mxu1 %v5873_v10  ;;  %v5875_v13 = vld [vmem:[%s8033_s0 + $0x10] sm:$0xff]   ;;  %v6182_v14 = vld [vmem:[%s8033_s0 + $0xb8] sm:$0xff]  }
  0x16   :  { %2767 = vmatprep.subr.bf16.mxu0 %v6046_v0  ;;  %v6154_v8 = vld [vmem:[%s8033_s0 + $0xa8] sm:$0xff]   ;;  %v4763_v9 = vcombine.high %v6144_v6, %v6149_v7  ;;  %2478 = vmatprep.subr.bf16.mxu1 %v6046_v0  ;;  %v5876_v15 = vld [vmem:[%s8033_s0 + $0x18] sm:$0xff]   ;;  %v6193_v16 = vld [vmem:[%s8033_s0 + $0xc0] sm:$0xff]   ;;  %v4762_v37 = vcombine.low %v6144_v6, %v6149_v7 }
  0x17   :  { %v5874_v11 = vld [vmem:[%s8033_s0 + $0x8] sm:$0xff]   ;;  %v5877_v17 = vld [vmem:[%s8033_s0 + $0x20] sm:$0xff]   ;;  %v6215_v20 = vld [vmem:[%s8033_s0 + $0xd0] sm:$0xff]  }
  0x18   :  { %2797 = vmatprep.mubr.bf16.mxu0 %v4763_v9  ;;  %v6204_v18 = vld [vmem:[%s8033_s0 + $0xc8] sm:$0xff]   ;;  %v5879_v21 = vld [vmem:[%s8033_s0 + $0x30] sm:$0xff]   ;;  %v6226_v22 = vld [vmem:[%s8033_s0 + $0xd8] sm:$0xff]  }
  0x19   :  { %2768 = vmatpush1.bf16.msra.mxu0 %v6117_v2  ;;  %2479 = vmatpush1.bf16.msra.mxu1 %v5874_v11  ;;  %v5878_v19 = vld [vmem:[%s8033_s0 + $0x28] sm:$0xff]   ;;  %v6231_v23 = vld [vmem:[%s8034_s1] sm:$0xff]  ;;  %v5880_v26 = vld [vmem:[%s8033_s0 + $0x38] sm:$0xff]  }
  0x1a   :  { %2769 = vmatprep.subr.bf16.mxu0 %v6046_v0  ;;  %2480 = vmatprep.subr.bf16.mxu1 %v6046_v0  ;;  %v6236_v24 = vld [vmem:[%s8034_s1 + $0x20] sm:$0xff]  ;;  %v6260_v29 = vld [vmem:[%s8033_s0 + $0xe8] sm:$0xff]   ;;  %v6271_v31 = vld [vmem:[%s8033_s0 + $0xf0] sm:$0xff]  }
  0x1b   :  { %v4761_v25 = vcombine.high %v6231_v23, %v6236_v24  ;;  %v6249_v27 = vld [vmem:[%s8033_s0 + $0xe0] sm:$0xff]   ;;  %v5882_v30 = vld [vmem:[%s8033_s0 + $0x48] sm:$0xff]   ;;  %v5883_v32 = vld [vmem:[%s8033_s0 + $0x50] sm:$0xff]   ;;  %v4760_v58 = vcombine.low %v6231_v23, %v6236_v24 }
  0x1c   :  { %v5881_v28 = vld [vmem:[%s8033_s0 + $0x40] sm:$0xff]   ;;  %v6282_v33 = vld [vmem:[%s8033_s0 + $0xf8] sm:$0xff]   ;;  %v181_v34 = vld [vmem:[%s8034_s1 + $0x48] sm:$0xff] }
  0x1d   :  { %2770 = vmatpush1.bf16.msra.mxu0 %v6124_v3  ;;  %2481 = vmatpush1.bf16.msra.mxu1 %v5875_v13  ;;  %v185_v35 = vld [vmem:[%s8034_s1 + $0x68] sm:$0xff]  ;;  %v5884_v36 = vld [vmem:[%s8033_s0 + $0x58] sm:$0xff]   ;;  %v5886_v38 = vld [vmem:[%s8033_s0 + $0x100] sm:$0xff]  }
  0x1e   :  { %2771 = vmatprep.subr.bf16.mxu0 %v6046_v0  ;;  %2482 = vmatprep.subr.bf16.mxu1 %v6046_v0  ;;  %v4771_v39 = vcombine.high %v181_v34, %v185_v35  ;;  %v5885_v40 = vld [vmem:[%s8033_s0 + $0x60] sm:$0xff]   ;;  %v189_v41 = vld [vmem:[%s8034_s1 + $0x88] sm:$0xff]  ;;  %v5891_v45 = vld [vmem:[%s8033_s0 + $0x110] sm:$0xff]   ;;  %v4770_v46 = vcombine.low %v181_v34, %v185_v35 }
  0x1f   :  { %2508 = vmatprep.mubr.bf16.mxu1 %v4761_v25  ;;  %v193_v42 = vld [vmem:[%s8034_s1 + $0xa8] sm:$0xff]  ;;  %v5888_v48 = vld [vmem:[%s8033_s0 + $0x70] sm:$0xff]   ;;  %v5892_v51 = vld [vmem:[%s8033_s0 + $0x118] sm:$0xff]  }
  0x20   :  { %v5889_v43 = vld [vmem:[%s8033_s0 + $0x108] sm:$0xff]   ;;  %v4779_v47 = vcombine.high %v189_v41, %v193_v42  ;;  %v5890_v52 = vld [vmem:[%s8033_s0 + $0x78] sm:$0xff]   ;;  %v180_v53 = vld [vmem:[%s8034_s1 + $0x40] sm:$0xff]  ;;  %v4778_v56 = vcombine.low %v189_v41, %v193_v42 }
  0x21   :  { %2772 = vmatpush1.bf16.msra.mxu0 %v6131_v4  ;;  %2483 = vmatpush1.bf16.msra.mxu1 %v5876_v15  ;;  %v5887_v44 = vld [vmem:[%s8033_s0 + $0x68] sm:$0xff]   ;;  %v184_v54 = vld [vmem:[%s8034_s1 + $0x60] sm:$0xff]  ;;  %v5895_v7 = vld [vmem:[%s8033_s0 + $0x130] sm:$0xff]  }
  0x22   :  { %2773 = vmatprep.subr.bf16.mxu0 %v6046_v0  ;;  %2484 = vmatprep.subr.bf16.mxu1 %v6046_v0  ;;  %v197_v49 = vld [vmem:[%s8034_s1 + $0xc8] sm:$0xff]  ;;  %v5893_v55 = vld [vmem:[%s8033_s0 + $0x120] sm:$0xff]   ;;  %v4769_v59 = vcombine.high %v180_v53, %v184_v54  ;;  %v4768_v11 = vcombine.low %v180_v53, %v184_v54  ;;  %v5904_v54 = vld [vmem:[%s8033_s0 + $0x178] sm:$0xff]  }
  0x23   :  { %v201_v50 = vld [vmem:[%s8034_s1 + $0xe8] sm:$0xff]  ;;  %v188_v63 = vld [vmem:[%s8034_s1 + $0x80] sm:$0xff] }
  0x24   :  { %v4787_v57 = vcombine.high %v197_v49, %v201_v50  ;;  %v205_v60 = vld [vmem:[%s8034_s1 + $0x108] sm:$0xff]  ;;  %v192_v6 = vld [vmem:[%s8034_s1 + $0xa0] sm:$0xff]  ;;  %v4786_v9 = vcombine.low %v197_v49, %v201_v50 }
  0x25   :  { %2774 = vmatpush1.bf16.msra.mxu0 %v6138_v5  ;;  %2485 = vmatpush1.bf16.msra.mxu1 %v5877_v17  ;;  %v209_v61 = vld [vmem:[%s8034_s1 + $0x128] sm:$0xff]  ;;  %v4777_v13 = vcombine.high %v188_v63, %v192_v6  ;;  %v5896_v17 = vld [vmem:[%s8033_s0 + $0x138] sm:$0xff]   ;;  %v4776_v25 = vcombine.low %v188_v63, %v192_v6  ;;  %v212_v41 = vld [vmem:[%s8034_s1 + $0x140] sm:$0xff] }
  0x26   :  { %2775 = vmatprep.subr.bf16.mxu0 %v6046_v0  ;;  %2486 = vmatprep.subr.bf16.mxu1 %v6046_v0  ;;  %v5894_v62 = vld [vmem:[%s8033_s0 + $0x128] sm:$0xff]   ;;  %v4795_v10 = vcombine.high %v205_v60, %v209_v61  ;;  %v4794_v23 = vcombine.low %v205_v60, %v209_v61  ;;  %v216_v42 = vld [vmem:[%s8034_s1 + $0x160] sm:$0xff] }
  0x27   :  { %v213_v15 = vld [vmem:[%s8034_s1 + $0x148] sm:$0xff]  ;;  %v220_v49 = vld [vmem:[%s8034_s1 + $0x180] sm:$0xff]  ;;  %v4800_v53 = vcombine.low %v212_v41, %v216_v42 }
  0x28   :  { %v224_v50 = vld [vmem:[%s8034_s1 + $0x1a0] sm:$0xff] }
  0x29   :  { %2776 = vmatpush1.bf16.msra.mxu0 %v6154_v8  ;;  %2487 = vmatpush1.bf16.msra.mxu1 %v5878_v19  ;;  %v200_v19 = vld [vmem:[%s8034_s1 + $0xe0] sm:$0xff]  ;;  %v4808_v60 = vcombine.low %v220_v49, %v224_v50 }
  0x2a   :  { %2777 = vmatprep.subr.bf16.mxu0 %v6046_v0  ;;  %2488 = vmatprep.subr.bf16.mxu1 %v6046_v0  ;;  %v240_v6 = vld [vmem:[%s8034_s1 + $0x220] sm:$0xff] }
  0x2d   :  { %2778 = vmatpush1.bf16.msra.mxu0 %v6171_v12  ;;  %2489 = vmatpush1.bf16.msra.mxu1 %v5879_v21  ;;  %v5897_v21 = vld [vmem:[%s8033_s0 + $0x140] sm:$0xff]  }
  0x2e   :  { %2779 = vmatprep.subr.bf16.mxu0 %v6046_v0  ;;  %2490 = vmatprep.subr.bf16.mxu1 %v6046_v0 }
  0x31   :  { %2780 = vmatpush1.bf16.msra.mxu0 %v6182_v14  ;;  %2491 = vmatpush1.bf16.msra.mxu1 %v5880_v26 }
  0x32   :  { %2781 = vmatprep.subr.bf16.mxu0 %v6046_v0  ;;  %2492 = vmatprep.subr.bf16.mxu1 %v6046_v0 }
  0x35   :  { %2782 = vmatpush1.bf16.msra.mxu0 %v6193_v16  ;;  %2493 = vmatpush1.bf16.msra.mxu1 %v5881_v28  ;;  %v221_v28 = vld [vmem:[%s8034_s1 + $0x188] sm:$0xff] }
  0x36   :  { %2783 = vmatprep.subr.bf16.mxu0 %v6046_v0  ;;  %2494 = vmatprep.subr.bf16.mxu1 %v6046_v0 }
  0x39   :  { %2784 = vmatpush1.bf16.msra.mxu0 %v6204_v18  ;;  %2495 = vmatpush1.bf16.msra.mxu1 %v5882_v30  ;;  %v5898_v30 = vld [vmem:[%s8033_s0 + $0x148] sm:$0xff]  }
  0x3a   :  { %2785 = vmatprep.subr.bf16.mxu0 %v6046_v0  ;;  %2496 = vmatprep.subr.bf16.mxu1 %v6046_v0 }
  0x3d   :  { %2786 = vmatpush1.bf16.msra.mxu0 %v6215_v20  ;;  %2497 = vmatpush1.bf16.msra.mxu1 %v5883_v32  ;;  %v208_v32 = vld [vmem:[%s8034_s1 + $0x120] sm:$0xff] }
  0x3e   :  { %2787 = vmatprep.subr.bf16.mxu0 %v6046_v0  ;;  %2498 = vmatprep.subr.bf16.mxu1 %v6046_v0 }
  0x41   :  { %2788 = vmatpush1.bf16.msra.mxu0 %v6226_v22  ;;  %2499 = vmatpush1.bf16.msra.mxu1 %v5884_v36  ;;  %v5899_v36 = vld [vmem:[%s8033_s0 + $0x150] sm:$0xff]  }
  0x42   :  { %2789 = vmatprep.subr.bf16.mxu0 %v6046_v0  ;;  %2500 = vmatprep.subr.bf16.mxu1 %v6046_v0 }
  0x45   :  { %2790 = vmatpush1.bf16.msra.mxu0 %v6249_v27  ;;  %2501 = vmatpush1.bf16.msra.mxu1 %v5885_v40  ;;  %v233_v40 = vld [vmem:[%s8034_s1 + $0x1e8] sm:$0xff] }
  0x46   :  { %2791 = vmatprep.subr.bf16.mxu0 %v6046_v0  ;;  %2502 = vmatprep.subr.bf16.mxu1 %v6046_v0 }
  0x49   :  { %2792 = vmatpush1.bf16.msra.mxu0 %v6260_v29  ;;  %2503 = vmatpush1.bf16.msra.mxu1 %v5887_v44  ;;  %v5901_v44 = vld [vmem:[%s8033_s0 + $0x160] sm:$0xff]  }
  0x4a   :  { %2793 = vmatprep.subr.bf16.mxu0 %v6046_v0  ;;  %2504 = vmatprep.subr.bf16.mxu1 %v6046_v0 }
  0x4d   :  { %2794 = vmatpush1.bf16.msra.mxu0 %v6271_v31  ;;  %2505 = vmatpush1.bf16.msra.mxu1 %v5888_v48  ;;  %v241_v48 = vld [vmem:[%s8034_s1 + $0x228] sm:$0xff] }
  0x4e   :  { %2795 = vmatprep.subr.bf16.mxu0 %v6046_v0  ;;  %2506 = vmatprep.subr.bf16.mxu1 %v6046_v0 }
  0x51   :  { %2796 = vmatpush1.bf16.msra.mxu0 %v6282_v33  ;;  %2507 = vmatpush1.bf16.msra.mxu1 %v5890_v52  ;;  %v5903_v52 = vld [vmem:[%s8033_s0 + $0x170] sm:$0xff]  }
  0x52   :  { %3054 = vmatprep.subr.bf16.mxu0 %v6046_v0  ;;  %5435 = vmatprep.subr.bf16.mxu1 %v6046_v0 }
  0x54   :  { %2798 = vmatmul.mubr.bf16.vlgmr.msra.gmra.mrb[0].mxu0 %v4762_v37  ;;  %2509 = vmatmul.mubr.bf16.vlgmr.msra.gmra.mrb[0].mxu1 %v4760_v58  ;;  %v232_v58 = vld [vmem:[%s8034_s1 + $0x1e0] sm:$0xff] }
  0x55   :  { %2805 = vmatprep.mubr.bf16.mxu0 %v4771_v39  ;;  %3055 = vmatpush1.bf16.msra.mxu0 %v5886_v38  ;;  %v229_v39 = vld [vmem:[%s8034_s1 + $0x1c8] sm:$0xff] }
  0x56   :  { %3056 = vmatprep.subr.bf16.mxu0 %v6046_v0  ;;  %2516 = vmatprep.mubr.bf16.mxu1 %v4769_v59 }
  0x57   :  { %5451 = vmatpush1.bf16.msra.mxu1 %v6111_v1  ;;  %v217_v1 = vld [vmem:[%s8034_s1 + $0x168] sm:$0xff] }
  0x58   :  { %5436 = vmatprep.subr.bf16.mxu1 %v6046_v0  ;;  %v4803_v24 = vcombine.high %v213_v15, %v217_v1  ;;  %v4802_v34 = vcombine.low %v213_v15, %v217_v1  ;;  %v248_v15 = vld [vmem:[%s8034_s1 + $0x260] sm:$0xff] }
  0x59   :  { %3057 = vmatpush1.bf16.msra.mxu0 %v5889_v43  ;;  %v4819_v43 = vcombine.high %v229_v39, %v233_v40 }
  0x5a   :  { %3058 = vmatprep.subr.bf16.mxu0 %v6046_v0 }
  0x5b   :  { %5452 = vmatpush1.bf16.msra.mxu1 %v6117_v2  ;;  %v196_v2 = vld [vmem:[%s8034_s1 + $0xc0] sm:$0xff] }
  0x5c   :  { %2806 = vmatmul.mubr.bf16.gmra.mrb[4].mxu0 %v4770_v46  ;;  %5437 = vmatprep.subr.bf16.mxu1 %v6046_v0  ;;  %v4785_v26 = vcombine.high %v196_v2, %v200_v19  ;;  %v4784_v37 = vcombine.low %v196_v2, %v200_v19  ;;  %v5902_v46 = vld [vmem:[%s8033_s0 + $0x168] sm:$0xff]  }
  0x5d   :  { %2813 = vmatprep.mubr.bf16.mxu0 %v4779_v47  ;;  %3059 = vmatpush1.bf16.msra.mxu0 %v5891_v45  ;;  %v237_v47 = vld [vmem:[%s8034_s1 + $0x208] sm:$0xff] }
  0x5e   :  { %3060 = vmatprep.subr.bf16.mxu0 %v6046_v0  ;;  %2517 = vmatmul.mubr.bf16.gmra.mrb[4].mxu1 %v4768_v11  ;;  %v265_v11 = vld [vmem:[%s8034_s1 + $0x2e8] sm:$0xff] }
  0x5f   :  { %2524 = vmatprep.mubr.bf16.mxu1 %v4777_v13  ;;  %5453 = vmatpush1.bf16.msra.mxu1 %v6124_v3  ;;  %v225_v3 = vld [vmem:[%s8034_s1 + $0x1a8] sm:$0xff] }
  0x60   :  { %5438 = vmatprep.subr.bf16.mxu1 %v6046_v0  ;;  %v4811_v35 = vcombine.high %v221_v28, %v225_v3  ;;  %v273_v19 = vld [vmem:[%s8034_s1 + $0x328] sm:$0xff] }
  0x61   :  { %3061 = vmatpush1.bf16.msra.mxu0 %v5892_v51  ;;  %v4827_v51 = vcombine.high %v237_v47, %v241_v48 }
  0x62   :  { %3062 = vmatprep.subr.bf16.mxu0 %v6046_v0 }
  0x63   :  { %5454 = vmatpush1.bf16.msra.mxu1 %v6131_v4  ;;  %v204_v4 = vld [vmem:[%s8034_s1 + $0x100] sm:$0xff] }
  0x64   :  { %2814 = vmatmul.mubr.bf16.gmra.mrb[8].mxu0 %v4778_v56  ;;  %5439 = vmatprep.subr.bf16.mxu1 %v6046_v0  ;;  %v4793_v38 = vcombine.high %v204_v4, %v208_v32  ;;  %v4792_v45 = vcombine.low %v204_v4, %v208_v32  ;;  %v249_v56 = vld [vmem:[%s8034_s1 + $0x268] sm:$0xff]  ;;  %v260_v4 = vld [vmem:[%s8034_s1 + $0x2c0] sm:$0xff] }
  0x65   :  { %2821 = vmatprep.mubr.bf16.mxu0 %v4787_v57  ;;  %3063 = vmatpush1.bf16.msra.mxu0 %v5893_v55  ;;  %v245_v55 = vld [vmem:[%s8034_s1 + $0x248] sm:$0xff]  ;;  %v228_v57 = vld [vmem:[%s8034_s1 + $0x1c0] sm:$0xff] }
  0x66   :  { %3064 = vmatprep.subr.bf16.mxu0 %v6046_v0  ;;  %2525 = vmatmul.mubr.bf16.gmra.mrb[8].mxu1 %v4776_v25  ;;  %v4835_v59 = vcombine.high %v245_v55, %v249_v56  ;;  %v4817_v61 = vcombine.high %v228_v57, %v232_v58  ;;  %v4834_v63 = vcombine.low %v245_v55, %v249_v56  ;;  %v264_v32 = vld [vmem:[%s8034_s1 + $0x2e0] sm:$0xff]  ;;  %v174_v56 = vld [vmem:[%s8034_s1 + $0x10] sm:$0xff] }
  0x67   :  { %2532 = vmatprep.mubr.bf16.mxu1 %v4785_v26  ;;  %5455 = vmatpush1.bf16.msra.mxu1 %v6138_v5  ;;  %v5900_v5 = vld [vmem:[%s8033_s0 + $0x158] sm:$0xff]  }
  0x68   :  { %5440 = vmatprep.subr.bf16.mxu1 %v6046_v0 }
  0x69   :  { %3065 = vmatpush1.bf16.msra.mxu0 %v5894_v62  ;;  %v257_v62 = vld [vmem:[%s8034_s1 + $0x2a8] sm:$0xff] }
  0x6a   :  { %3066 = vmatprep.subr.bf16.mxu0 %v6046_v0 }
  0x6b   :  { %5456 = vmatpush1.bf16.msra.mxu1 %v6154_v8  ;;  %v4810_v8 = vcombine.low %v221_v28, %v225_v3  ;;  %v277_v28 = vld [vmem:[%s8034_s1 + $0x348] sm:$0xff] }
  0x6c   :  { %2822 = vmatmul.mubr.bf16.gmra.mrb[12].mxu0 %v4786_v9  ;;  %5441 = vmatprep.subr.bf16.mxu1 %v6046_v0  ;;  %v4816_v9 = vcombine.low %v228_v57, %v232_v58  ;;  %v281_v3 = vld [vmem:[%s8034_s1 + $0x368] sm:$0xff]  ;;  %v292_v58 = vld [vmem:[%s8034_s1 + $0x3c0] sm:$0xff] }
  0x6d   :  { %2829 = vmatprep.mubr.bf16.mxu0 %v4795_v10  ;;  %3067 = vmatpush1.bf16.msra.mxu0 %v5895_v7 }
  0x6e   :  { %3068 = vmatprep.subr.bf16.mxu0 %v6046_v0  ;;  %2533 = vmatmul.mubr.bf16.gmra.mrb[12].mxu1 %v4784_v37  ;;  %v285_v37 = vld [vmem:[%s8034_s1 + $0x388] sm:$0xff] }
  0x6f   :  { %2540 = vmatprep.mubr.bf16.mxu1 %v4793_v38  ;;  %5457 = vmatpush1.bf16.msra.mxu1 %v6171_v12  ;;  %v4801_v12 = vcombine.high %v212_v41, %v216_v42  ;;  %v289_v38 = vld [vmem:[%s8034_s1 + $0x3a8] sm:$0xff]  ;;  %v4848_v41 = vcombine.low %v260_v4, %v264_v32 }
  0x70   :  { %5442 = vmatprep.subr.bf16.mxu1 %v6046_v0 }
  0x71   :  { %3069 = vmatpush1.bf16.msra.mxu0 %v5896_v17 }
  0x72   :  { %3070 = vmatprep.subr.bf16.mxu0 %v6046_v0 }
  0x73   :  { %5458 = vmatpush1.bf16.msra.mxu1 %v6182_v14  ;;  %v4818_v14 = vcombine.low %v229_v39, %v233_v40  ;;  %v268_v39 = vld [vmem:[%s8034_s1 + $0x300] sm:$0xff] }
  0x74   :  { %2830 = vmatmul.mubr.bf16.gmra.mrb[16].mxu0 %v4794_v23  ;;  %5443 = vmatprep.subr.bf16.mxu1 %v6046_v0  ;;  %v252_v23 = vld [vmem:[%s8034_s1 + $0x280] sm:$0xff] }
  0x75   :  { %2837 = vmatprep.mubr.bf16.mxu0 %v4803_v24  ;;  %3071 = vmatpush1.bf16.msra.mxu0 %v5897_v21  ;;  %v272_v40 = vld [vmem:[%s8034_s1 + $0x320] sm:$0xff] }
  0x76   :  { %3072 = vmatprep.subr.bf16.mxu0 %v6046_v0  ;;  %2541 = vmatmul.mubr.bf16.gmra.mrb[16].mxu1 %v4792_v45  ;;  %v4857_v42 = vcombine.high %v268_v39, %v272_v40  ;;  %v4874_v45 = vcombine.low %v285_v37, %v289_v38 }
  0x77   :  { %2548 = vmatprep.mubr.bf16.mxu1 %v4801_v12  ;;  %5459 = vmatpush1.bf16.msra.mxu1 %v6193_v16  ;;  %v4809_v16 = vcombine.high %v220_v49, %v224_v50  ;;  %v276_v12 = vld [vmem:[%s8034_s1 + $0x340] sm:$0xff]  ;;  %v301_v49 = vld [vmem:[%s8034_s1 + $0x408] sm:$0xff] }
  0x78   :  { %5444 = vmatprep.subr.bf16.mxu1 %v6046_v0  ;;  %v305_v50 = vld [vmem:[%s8034_s1 + $0x428] sm:$0xff] }
  0x79   :  { %3073 = vmatpush1.bf16.msra.mxu0 %v5898_v30  ;;  %v4890_v57 = vcombine.low %v301_v49, %v305_v50 }
  0x7a   :  { %3074 = vmatprep.subr.bf16.mxu0 %v6046_v0 }
  0x7b   :  { %5460 = vmatpush1.bf16.msra.mxu1 %v6204_v18  ;;  %v4826_v18 = vcombine.low %v237_v47, %v241_v48  ;;  %v4856_v48 = vcombine.low %v268_v39, %v272_v40  ;;  %v328_v39 = vld [vmem:[%s8034_s1 + $0x4e0] sm:$0xff] }
  0x7c   :  { %2838 = vmatmul.mubr.bf16.gmra.mrb[20].mxu0 %v4802_v34  ;;  %5445 = vmatprep.subr.bf16.mxu1 %v6046_v0  ;;  %v4867_v34 = vcombine.high %v277_v28, %v281_v3 }
  0x7d   :  { %2845 = vmatprep.mubr.bf16.mxu0 %v4811_v35  ;;  %3075 = vmatpush1.bf16.msra.mxu0 %v5899_v36  ;;  %v4849_v36 = vcombine.high %v260_v4, %v264_v32  ;;  %v5909_v4 = vld [vmem:[%s8033_s0 + $0x1a0] sm:$0xff]  }
  0x7e   :  { %3076 = vmatprep.subr.bf16.mxu0 %v6046_v0  ;;  %2549 = vmatmul.mubr.bf16.gmra.mrb[20].mxu1 %v4800_v53  ;;  %v288_v53 = vld [vmem:[%s8034_s1 + $0x3a0] sm:$0xff] }
  0x7f   :  { %2556 = vmatprep.mubr.bf16.mxu1 %v4809_v16  ;;  %5461 = vmatpush1.bf16.msra.mxu1 %v6215_v20  ;;  %v253_v20 = vld [vmem:[%s8034_s1 + $0x288] sm:$0xff]  ;;  %v4891_v16 = vcombine.high %v301_v49, %v305_v50  ;;  %v222_v49 = vld [vmem:[%s8034_s1 + $0x190] sm:$0xff] }
  0x80   :  { %5446 = vmatprep.subr.bf16.mxu1 %v6046_v0  ;;  %v4843_v7 = vcombine.high %v253_v20, %v257_v62  ;;  %v4842_v13 = vcombine.low %v253_v20, %v257_v62  ;;  %v182_v62 = vld [vmem:[%s8034_s1 + $0x50] sm:$0xff] }
  0x81   :  { %3077 = vmatpush1.bf16.msra.mxu0 %v5900_v5  ;;  %v4866_v5 = vcombine.low %v277_v28, %v281_v3  ;;  %v316_v28 = vld [vmem:[%s8034_s1 + $0x480] sm:$0xff]  ;;  %v226_v50 = vld [vmem:[%s8034_s1 + $0x1b0] sm:$0xff] }
  0x82   :  { %3078 = vmatprep.subr.bf16.mxu0 %v6046_v0  ;;  %v320_v3 = vld [vmem:[%s8034_s1 + $0x4a0] sm:$0xff] }
  0x83   :  { %5462 = vmatpush1.bf16.msra.mxu1 %v6226_v22  ;;  %v236_v22 = vld [vmem:[%s8034_s1 + $0x200] sm:$0xff] }
  0x84   :  { %2846 = vmatmul.mubr.bf16.gmra.mrb[24].mxu0 %v4810_v8  ;;  %5447 = vmatprep.subr.bf16.mxu1 %v6046_v0  ;;  %v4825_v10 = vcombine.high %v236_v22, %v240_v6  ;;  %v4824_v17 = vcombine.low %v236_v22, %v240_v6  ;;  %v4875_v8 = vcombine.high %v285_v37, %v289_v38  ;;  %v300_v6 = vld [vmem:[%s8034_s1 + $0x400] sm:$0xff]  ;;  %v210_v37 = vld [vmem:[%s8034_s1 + $0x130] sm:$0xff] }
  0x85   :  { %2853 = vmatprep.mubr.bf16.mxu0 %v4819_v43  ;;  %3079 = vmatpush1.bf16.msra.mxu0 %v5901_v44  ;;  %v293_v43 = vld [vmem:[%s8034_s1 + $0x3c8] sm:$0xff] }
  0x86   :  { %3080 = vmatprep.subr.bf16.mxu0 %v6046_v0  ;;  %2557 = vmatmul.mubr.bf16.gmra.mrb[24].mxu1 %v4808_v60  ;;  %v297_v44 = vld [vmem:[%s8034_s1 + $0x3e8] sm:$0xff] }
  0x87   :  { %2564 = vmatprep.mubr.bf16.mxu1 %v4817_v61  ;;  %5463 = vmatpush1.bf16.msra.mxu1 %v6249_v27  ;;  %v261_v27 = vld [vmem:[%s8034_s1 + $0x2c8] sm:$0xff]  ;;  %v4883_v47 = vcombine.high %v293_v43, %v297_v44 }
  0x88   :  { %5448 = vmatprep.subr.bf16.mxu1 %v6046_v0  ;;  %v4851_v1 = vcombine.high %v261_v27, %v265_v11  ;;  %v4850_v21 = vcombine.low %v261_v27, %v265_v11 }
  0x89   :  { %3081 = vmatpush1.bf16.msra.mxu0 %v5902_v46  ;;  %v280_v46 = vld [vmem:[%s8034_s1 + $0x360] sm:$0xff] }
  0x8a   :  { %3082 = vmatprep.subr.bf16.mxu0 %v6046_v0 }
  0x8b   :  { %5464 = vmatpush1.bf16.msra.mxu1 %v6260_v29  ;;  %v244_v29 = vld [vmem:[%s8034_s1 + $0x240] sm:$0xff] }
  0x8c   :  { %2854 = vmatmul.mubr.bf16.gmra.mrb[28].mxu0 %v4818_v14  ;;  %5449 = vmatprep.subr.bf16.mxu1 %v6046_v0  ;;  %v4833_v2 = vcombine.high %v244_v29, %v248_v15  ;;  %v4832_v25 = vcombine.low %v244_v29, %v248_v15  ;;  %v4865_v14 = vcombine.high %v276_v12, %v280_v46  ;;  %v190_v29 = vld [vmem:[%s8034_s1 + $0x90] sm:$0xff] }
  0x8d   :  { %2861 = vmatprep.mubr.bf16.mxu0 %v4827_v51  ;;  %3083 = vmatpush1.bf16.msra.mxu0 %v5903_v52  ;;  %v4882_v51 = vcombine.low %v293_v43, %v297_v44  ;;  %v284_v52 = vld [vmem:[%s8034_s1 + $0x380] sm:$0xff]  ;;  %v194_v15 = vld [vmem:[%s8034_s1 + $0xb0] sm:$0xff] }
  0x8e   :  { %3084 = vmatprep.subr.bf16.mxu0 %v6046_v0  ;;  %2565 = vmatmul.mubr.bf16.gmra.mrb[28].mxu1 %v4816_v9  ;;  %v4873_v55 = vcombine.high %v284_v52, %v288_v53  ;;  %v4872_v61 = vcombine.low %v284_v52, %v288_v53  ;;  %v218_v43 = vld [vmem:[%s8034_s1 + $0x170] sm:$0xff]  ;;  %v340_v52 = vld [vmem:[%s8034_s1 + $0x540] sm:$0xff] }
  0x8f   :  { %2572 = vmatprep.mubr.bf16.mxu1 %v4825_v10  ;;  %5465 = vmatpush1.bf16.msra.mxu1 %v6271_v31  ;;  %v269_v31 = vld [vmem:[%s8034_s1 + $0x308] sm:$0xff]  ;;  %v5905_v10 = vld [vmem:[%s8033_s0 + $0x180] sm:$0xff]  }
  0x90   :  { %5450 = vmatprep.subr.bf16.mxu1 %v6046_v0  ;;  %v4859_v24 = vcombine.high %v269_v31, %v273_v19  ;;  %v4858_v30 = vcombine.low %v269_v31, %v273_v19  ;;  %v4781_v31 = vcombine.high %v190_v29, %v194_v15  ;;  %v5907_v19 = vld [vmem:[%s8033_s0 + $0x190] sm:$0xff]   ;;  %v344_v53 = vld [vmem:[%s8034_s1 + $0x560] sm:$0xff] }
  0x91   :  { %3085 = vmatpush1.bf16.msra.mxu0 %v5904_v54  ;;  %v4864_v54 = vcombine.low %v276_v12, %v280_v46  ;;  %v336_v12 = vld [vmem:[%s8034_s1 + $0x520] sm:$0xff] }
  0x92   :  { %3343 = vmatprep.subr.bf16.mxu0 %v6046_v0 }
  0x93   :  { %5466 = vmatpush1.bf16.msra.mxu1 %v6282_v33  ;;  %v256_v33 = vld [vmem:[%s8034_s1 + $0x2a0] sm:$0xff] }
  0x94   :  { %2862 = vmatmul.mubr.bf16.gmra.mrb[32].mxu0 %v4826_v18  ;;  %v4841_v26 = vcombine.high %v252_v23, %v256_v33  ;;  %v4840_v35 = vcombine.low %v252_v23, %v256_v33  ;;  %v178_v18 = vld [vmem:[%s8034_s1 + $0x30] sm:$0xff]  ;;  %v5908_v33 = vld [vmem:[%s8033_s0 + $0x198] sm:$0xff]  }
  0x95   :  { %2869 = vmatprep.mubr.bf16.mxu0 %v4835_v59  ;;  %v296_v59 = vld [vmem:[%s8034_s1 + $0x3e0] sm:$0xff]  ;;  %v4765_v60 = vcombine.high %v174_v56, %v178_v18  ;;  %v4764_v22 = vcombine.low %v174_v56, %v178_v18  ;;  %v230_v56 = vld [vmem:[%s8034_s1 + $0x1d0] sm:$0xff] }
  0x96   :  { %2573 = vmatmul.mubr.bf16.gmra.mrb[32].mxu1 %v4824_v17  ;;  %v4881_v20 = vcombine.high %v292_v58, %v296_v59  ;;  %v4880_v27 = vcombine.low %v292_v58, %v296_v59  ;;  %v308_v17 = vld [vmem:[%s8034_s1 + $0x440] sm:$0xff]  ;;  %v234_v18 = vld [vmem:[%s8034_s1 + $0x1f0] sm:$0xff] }
  0x97   :  { %2580 = vmatprep.mubr.bf16.mxu1 %v4833_v2  ;;  %v312_v2 = vld [vmem:[%s8034_s1 + $0x460] sm:$0xff] }
  0x98   :  { %v4897_v23 = vcombine.high %v308_v17, %v312_v2  ;;  %v4896_v32 = vcombine.low %v308_v17, %v312_v2  ;;  %v348_v58 = vld [vmem:[%s8034_s1 + $0x580] sm:$0xff] }
  0x99   :  { %v352_v59 = vld [vmem:[%s8034_s1 + $0x5a0] sm:$0xff] }
  0x9a   :  { %v368_v17 = vld [vmem:[%s8034_s1 + $0x620] sm:$0xff] }
  0x9c   :  { %2870 = vmatmul.mubr.bf16.gmra.mrb[36].mxu0 %v4834_v63  ;;  %v186_v63 = vld [vmem:[%s8034_s1 + $0x70] sm:$0xff] }
  0x9d   :  { %2877 = vmatprep.mubr.bf16.mxu0 %v4843_v7  ;;  %v304_v7 = vld [vmem:[%s8034_s1 + $0x420] sm:$0xff]  ;;  %v4773_v9 = vcombine.high %v182_v62, %v186_v63 }
  0x9e   :  { %2581 = vmatmul.mubr.bf16.gmra.mrb[36].mxu1 %v4832_v25  ;;  %v4889_v11 = vcombine.high %v300_v6, %v304_v7  ;;  %v202_v25 = vld [vmem:[%s8034_s1 + $0xf0] sm:$0xff] }
  0x9f   :  { %2588 = vmatprep.mubr.bf16.mxu1 %v4841_v26  ;;  %v4780_v26 = vcombine.low %v190_v29, %v194_v15  ;;  %v250_v29 = vld [vmem:[%s8034_s1 + $0x270] sm:$0xff] }
  0xa4   :  { %2878 = vmatmul.mubr.bf16.gmra.mrb[40].mxu0 %v4842_v13  ;;  %v5906_v13 = vld [vmem:[%s8033_s0 + $0x188] sm:$0xff]  }
  0xa5   :  { %2885 = vmatprep.mubr.bf16.mxu0 %v4851_v1  ;;  %v4772_v1 = vcombine.low %v182_v62, %v186_v63  ;;  %v5912_v62 = vld [vmem:[%s8033_s0 + $0x1b8] sm:$0xff]   ;;  %v238_v63 = vld [vmem:[%s8034_s1 + $0x210] sm:$0xff] }
  0xa6   :  { %2589 = vmatmul.mubr.bf16.gmra.mrb[40].mxu1 %v4840_v35  ;;  %v5910_v35 = vld [vmem:[%s8033_s0 + $0x1a8] sm:$0xff]  }
  0xa7   :  { %2596 = vmatprep.mubr.bf16.mxu1 %v4849_v36  ;;  %v206_v36 = vld [vmem:[%s8034_s1 + $0x110] sm:$0xff] }
  0xa8   :  { %v4797_v40 = vcombine.high %v206_v36, %v210_v37  ;;  %v4796_v44 = vcombine.low %v206_v36, %v210_v37  ;;  %v384_v36 = vld [vmem:[%s8034_s1 + $0x6a0] sm:$0xff] }
  0xac   :  { %2886 = vmatmul.mubr.bf16.gmra.mrb[44].mxu0 %v4850_v21  ;;  %v4888_v21 = vcombine.low %v300_v6, %v304_v7  ;;  %v4820_v6 = vcombine.low %v230_v56, %v234_v18  ;;  %v356_v7 = vld [vmem:[%s8034_s1 + $0x5c0] sm:$0xff] }
  0xad   :  { %2893 = vmatprep.mubr.bf16.mxu0 %v4859_v24  ;;  %v198_v24 = vld [vmem:[%s8034_s1 + $0xd0] sm:$0xff] }
  0xae   :  { %2597 = vmatmul.mubr.bf16.gmra.mrb[44].mxu1 %v4848_v41  ;;  %v4788_v38 = vcombine.low %v198_v24, %v202_v25 }
  0xaf   :  { %2604 = vmatprep.mubr.bf16.mxu1 %v4857_v42  ;;  %v214_v42 = vld [vmem:[%s8034_s1 + $0x150] sm:$0xff] }
  0xb0   :  { %v4805_v46 = vcombine.high %v214_v42, %v218_v43 }
  0xb4   :  { %2894 = vmatmul.mubr.bf16.gmra.mrb[48].mxu0 %v4858_v30  ;;  %v4789_v30 = vcombine.high %v198_v24, %v202_v25  ;;  %v372_v25 = vld [vmem:[%s8034_s1 + $0x640] sm:$0xff] }
  0xb5   :  { %2901 = vmatprep.mubr.bf16.mxu0 %v4867_v34  ;;  %v4905_v34 = vcombine.high %v316_v28, %v320_v3 }
  0xb6   :  { %2605 = vmatmul.mubr.bf16.gmra.mrb[48].mxu1 %v4856_v48 }
  0xb7   :  { %2612 = vmatprep.mubr.bf16.mxu1 %v4865_v14  ;;  %v5911_v14 = vld [vmem:[%s8033_s0 + $0x1b0] sm:$0xff]  }
  0xbc   :  { %2902 = vmatmul.mubr.bf16.gmra.mrb[52].mxu0 %v4866_v5  ;;  %v324_v5 = vld [vmem:[%s8034_s1 + $0x4c0] sm:$0xff] }
  0xbd   :  { %2909 = vmatprep.mubr.bf16.mxu0 %v4875_v8  ;;  %v4904_v8 = vcombine.low %v316_v28, %v320_v3  ;;  %v4913_v41 = vcombine.high %v324_v5, %v328_v39 }
  0xbe   :  { %2613 = vmatmul.mubr.bf16.gmra.mrb[52].mxu1 %v4864_v54 }
  0xbf   :  { %2620 = vmatprep.mubr.bf16.mxu1 %v4873_v55  ;;  %v4929_v55 = vcombine.high %v340_v52, %v344_v53 }
  0xc4   :  { %2910 = vmatmul.mubr.bf16.gmra.mrb[56].mxu0 %v4874_v45  ;;  %v332_v45 = vld [vmem:[%s8034_s1 + $0x500] sm:$0xff] }
  0xc5   :  { %2917 = vmatprep.mubr.bf16.mxu0 %v4883_v47  ;;  %v4912_v47 = vcombine.low %v324_v5, %v328_v39  ;;  %v4921_v48 = vcombine.high %v332_v45, %v336_v12  ;;  %v4920_v54 = vcombine.low %v332_v45, %v336_v12  ;;  %v444_v39 = vld [vmem:[%s8035_s2 + $0x80] sm:$0xff] }
  0xc6   :  { %2621 = vmatmul.mubr.bf16.gmra.mrb[56].mxu1 %v4872_v61  ;;  %v4928_v61 = vcombine.low %v340_v52, %v344_v53  ;;  %574 = vperm.xlu0 %5855, %v444_v39   ;;  %v388_v45 = vld [vmem:[%s8034_s1 + $0x6c0] sm:$0xff]  ;;  %v430_v52 = vld [vmem:[%s8035_s2 + $0x10] sm:$0xff]  ;;  %v447_v53 = vld [vmem:[%s8035_s2 + $0x98] sm:$0xff] }
  0xc7   :  { %2628 = vmatprep.mubr.bf16.mxu1 %v4881_v20  ;;  %v4937_v20 = vcombine.high %v348_v58, %v352_v59  ;;  %v392_v12 = vld [vmem:[%s8034_s1 + $0x6e0] sm:$0xff] }
  0xcc   :  { %2918 = vmatmul.mubr.bf16.gmra.mrb[60].mxu0 %v4882_v51  ;;  %v4804_v51 = vcombine.low %v214_v42, %v218_v43  ;;  %v274_v42 = vld [vmem:[%s8034_s1 + $0x330] sm:$0xff]  ;;  %v445_v43 = vld [vmem:[%s8035_s2 + $0x88] sm:$0xff] }
  0xcd   :  { %2925 = vmatprep.mubr.bf16.mxu0 %v4891_v16  ;;  %v4813_v16 = vcombine.high %v222_v49, %v226_v50  ;;  %579 = vperm.xlu0 %5855, %v445_v43   ;;  %v314_v43 = vld [vmem:[%s8034_s1 + $0x470] sm:$0xff] }
  0xce   :  { %2629 = vmatmul.mubr.bf16.gmra.mrb[60].mxu1 %v4880_v27  ;;  %v4936_v27 = vcombine.low %v348_v58, %v352_v59  ;;  %v448_v58 = vld [vmem:[%s8035_s2 + $0xa0] sm:$0xff]  ;;  %v431_v59 = vld [vmem:[%s8035_s2 + $0x18] sm:$0xff] }
  0xcf   :  { %2636 = vmatprep.mubr.bf16.mxu1 %v4889_v11 }
  0xd4   :  { %2926 = vmatmul.mubr.bf16.gmra.mrb[64].mxu0 %v4890_v57  ;;  %v4812_v57 = vcombine.low %v222_v49, %v226_v50  ;;  %v429_v49 = vld [vmem:[%s8035_s2 + $0x8] sm:$0xff]  ;;  %v278_v50 = vld [vmem:[%s8034_s1 + $0x350] sm:$0xff] }
  0xd5   :  { %3086 = vmatprep.mubr.bf16.mxu0 %v4765_v60  ;;  %v4821_v60 = vcombine.high %v230_v56, %v234_v18  ;;  %v4976_v18 = vcombine.low %v388_v45, %v392_v12 }
  0xd6   :  { %2637 = vmatmul.mubr.bf16.gmra.mrb[64].mxu1 %v4888_v21  ;;  %v5913_v21 = vld [vmem:[%s8033_s0 + $0x1c0] sm:$0xff]  }
  0xd7   :  { %2644 = vmatprep.mubr.bf16.mxu1 %v4897_v23  ;;  %v254_v23 = vld [vmem:[%s8034_s1 + $0x290] sm:$0xff] }
  0xdc   :  { %3087 = vmatmul.mubr.bf16.vlgmr.msra.gmra.mrb[0].mxu0 %v4764_v22  ;;  %v242_v22 = vld [vmem:[%s8034_s1 + $0x230] sm:$0xff] }
  0xdd   :  { %3094 = vmatprep.mubr.bf16.mxu0 %v4773_v9  ;;  %3344 = vmatpush1.bf16.msra.mxu0 %v5905_v10  ;;  %v360_v9 = vld [vmem:[%s8034_s1 + $0x5e0] sm:$0xff]  ;;  %v4829_v10 = vcombine.high %v238_v63, %v242_v22  ;;  %v4828_v15 = vcombine.low %v238_v63, %v242_v22  ;;  %v449_v63 = vld [vmem:[%s8035_s2 + $0xa8] sm:$0xff] }
  0xde   :  { %3345 = vmatprep.subr.bf16.mxu0 %v6046_v0  ;;  %2645 = vmatmul.mubr.bf16.gmra.mrb[68].mxu1 %v4896_v32  ;;  %v4945_v11 = vcombine.high %v356_v7, %v360_v9  ;;  %v266_v32 = vld [vmem:[%s8034_s1 + $0x2f0] sm:$0xff] }
  0xdf   :  { %2652 = vmatprep.mubr.bf16.mxu1 %v4905_v34 }
  0xe1   :  { %3346 = vmatpush1.bf16.msra.mxu0 %v5906_v13  ;;  %v246_v13 = vld [vmem:[%s8034_s1 + $0x250] sm:$0xff] }
  0xe2   :  { %3347 = vmatprep.subr.bf16.mxu0 %v6046_v0  ;;  %v4837_v2 = vcombine.high %v246_v13, %v250_v29  ;;  %v4836_v24 = vcombine.low %v246_v13, %v250_v29  ;;  %v433_v13 = vld [vmem:[%s8035_s2 + $0x28] sm:$0xff]  ;;  %v5916_v29 = vld [vmem:[%s8033_s0 + $0x1d8] sm:$0xff]  }
  0xe4   :  { %3095 = vmatmul.mubr.bf16.gmra.mrb[4].mxu0 %v4772_v1  ;;  %v364_v1 = vld [vmem:[%s8034_s1 + $0x600] sm:$0xff] }
  0xe5   :  { %3102 = vmatprep.mubr.bf16.mxu0 %v4781_v31  ;;  %3348 = vmatpush1.bf16.msra.mxu0 %v5907_v19  ;;  %v4944_v31 = vcombine.low %v356_v7, %v360_v9  ;;  %v4953_v19 = vcombine.high %v364_v1, %v368_v17  ;;  %v4952_v3 = vcombine.low %v364_v1, %v368_v17  ;;  %v408_v7 = vld [vmem:[%s8034_s1 + $0x760] sm:$0xff]  ;;  %v298_v1 = vld [vmem:[%s8034_s1 + $0x3f0] sm:$0xff] }
  0xe6   :  { %3349 = vmatprep.subr.bf16.mxu0 %v6046_v0  ;;  %2653 = vmatmul.mubr.bf16.gmra.mrb[72].mxu1 %v4904_v8  ;;  %v5914_v8 = vld [vmem:[%s8033_s0 + $0x1c8] sm:$0xff]   ;;  %v434_v17 = vld [vmem:[%s8035_s2 + $0x30] sm:$0xff] }
  0xe7   :  { %2660 = vmatprep.mubr.bf16.mxu1 %v4913_v41  ;;  %v270_v41 = vld [vmem:[%s8034_s1 + $0x310] sm:$0xff] }
  0xe9   :  { %3350 = vmatpush1.bf16.msra.mxu0 %v5908_v33  ;;  %v258_v33 = vld [vmem:[%s8034_s1 + $0x2b0] sm:$0xff] }
  0xea   :  { %3351 = vmatprep.subr.bf16.mxu0 %v6046_v0  ;;  %v4845_v28 = vcombine.high %v254_v23, %v258_v33  ;;  %v4844_v34 = vcombine.low %v254_v23, %v258_v33 }
  0xec   :  { %3103 = vmatmul.mubr.bf16.gmra.mrb[8].mxu0 %v4780_v26  ;;  %v376_v26 = vld [vmem:[%s8034_s1 + $0x660] sm:$0xff] }
  0xed   :  { %3110 = vmatprep.mubr.bf16.mxu0 %v4789_v30  ;;  %3352 = vmatpush1.bf16.msra.mxu0 %v5909_v4  ;;  %v4961_v30 = vcombine.high %v372_v25, %v376_v26  ;;  %v262_v4 = vld [vmem:[%s8034_s1 + $0x2d0] sm:$0xff] }
  0xee   :  { %3353 = vmatprep.subr.bf16.mxu0 %v6046_v0  ;;  %2661 = vmatmul.mubr.bf16.gmra.mrb[76].mxu1 %v4912_v47  ;;  %v4853_v37 = vcombine.high %v262_v4, %v266_v32 }
  0xef   :  { %2668 = vmatprep.mubr.bf16.mxu1 %v4921_v48  ;;  %v4977_v48 = vcombine.high %v388_v45, %v392_v12  ;;  %v455_v45 = vld [vmem:[%s8035_s2 + $0xd8] sm:$0xff] }
  0xf0   :  { %v5920_v12 = vld [vmem:[%s8033_s0 + $0x1f8] sm:$0xff]  }
  0xf1   :  { %3354 = vmatpush1.bf16.msra.mxu0 %v5910_v35  ;;  %v380_v35 = vld [vmem:[%s8034_s1 + $0x680] sm:$0xff] }
  0xf2   :  { %3355 = vmatprep.subr.bf16.mxu0 %v6046_v0  ;;  %v4969_v5 = vcombine.high %v380_v35, %v384_v36  ;;  %v4968_v47 = vcombine.low %v380_v35, %v384_v36  ;;  %v420_v36 = vld [vmem:[%s8034_s1 + $0x7c0] sm:$0xff] }
  0xf4   :  { %3111 = vmatmul.mubr.bf16.gmra.mrb[12].mxu0 %v4788_v38  ;;  %v4960_v38 = vcombine.low %v372_v25, %v376_v26  ;;  %v5917_v25 = vld [vmem:[%s8033_s0 + $0x1e0] sm:$0xff]  }
  0xf5   :  { %3118 = vmatprep.mubr.bf16.mxu0 %v4797_v40  ;;  %3356 = vmatpush1.bf16.msra.mxu0 %v5911_v14  ;;  %v428_v40 = vld [vmem:[%s8035_s2] sm:$0xff]  ;;  %v446_v14 = vld [vmem:[%s8035_s2 + $0x90] sm:$0xff] }
  0xf6   :  { %3357 = vmatprep.subr.bf16.mxu0 %v6046_v0  ;;  %2669 = vmatmul.mubr.bf16.gmra.mrb[80].mxu1 %v4920_v54  ;;  %v396_v54 = vld [vmem:[%s8034_s1 + $0x700] sm:$0xff] }
  0xf7   :  { %2676 = vmatprep.mubr.bf16.mxu1 %v4929_v55  ;;  %494 = vperm.xlu1 %5856, %v428_v40   ;;  %v400_v55 = vld [vmem:[%s8034_s1 + $0x720] sm:$0xff]  ;;  %v5919_v40 = vld [vmem:[%s8033_s0 + $0x1f0] sm:$0xff]  }
  0xf8   :  { %584 = vperm.xlu0 %5855, %v446_v14   ;;  %v452_v26 = vld [vmem:[%s8035_s2 + $0xc0] sm:$0xff] }
  0xf9   :  { %3358 = vmatpush1.bf16.msra.mxu0 %v5912_v62  ;;  %v432_v62 = vld [vmem:[%s8035_s2 + $0x20] sm:$0xff] }
  0xfa   :  { %3359 = vmatprep.subr.bf16.mxu0 %v6046_v0 }
  0xfb   :  { %499 = vperm.xlu1 %5856, %v429_v49  }
  0xfc   :  { %3119 = vmatmul.mubr.bf16.gmra.mrb[16].mxu0 %v4796_v44  ;;  %v4852_v44 = vcombine.low %v262_v4, %v266_v32  ;;  %504 = vperm.xlu0 %5855, %v430_v52   ;;  %v436_v4 = vld [vmem:[%s8035_s2 + $0x40] sm:$0xff]  ;;  %v453_v32 = vld [vmem:[%s8035_s2 + $0xc8] sm:$0xff]  ;;  %v439_v52 = vld [vmem:[%s8035_s2 + $0x58] sm:$0xff] }
  0xfd   :  { %3126 = vmatprep.mubr.bf16.mxu0 %v4805_v46  ;;  %3360 = vmatpush1.bf16.msra.mxu0 %v5913_v21  ;;  %v4861_v46 = vcombine.high %v270_v41, %v274_v42  ;;  %v416_v21 = vld [vmem:[%s8034_s1 + $0x7a0] sm:$0xff] }
  0xfe   :  { %2677 = vmatmul.mubr.bf16.gmra.mrb[84].mxu1 %v4928_v61  ;;  %3361 = vmatprep.subr.bf16.mxu0 %v6046_v0  ;;  %v286_v61 = vld [vmem:[%s8034_s1 + $0x390] sm:$0xff] }
  0xff   :  { %2684 = vmatprep.mubr.bf16.mxu1 %v4937_v20  ;;  %589 = vperm.xlu1 %5856, %v447_v53   ;;  %v290_v20 = vld [vmem:[%s8034_s1 + $0x3b0] sm:$0xff] }
 0x100   :  { %594 = vperm.xlu0 %5855, %v448_v58   ;;  %v4877_v9 = vcombine.high %v286_v61, %v290_v20  ;;  %v322_v53 = vld [vmem:[%s8034_s1 + $0x4b0] sm:$0xff] }
 0x101   :  { %3362 = vmatpush1.bf16.msra.mxu0 %v5914_v8  ;;  %v454_v8 = vld [vmem:[%s8035_s2 + $0xd0] sm:$0xff] }
 0x102   :  { %3363 = vmatprep.subr.bf16.mxu0 %v6046_v0 }
 0x103   :  { %509 = vperm.xlu1 %5856, %v431_v59  }
 0x104   :  { %3127 = vmatmul.mubr.bf16.gmra.mrb[20].mxu0 %v4804_v51  ;;  %v282_v51 = vld [vmem:[%s8034_s1 + $0x370] sm:$0xff]  ;;  %514 = vperm.xlu0 %5855, %v432_v62  }
 0x105   :  { %3134 = vmatprep.mubr.bf16.mxu0 %v4813_v16  ;;  %v4860_v16 = vcombine.low %v270_v41, %v274_v42  ;;  %v4869_v56 = vcombine.high %v278_v50, %v282_v51  ;;  %v4868_v22 = vcombine.low %v278_v50, %v282_v51  ;;  %v437_v41 = vld [vmem:[%s8035_s2 + $0x48] sm:$0xff]  ;;  %v310_v42 = vld [vmem:[%s8034_s1 + $0x450] sm:$0xff]  ;;  %v456_v51 = vld [vmem:[%s8035_s2 + $0xe0] sm:$0xff] }
 0x106   :  { %2685 = vmatmul.mubr.bf16.gmra.mrb[88].mxu1 %v4936_v27  ;;  %v4901_v14 = vcombine.high %v310_v42, %v314_v43  ;;  %v330_v62 = vld [vmem:[%s8034_s1 + $0x4f0] sm:$0xff] }
 0x107   :  { %2692 = vmatprep.mubr.bf16.mxu1 %v4945_v11  ;;  %599 = vperm.xlu1 %5856, %v449_v63   ;;  %v450_v11 = vld [vmem:[%s8035_s2 + $0xb0] sm:$0xff] }
 0x108   :  { %604 = vperm.xlu0 %5855, %v450_v11   ;;  %v442_v63 = vld [vmem:[%s8035_s2 + $0x70] sm:$0xff] }
 0x10b   :  { %519 = vperm.xlu1 %5856, %v433_v13   ;;  %v476_v13 = vld [vmem:[%s8035_s2 + $0x180] sm:$0xff] }
 0x10c   :  { %3135 = vmatmul.mubr.bf16.gmra.mrb[24].mxu0 %v4812_v57  ;;  %v4985_v57 = vcombine.high %v396_v54, %v400_v55  ;;  %524 = vperm.xlu0 %5855, %v434_v17   ;;  %v460_v17 = vld [vmem:[%s8035_s2 + $0x100] sm:$0xff] }
 0x10d   :  { %3142 = vmatprep.mubr.bf16.mxu0 %v4821_v60  ;;  %v5915_v60 = vld [vmem:[%s8033_s0 + $0x1d0] sm:$0xff]  }
 0x10e   :  { %2693 = vmatmul.mubr.bf16.gmra.mrb[92].mxu1 %v4944_v31  ;;  %3364 = vmatpush1.bf16.msra.mxu0 %v5915_v60  ;;  %v4876_v31 = vcombine.low %v286_v61, %v290_v20  ;;  %v458_v60 = vld [vmem:[%s8035_s2 + $0xf0] sm:$0xff]  ;;  %v441_v61 = vld [vmem:[%s8035_s2 + $0x68] sm:$0xff] }
 0x10f   :  { %2700 = vmatprep.mubr.bf16.mxu1 %v4953_v19  ;;  %3365 = vmatprep.subr.bf16.mxu0 %v6046_v0  ;;  %v412_v19 = vld [vmem:[%s8034_s1 + $0x780] sm:$0xff]  ;;  %v326_v20 = vld [vmem:[%s8034_s1 + $0x4d0] sm:$0xff] }
 0x110   :  { %614 = vperm.xlu0 %5855, %v452_v26   ;;  %v461_v26 = vld [vmem:[%s8035_s2 + $0x108] sm:$0xff] }
 0x112   :  { %3366 = vmatpush1.bf16.msra.mxu0 %v5916_v29  ;;  %v443_v29 = vld [vmem:[%s8035_s2 + $0x78] sm:$0xff] }
 0x113   :  { %3367 = vmatprep.subr.bf16.mxu0 %v6046_v0 }
 0x114   :  { %3143 = vmatmul.mubr.bf16.gmra.mrb[28].mxu0 %v4820_v6  ;;  %v404_v6 = vld [vmem:[%s8034_s1 + $0x740] sm:$0xff]  ;;  %534 = vperm.xlu0 %5855, %v436_v4   ;;  %v479_v4 = vld [vmem:[%s8035_s2 + $0x198] sm:$0xff] }
 0x115   :  { %3150 = vmatprep.mubr.bf16.mxu0 %v4829_v10  ;;  %v4984_v10 = vcombine.low %v396_v54, %v400_v55  ;;  %v4993_v27 = vcombine.high %v404_v6, %v408_v7  ;;  %v4992_v33 = vcombine.low %v404_v6, %v408_v7  ;;  %v457_v54 = vld [vmem:[%s8035_s2 + $0xe8] sm:$0xff]  ;;  %v4900_v55 = vcombine.low %v310_v42, %v314_v43 }
 0x116   :  { %2701 = vmatmul.mubr.bf16.gmra.mrb[96].mxu1 %v4952_v3  ;;  %v302_v3 = vld [vmem:[%s8034_s1 + $0x410] sm:$0xff]  ;;  %3368 = vmatpush1.bf16.msra.mxu0 %v5917_v25  ;;  %v325_v7 = vld [vmem:[%s8034_s1 + $0x4c8] sm:$0xff] }
 0x117   :  { %2708 = vmatprep.mubr.bf16.mxu1 %v4961_v30  ;;  %v306_v30 = vld [vmem:[%s8034_s1 + $0x430] sm:$0xff]  ;;  %3369 = vmatprep.subr.bf16.mxu0 %v6046_v0  ;;  %v481_v42 = vld [vmem:[%s8035_s2 + $0x1a8] sm:$0xff] }
 0x118   :  { %624 = vperm.xlu0 %5855, %v454_v8   ;;  %v478_v25 = vld [vmem:[%s8035_s2 + $0x190] sm:$0xff] }
 0x119   :  { %v354_v8 = vld [vmem:[%s8034_s1 + $0x5b0] sm:$0xff] }
 0x11c   :  { %3151 = vmatmul.mubr.bf16.gmra.mrb[32].mxu0 %v4828_v15  ;;  %v294_v15 = vld [vmem:[%s8034_s1 + $0x3d0] sm:$0xff] }
 0x11d   :  { %3158 = vmatprep.mubr.bf16.mxu0 %v4837_v2  ;;  %v451_v2 = vld [vmem:[%s8035_s2 + $0xb8] sm:$0xff]  ;;  %v4885_v23 = vcombine.high %v294_v15, %v298_v1  ;;  %v4884_v35 = vcombine.low %v294_v15, %v298_v1  ;;  %v334_v15 = vld [vmem:[%s8034_s1 + $0x510] sm:$0xff] }
 0x11e   :  { %2709 = vmatmul.mubr.bf16.gmra.mrb[100].mxu1 %v4960_v38  ;;  %609 = vperm.xlu1 %5856, %v451_v2   ;;  %v4893_v38 = vcombine.high %v302_v3, %v306_v30  ;;  %v338_v1 = vld [vmem:[%s8034_s1 + $0x530] sm:$0xff]  ;;  %v477_v2 = vld [vmem:[%s8035_s2 + $0x188] sm:$0xff] }
 0x11f   :  { %2716 = vmatprep.mubr.bf16.mxu1 %v4969_v5  ;;  %v5000_v5 = vcombine.low %v412_v19, %v416_v21 }
 0x124   :  { %3159 = vmatmul.mubr.bf16.gmra.mrb[36].mxu0 %v4836_v24  ;;  %v5001_v24 = vcombine.high %v412_v19, %v416_v21  ;;  %v333_v19 = vld [vmem:[%s8034_s1 + $0x508] sm:$0xff] }
 0x125   :  { %3166 = vmatprep.mubr.bf16.mxu0 %v4845_v28  ;;  %v435_v28 = vld [vmem:[%s8035_s2 + $0x38] sm:$0xff]  ;;  %v337_v21 = vld [vmem:[%s8034_s1 + $0x528] sm:$0xff] }
 0x126   :  { %2717 = vmatmul.mubr.bf16.gmra.mrb[104].mxu1 %v4968_v47  ;;  %529 = vperm.xlu1 %5856, %v435_v28   ;;  %v309_v47 = vld [vmem:[%s8034_s1 + $0x448] sm:$0xff]  ;;  %v342_v28 = vld [vmem:[%s8034_s1 + $0x550] sm:$0xff] }
 0x127   :  { %2724 = vmatprep.mubr.bf16.mxu1 %v4977_v48  ;;  %v313_v48 = vld [vmem:[%s8034_s1 + $0x468] sm:$0xff] }
 0x128   :  { %v4899_v50 = vcombine.high %v309_v47, %v313_v48  ;;  %v4898_v58 = vcombine.low %v309_v47, %v313_v48  ;;  %v482_v48 = vld [vmem:[%s8035_s2 + $0x1b0] sm:$0xff] }
 0x12a   :  { %619 = vperm.xlu1 %5856, %v453_v32   ;;  %v4924_v32 = vcombine.low %v334_v15, %v338_v1 }
 0x12c   :  { %3167 = vmatmul.mubr.bf16.gmra.mrb[40].mxu0 %v4844_v34  ;;  %v5918_v34 = vld [vmem:[%s8033_s0 + $0x1e8] sm:$0xff]  }
 0x12d   :  { %3174 = vmatprep.mubr.bf16.mxu0 %v4853_v37  ;;  %v424_v37 = vld [vmem:[%s8034_s1 + $0x7e0] sm:$0xff]  ;;  %3370 = vmatpush1.bf16.msra.mxu0 %v5918_v34  ;;  %v341_v34 = vld [vmem:[%s8034_s1 + $0x548] sm:$0xff] }
 0x12e   :  { %2725 = vmatmul.mubr.bf16.gmra.mrb[108].mxu1 %v4976_v18  ;;  %v5009_v39 = vcombine.high %v420_v36, %v424_v37  ;;  %3371 = vmatprep.subr.bf16.mxu0 %v6046_v0  ;;  %v5008_v49 = vcombine.low %v420_v36, %v424_v37  ;;  %v321_v18 = vld [vmem:[%s8034_s1 + $0x4a8] sm:$0xff]  ;;  %v4922_v37 = vcombine.low %v333_v19, %v337_v21 }
 0x12f   :  { %2732 = vmatprep.mubr.bf16.mxu1 %v4985_v57  ;;  %539 = vperm.xlu1 %5856, %v437_v41   ;;  %v464_v41 = vld [vmem:[%s8035_s2 + $0x120] sm:$0xff] }
 0x131   :  { %3372 = vmatpush1.bf16.msra.mxu0 %v5919_v40  ;;  %v350_v40 = vld [vmem:[%s8034_s1 + $0x590] sm:$0xff] }
 0x132   :  { %3373 = vmatprep.subr.bf16.mxu0 %v6046_v0  ;;  %v318_v0 = vld [vmem:[%s8034_s1 + $0x490] sm:$0xff] }
 0x133   :  { %629 = vperm.xlu1 %5856, %v455_v45   ;;  %v4909_v57 = vcombine.high %v318_v0, %v322_v53  ;;  %v4908_v6 = vcombine.low %v318_v0, %v322_v53  ;;  %v353_v45 = vld [vmem:[%s8034_s1 + $0x5a8] sm:$0xff]  ;;  %v4940_v0 = vcombine.low %v350_v40, %v354_v8 }
 0x134   :  { %3175 = vmatmul.mubr.bf16.gmra.mrb[44].mxu0 %v4852_v44  ;;  %v438_v44 = vld [vmem:[%s8035_s2 + $0x50] sm:$0xff]  ;;  %v357_v53 = vld [vmem:[%s8034_s1 + $0x5c8] sm:$0xff] }
 0x135   :  { %3182 = vmatprep.mubr.bf16.mxu0 %v4861_v46  ;;  %v4892_v46 = vcombine.low %v302_v3, %v306_v30  ;;  %544 = vperm.xlu0 %5855, %v438_v44   ;;  %v346_v3 = vld [vmem:[%s8034_s1 + $0x570] sm:$0xff]  ;;  %v349_v44 = vld [vmem:[%s8034_s1 + $0x588] sm:$0xff] }
 0x136   :  { %2733 = vmatmul.mubr.bf16.gmra.mrb[112].mxu1 %v4984_v10  ;;  %3374 = vmatpush1.bf16.msra.mxu0 %v5920_v12  ;;  %v4917_v10 = vcombine.high %v326_v20, %v330_v62  ;;  %v462_v30 = vld [vmem:[%s8035_s2 + $0x110] sm:$0xff]  ;;  %v4933_v36 = vcombine.high %v342_v28, %v346_v3  ;;  %v4932_v43 = vcombine.low %v342_v28, %v346_v3  ;;  %v381_v3 = vld [vmem:[%s8034_s1 + $0x688] sm:$0xff] }
 0x137   :  { %2740 = vmatprep.mubr.bf16.mxu1 %v4993_v27  ;;  %549 = vperm.xlu1 %5856, %v439_v52   ;;  %v4941_v12 = vcombine.high %v350_v40, %v354_v8  ;;  %v4939_v47 = vcombine.high %v349_v44, %v353_v45  ;;  %v483_v52 = vld [vmem:[%s8035_s2 + $0x1b8] sm:$0xff]  ;;  %v389_v8 = vld [vmem:[%s8034_s1 + $0x6c8] sm:$0xff] }
 0x139   :  { %634 = vperm.xlu0 %5855, %v456_v51   ;;  %v466_v51 = vld [vmem:[%s8035_s2 + $0x130] sm:$0xff] }
 0x13b   :  { %639 = vperm.xlu1 %5856, %v457_v54  }
 0x13c   :  { %3183 = vmatmul.mubr.bf16.gmra.mrb[48].mxu0 %v4860_v16  ;;  %v440_v16 = vld [vmem:[%s8035_s2 + $0x60] sm:$0xff] }
 0x13d   :  { %3190 = vmatprep.mubr.bf16.mxu0 %v4869_v56  ;;  %v317_v56 = vld [vmem:[%s8034_s1 + $0x488] sm:$0xff]  ;;  %554 = vperm.xlu0 %5855, %v440_v16  }
 0x13e   :  { %2741 = vmatmul.mubr.bf16.gmra.mrb[116].mxu1 %v4992_v33  ;;  %v4907_v59 = vcombine.high %v317_v56, %v321_v18  ;;  %v4906_v27 = vcombine.low %v317_v56, %v321_v18  ;;  %v361_v16 = vld [vmem:[%s8034_s1 + $0x5e8] sm:$0xff]  ;;  %v484_v18 = vld [vmem:[%s8035_s2 + $0x1c0] sm:$0xff] }
 0x13f   :  { %2748 = vmatprep.mubr.bf16.mxu1 %v5001_v24  ;;  %559 = vperm.xlu1 %5856, %v441_v61   ;;  %v4923_v24 = vcombine.high %v333_v19, %v337_v21  ;;  %v4947_v56 = vcombine.high %v357_v53, %v361_v16  ;;  %v485_v61 = vld [vmem:[%s8035_s2 + $0x1c8] sm:$0xff]  ;;  %v488_v21 = vld [vmem:[%s8035_s2 + $0x1e0] sm:$0xff] }
 0x141   :  { %644 = vperm.xlu0 %5855, %v458_v60   ;;  %v468_v60 = vld [vmem:[%s8035_s2 + $0x140] sm:$0xff] }
 0x144   :  { %3191 = vmatmul.mubr.bf16.gmra.mrb[52].mxu0 %v4868_v22  ;;  %v459_v22 = vld [vmem:[%s8035_s2 + $0xf8] sm:$0xff] }
 0x145   :  { %3198 = vmatprep.mubr.bf16.mxu0 %v4877_v9  ;;  %v329_v9 = vld [vmem:[%s8034_s1 + $0x4e8] sm:$0xff]  ;;  %564 = vperm.xlu0 %5855, %v442_v63  }
 0x146   :  { %2749 = vmatmul.mubr.bf16.gmra.mrb[120].mxu1 %v5000_v5  ;;  %649 = vperm.xlu1 %5856, %v459_v22   ;;  %v4915_v11 = vcombine.high %v325_v7, %v329_v9  ;;  %v4914_v33 = vcombine.low %v325_v7, %v329_v9  ;;  %v480_v5 = vld [vmem:[%s8035_s2 + $0x1a0] sm:$0xff]  ;;  %v369_v63 = vld [vmem:[%s8034_s1 + $0x628] sm:$0xff]  ;;  %v486_v9 = vld [vmem:[%s8035_s2 + $0x1d0] sm:$0xff] }
 0x147   :  { %2756 = vmatprep.mubr.bf16.mxu1 %v5009_v39  ;;  %v463_v39 = vld [vmem:[%s8035_s2 + $0x118] sm:$0xff] }
 0x149   :  { %734 = vperm.xlu0 %5855, %v476_v13   ;;  %v470_v13 = vld [vmem:[%s8035_s2 + $0x150] sm:$0xff] }
 0x14a   :  { %569 = vperm.xlu1 %5856, %v443_v29   ;;  %v487_v29 = vld [vmem:[%s8035_s2 + $0x1d8] sm:$0xff] }
 0x14c   :  { %3199 = vmatmul.mubr.bf16.gmra.mrb[56].mxu0 %v4876_v31  ;;  %v4916_v31 = vcombine.low %v326_v20, %v330_v62  ;;  %v365_v62 = vld [vmem:[%s8034_s1 + $0x608] sm:$0xff] }
 0x14d   :  { %3206 = vmatprep.mubr.bf16.mxu0 %v4885_v23  ;;  %v4925_v23 = vcombine.high %v334_v15, %v338_v1  ;;  %654 = vperm.xlu0 %5855, %v460_v17   ;;  %v4955_v7 = vcombine.high %v365_v62, %v369_v63  ;;  %v373_v1 = vld [vmem:[%s8034_s1 + $0x648] sm:$0xff] }
 0x14e   :  { %2757 = vmatmul.mubr.bf16.gmra.mrb[124].mxu1 %v5008_v49  ;;  %739 = vperm.xlu1 %5856, %v477_v2   ;;  %v358_v49 = vld [vmem:[%s8034_s1 + $0x5d0] sm:$0xff]  ;;  %v377_v17 = vld [vmem:[%s8034_s1 + $0x668] sm:$0xff] }
 0x14f   :  { %2933 = vmatprep.mubr.bf16.mxu1 %v4899_v50  ;;  %v362_v50 = vld [vmem:[%s8034_s1 + $0x5f0] sm:$0xff]  ;;  %v4963_v19 = vcombine.high %v373_v1, %v377_v17 }
 0x150   :  { %v4949_v54 = vcombine.high %v358_v49, %v362_v50  ;;  %v4948_v20 = vcombine.low %v358_v49, %v362_v50  ;;  %v3792_v49 = vld [vmem:[%s8037_s4] sm:$0xff] }
 0x151   :  { %744 = vperm.xlu0 %5855, %v478_v25   ;;  %v472_v25 = vld [vmem:[%s8035_s2 + $0x160] sm:$0xff] }
 0x152   :  { %659 = vperm.xlu1 %5856, %v461_v26   ;;  %v489_v26 = vld [vmem:[%s8035_s2 + $0x1e8] sm:$0xff] }
 0x154   :  { %3207 = vmatmul.mubr.bf16.gmra.mrb[60].mxu0 %v4884_v35  ;;  %v345_v35 = vld [vmem:[%s8034_s1 + $0x568] sm:$0xff] }
 0x155   :  { %3214 = vmatprep.mubr.bf16.mxu0 %v4893_v38  ;;  %664 = vperm.xlu0 %5855, %v462_v30   ;;  %v4931_v38 = vcombine.high %v341_v34, %v345_v35  ;;  %v385_v30 = vld [vmem:[%s8034_s1 + $0x6a8] sm:$0xff] }
 0x156   :  { %2934 = vmatmul.mubr.bf16.vlgmr.msra.gmra.mrb[68].mxu1 %v4898_v58  ;;  %749 = vperm.xlu1 %5856, %v479_v4   ;;  %v366_v58 = vld [vmem:[%s8034_s1 + $0x610] sm:$0xff] }
 0x157   :  { %2941 = vmatprep.mubr.bf16.mxu1 %v4907_v59  ;;  %v370_v59 = vld [vmem:[%s8034_s1 + $0x630] sm:$0xff] }
 0x158   :  { %v4957_v22 = vcombine.high %v366_v58, %v370_v59  ;;  %v4956_v15 = vcombine.low %v366_v58, %v370_v59 }
 0x159   :  { %754 = vperm.xlu0 %5855, %v480_v5   ;;  %v474_v5 = vld [vmem:[%s8035_s2 + $0x170] sm:$0xff] }
 0x15a   :  { %669 = vperm.xlu1 %5856, %v463_v39   ;;  %v491_v39 = vld [vmem:[%s8035_s2 + $0x1f8] sm:$0xff] }
 0x15c   :  { %3215 = vmatmul.mubr.bf16.gmra.mrb[64].mxu0 %v4892_v46  ;;  %v4930_v46 = vcombine.low %v341_v34, %v345_v35  ;;  %v4971_v34 = vcombine.high %v381_v3, %v385_v30  ;;  %v490_v35 = vld [vmem:[%s8035_s2 + $0x1f0] sm:$0xff] }
 0x15d   :  { %3222 = vmatprep.mubr.bf16.mxu0 %v4901_v14  ;;  %674 = vperm.xlu0 %5855, %v464_v41   ;;  %v465_v14 = vld [vmem:[%s8035_s2 + $0x128] sm:$0xff] }
 0x15e   :  { %2942 = vmatmul.mubr.bf16.gmra.mrb[72].mxu1 %v4906_v27  ;;  %759 = vperm.xlu1 %5856, %v481_v42   ;;  %v374_v27 = vld [vmem:[%s8034_s1 + $0x650] sm:$0xff]  ;;  %v393_v41 = vld [vmem:[%s8034_s1 + $0x6e8] sm:$0xff] }
 0x15f   :  { %2949 = vmatprep.mubr.bf16.mxu1 %v4915_v11  ;;  %v378_v11 = vld [vmem:[%s8034_s1 + $0x670] sm:$0xff] }
 0x160   :  { %v4965_v2 = vcombine.high %v374_v27, %v378_v11  ;;  %v4964_v28 = vcombine.low %v374_v27, %v378_v11 }
 0x161   :  { %764 = vperm.xlu0 %5855, %v482_v48   ;;  %v398_v48 = vld [vmem:[%s8034_s1 + $0x710] sm:$0xff] }
 0x162   :  { %679 = vperm.xlu1 %5856, %v465_v14   ;;  %v402_v14 = vld [vmem:[%s8034_s1 + $0x730] sm:$0xff] }
 0x164   :  { %3223 = vmatmul.mubr.bf16.gmra.mrb[68].mxu0 %v4900_v55  ;;  %v4938_v55 = vcombine.low %v349_v44, %v353_v45  ;;  %v4979_v44 = vcombine.high %v389_v8, %v393_v41  ;;  %v3808_v45 = vld [vmem:[%s8037_s4 + $0x80] sm:$0xff] }
 0x165   :  { %3230 = vmatprep.mubr.bf16.mxu0 %v4909_v57  ;;  %684 = vperm.xlu0 %5855, %v466_v51   ;;  %v467_v57 = vld [vmem:[%s8035_s2 + $0x138] sm:$0xff]  ;;  %v3809_v51 = vld [vmem:[%s8037_s4 + $0x88] sm:$0xff] }
 0x166   :  { %2950 = vmatmul.mubr.bf16.gmra.mrb[76].mxu1 %v4914_v33  ;;  %769 = vperm.xlu1 %5856, %v483_v52   ;;  %v382_v33 = vld [vmem:[%s8034_s1 + $0x690] sm:$0xff] }
 0x167   :  { %2957 = vmatprep.mubr.bf16.mxu1 %v4923_v24  ;;  %v386_v24 = vld [vmem:[%s8034_s1 + $0x6b0] sm:$0xff] }
 0x168   :  { %v4973_v4 = vcombine.high %v382_v33, %v386_v24  ;;  %v4972_v40 = vcombine.low %v382_v33, %v386_v24  ;;  %v413_v24 = vld [vmem:[%s8034_s1 + $0x788] sm:$0xff] }
 0x169   :  { %774 = vperm.xlu0 %5855, %v484_v18   ;;  %v3810_v18 = vld [vmem:[%s8037_s4 + $0x90] sm:$0xff] }
 0x16a   :  { %689 = vperm.xlu1 %5856, %v467_v57   ;;  %v3793_v57 = vld [vmem:[%s8037_s4 + $0x8] sm:$0xff] }
 0x16c   :  { %3231 = vmatmul.mubr.bf16.gmra.mrb[72].mxu0 %v4908_v6  ;;  %v4946_v6 = vcombine.low %v357_v53, %v361_v16  ;;  %v397_v53 = vld [vmem:[%s8034_s1 + $0x708] sm:$0xff] }
 0x16d   :  { %3238 = vmatprep.mubr.bf16.mxu0 %v4917_v10  ;;  %694 = vperm.xlu0 %5855, %v468_v60   ;;  %v469_v10 = vld [vmem:[%s8035_s2 + $0x148] sm:$0xff]  ;;  %v406_v60 = vld [vmem:[%s8034_s1 + $0x750] sm:$0xff] }
 0x16e   :  { %2958 = vmatmul.mubr.bf16.gmra.mrb[80].mxu1 %v4922_v37  ;;  %779 = vperm.xlu1 %5856, %v485_v61   ;;  %v390_v37 = vld [vmem:[%s8034_s1 + $0x6d0] sm:$0xff]  ;;  %v401_v16 = vld [vmem:[%s8034_s1 + $0x728] sm:$0xff] }
 0x16f   :  { %2965 = vmatprep.mubr.bf16.mxu1 %v4931_v38  ;;  %v394_v38 = vld [vmem:[%s8034_s1 + $0x6f0] sm:$0xff]  ;;  %v4986_v27 = vcombine.low %v397_v53, %v401_v16 }
 0x170   :  { %v4981_v42 = vcombine.high %v390_v37, %v394_v38  ;;  %v410_v61 = vld [vmem:[%s8034_s1 + $0x770] sm:$0xff] }
 0x171   :  { %784 = vperm.xlu0 %5855, %v486_v9   ;;  %v409_v9 = vld [vmem:[%s8034_s1 + $0x768] sm:$0xff]  ;;  %v4996_v33 = vcombine.low %v406_v60, %v410_v61 }
 0x172   :  { %699 = vperm.xlu1 %5856, %v469_v10   ;;  %v4997_v10 = vcombine.high %v406_v60, %v410_v61  ;;  %v183_v60 = vld [vmem:[%s8034_s1 + $0x58] sm:$0xff] }
 0x173   :  { %v187_v61 = vld [vmem:[%s8034_s1 + $0x78] sm:$0xff] }
 0x174   :  { %3239 = vmatmul.mubr.bf16.gmra.mrb[76].mxu0 %v4916_v31  ;;  %v4954_v31 = vcombine.low %v365_v62, %v369_v63  ;;  %v3811_v63 = vld [vmem:[%s8037_s4 + $0x98] sm:$0xff] }
 0x175   :  { %3246 = vmatprep.mubr.bf16.mxu0 %v4925_v23  ;;  %704 = vperm.xlu0 %5855, %v470_v13   ;;  %v471_v23 = vld [vmem:[%s8035_s2 + $0x158] sm:$0xff]  ;;  %v3812_v13 = vld [vmem:[%s8037_s4 + $0xa0] sm:$0xff] }
 0x176   :  { %2966 = vmatmul.mubr.bf16.gmra.mrb[84].mxu1 %v4930_v46  ;;  %789 = vperm.xlu1 %5856, %v487_v29   ;;  %v7181_v46 = vpop.f32.mrb[0].mxu1  ;;  %v3795_v29 = vld [vmem:[%s8037_s4 + $0x18] sm:$0xff] }
 0x177   :  { %2973 = vmatprep.mubr.bf16.mxu1 %v4939_v47  ;;  %v2512_v47 = vpop.f32.mrb[1].mxu1 }
 0x178   :  { %v7192_v50 = vpop.f32.mrb[2].mxu1 }
 0x179   :  { %794 = vperm.xlu0 %5855, %v488_v21   ;;  %v2515_v52 = vpop.f32.mrb[3].mxu1  ;;  %v3813_v21 = vld [vmem:[%s8037_s4 + $0xa8] sm:$0xff] }
 0x17a   :  { %709 = vperm.xlu1 %5856, %v471_v23   ;;  %v7209_v58 = vpop.f32.mrb[4].mxu1 }
 0x17b   :  { %v2520_v59 = vpop.f32.mrb[5].mxu1 }
 0x17c   :  { %3247 = vmatmul.mubr.bf16.gmra.mrb[80].mxu0 %v4924_v32  ;;  %v4962_v32 = vcombine.low %v373_v1, %v377_v17  ;;  %v7220_v62 = vpop.f32.mrb[6].mxu1  ;;  %v414_v17 = vld [vmem:[%s8034_s1 + $0x790] sm:$0xff] }
 0x17d   :  { %3254 = vmatprep.mubr.bf16.mxu0 %v4933_v36  ;;  %714 = vperm.xlu0 %5855, %v472_v25   ;;  %v473_v36 = vld [vmem:[%s8035_s2 + $0x168] sm:$0xff] }
 0x17e   :  { %2974 = vmatmul.mubr.bf16.gmra.mrb[88].mxu1 %v4938_v55  ;;  %799 = vperm.xlu1 %5856, %v489_v26   ;;  %v4978_v55 = vcombine.low %v389_v8, %v393_v41  ;;  %v417_v25 = vld [vmem:[%s8034_s1 + $0x7a8] sm:$0xff] }
 0x17f   :  { %2981 = vmatprep.mubr.bf16.mxu1 %v4947_v56  ;;  %v4987_v56 = vcombine.high %v397_v53, %v401_v16  ;;  %v421_v8 = vld [vmem:[%s8034_s1 + $0x7c8] sm:$0xff] }
 0x180   :  { %v425_v41 = vld [vmem:[%s8034_s1 + $0x7e8] sm:$0xff] }
 0x181   :  { %804 = vperm.xlu0 %5855, %v490_v35   ;;  %v422_v35 = vld [vmem:[%s8034_s1 + $0x7d0] sm:$0xff] }
 0x182   :  { %719 = vperm.xlu1 %5856, %v473_v36   ;;  %v426_v36 = vld [vmem:[%s8034_s1 + $0x7f0] sm:$0xff] }
 0x183   :  { %v5012_v16 = vcombine.low %v422_v35, %v426_v36 }
 0x184   :  { %3255 = vmatmul.mubr.bf16.gmra.mrb[84].mxu0 %v4932_v43  ;;  %v4970_v43 = vcombine.low %v381_v3, %v385_v30  ;;  %v5003_v3 = vcombine.high %v413_v24, %v417_v25  ;;  %v3814_v30 = vld [vmem:[%s8037_s4 + $0xb0] sm:$0xff] }
 0x185   :  { %3262 = vmatprep.mubr.bf16.mxu0 %v4941_v12  ;;  %724 = vperm.xlu0 %5855, %v474_v5   ;;  %v475_v12 = vld [vmem:[%s8035_s2 + $0x178] sm:$0xff] }
 0x186   :  { %2982 = vmatmul.mubr.bf16.gmra.mrb[92].mxu1 %v4946_v6  ;;  %809 = vperm.xlu1 %5856, %v491_v39   ;;  %v4988_v6 = vcombine.low %v398_v48, %v402_v14  ;;  %v3815_v5 = vld [vmem:[%s8037_s4 + $0xb8] sm:$0xff] }
 0x187   :  { %2989 = vmatprep.mubr.bf16.mxu1 %v4955_v7  ;;  %v405_v7 = vld [vmem:[%s8034_s1 + $0x748] sm:$0xff] }
 0x188   :  { %v4995_v11 = vcombine.high %v405_v7, %v409_v9 }
 0x189   :  { %3906 = vperm.xlu0 %5855, %v3808_v45   ;;  %v3816_v45 = vld [vmem:[%s8037_s4 + $0xc0] sm:$0xff] }
 0x18a   :  { %729 = vperm.xlu1 %5856, %v475_v12   ;;  %v3799_v12 = vld [vmem:[%s8037_s4 + $0x38] sm:$0xff] }
 0x18c   :  { %3263 = vmatmul.mubr.bf16.gmra.mrb[88].mxu0 %v4940_v0  ;;  %v4980_v0 = vcombine.low %v390_v37, %v394_v38  ;;  %v3798_v37 = vld [vmem:[%s8037_s4 + $0x30] sm:$0xff] }
 0x18d   :  { %3270 = vmatprep.mubr.bf16.mxu0 %v4949_v54  ;;  %v4989_v54 = vcombine.high %v398_v48, %v402_v14  ;;  %3826 = vperm.xlu0 %5855, %v3792_v49   ;;  %v175_v14 = vld [vmem:[%s8034_s1 + $0x18] sm:$0xff] }
 0x18e   :  { %2990 = vmatmul.mubr.bf16.gmra.mrb[96].mxu1 %v4954_v31  ;;  %3911 = vperm.xlu1 %5856, %v3809_v51   ;;  %v3796_v31 = vld [vmem:[%s8037_s4 + $0x20] sm:$0xff]  ;;  %v179_v49 = vld [vmem:[%s8034_s1 + $0x38] sm:$0xff] }
 0x18f   :  { %2997 = vmatprep.mubr.bf16.mxu1 %v4963_v19  ;;  %v3800_v51 = vld [vmem:[%s8037_s4 + $0x40] sm:$0xff] }
 0x191   :  { %3916 = vperm.xlu0 %5855, %v3810_v18   ;;  %v3801_v18 = vld [vmem:[%s8037_s4 + $0x48] sm:$0xff] }
 0x192   :  { %3831 = vperm.xlu1 %5856, %v3793_v57  }
 0x194   :  { %3271 = vmatmul.mubr.bf16.gmra.mrb[92].mxu0 %v4948_v20  ;;  %v3794_v20 = vld [vmem:[%s8037_s4 + $0x10] sm:$0xff] }
 0x195   :  { %3278 = vmatprep.mubr.bf16.mxu0 %v4957_v22  ;;  %v2523_v22 = vpop.f32.mrb[7].mxu1  ;;  %3836 = vperm.xlu0 %5855, %v3794_v20   ;;  %v3802_v20 = vld [vmem:[%s8037_s4 + $0x50] sm:$0xff] }
 0x196   :  { %2998 = vmatmul.mubr.bf16.gmra.mrb[100].mxu1 %v4962_v32  ;;  %3921 = vperm.xlu1 %5856, %v3811_v63   ;;  %v3819_v22 = vld [vmem:[%s8037_s4 + $0xd8] sm:$0xff] }
 0x197   :  { %3005 = vmatprep.mubr.bf16.mxu1 %v4971_v34 }
 0x199   :  { %3926 = vperm.xlu0 %5855, %v3812_v13  }
 0x19a   :  { %3841 = vperm.xlu1 %5856, %v3795_v29   ;;  %v191_v29 = vld [vmem:[%s8034_s1 + $0x98] sm:$0xff] }
 0x19c   :  { %3279 = vmatmul.mubr.bf16.gmra.mrb[96].mxu0 %v4956_v15  ;;  %v7237_v15 = vpop.f32.mrb[8].mxu1 }
 0x19d   :  { %3286 = vmatprep.mubr.bf16.mxu0 %v4965_v2  ;;  %v2528_v1 = vpop.f32.mrb[9].mxu1  ;;  %v418_v2 = vld [vmem:[%s8034_s1 + $0x7b0] sm:$0xff]  ;;  %3846 = vperm.xlu0 %5855, %v3796_v31   ;;  %v3821_v31 = vld [vmem:[%s8037_s4 + $0xe8] sm:$0xff] }
 0x19e   :  { %3006 = vmatmul.mubr.bf16.gmra.mrb[104].mxu1 %v4970_v43  ;;  %v7248_v19 = vpop.f32.mrb[10].mxu1  ;;  %v5005_v26 = vcombine.high %v414_v17, %v418_v2  ;;  %3931 = vperm.xlu1 %5856, %v3813_v21   ;;  %v5002_v43 = vcombine.low %v413_v24, %v417_v25  ;;  %v195_v1 = vld [vmem:[%s8034_s1 + $0xb8] sm:$0xff]  ;;  %v3822_v24 = vld [vmem:[%s8037_s4 + $0xf0] sm:$0xff]  ;;  %v3805_v25 = vld [vmem:[%s8037_s4 + $0x68] sm:$0xff] }
 0x19f   :  { %3013 = vmatprep.mubr.bf16.mxu1 %v4979_v44  ;;  %v2531_v23 = vpop.f32.mrb[11].mxu1  ;;  %v5011_v44 = vcombine.high %v421_v8, %v425_v41 }
 0x1a0   :  { %v7265_v32 = vpop.f32.mrb[12].mxu1  ;;  %v4774_v23 = vcombine.low %v183_v60, %v187_v61 }
 0x1a1   :  { %3936 = vperm.xlu0 %5855, %v3814_v30   ;;  %v2536_v34 = vpop.f32.mrb[13].mxu1  ;;  %v203_v30 = vld [vmem:[%s8034_s1 + $0xf8] sm:$0xff] }
 0x1a2   :  { %v7276_v38 = vpop.f32.mrb[14].mxu1 }
 0x1a3   :  { %v2539_v39 = vpop.f32.mrb[15].mxu1 }
 0x1a4   :  { %3287 = vmatmul.mubr.bf16.gmra.mrb[100].mxu0 %v4964_v28  ;;  %v4994_v28 = vcombine.low %v405_v7, %v409_v9  ;;  %v7293_v47 = vpop.f32.mrb[16].mxu1  ;;  %v4766_v7 = vcombine.low %v175_v14, %v179_v49  ;;  %v4775_v9 = vcombine.high %v183_v60, %v187_v61  ;;  %v4660_v39 = vld [vmem:[%s8039_s6] sm:$0xff]  ;;  %v227_v60 = vld [vmem:[%s8034_s1 + $0x1b8] sm:$0xff] }
 0x1a5   :  { %3294 = vmatprep.mubr.bf16.mxu0 %v4973_v4  ;;  %v3797_v4 = vld [vmem:[%s8037_s4 + $0x28] sm:$0xff]  ;;  %3856 = vperm.xlu0 %5855, %v3798_v37   ;;  %v2544_v48 = vpop.f32.mrb[17].mxu1  ;;  %v4782_v37 = vcombine.low %v191_v29, %v195_v1 }
 0x1a6   :  { %3014 = vmatmul.mubr.bf16.gmra.mrb[108].mxu1 %v4978_v55  ;;  %3851 = vperm.xlu1 %5856, %v3797_v4   ;;  %v7304_v52 = vpop.f32.mrb[18].mxu1  ;;  %v5010_v55 = vcombine.low %v421_v8, %v425_v41  ;;  %v3806_v4 = vld [vmem:[%s8037_s4 + $0x70] sm:$0xff] }
 0x1a7   :  { %3021 = vmatprep.mubr.bf16.mxu1 %v4987_v56  ;;  %v2547_v53 = vpop.f32.mrb[19].mxu1  ;;  %v3818_v56 = vld [vmem:[%s8037_s4 + $0xd0] sm:$0xff] }
 0x1a8   :  { %v7315_v57 = vpop.f32.mrb[20].mxu1 }
 0x1a9   :  { %3946 = vperm.xlu0 %5855, %v3816_v45   ;;  %v2552_v59 = vpop.f32.mrb[21].mxu1 }
 0x1aa   :  { %3941 = vperm.xlu1 %5856, %v3815_v5   ;;  %v7326_v63 = vpop.f32.mrb[22].mxu1  ;;  %v223_v59 = vld [vmem:[%s8034_s1 + $0x198] sm:$0xff] }
 0x1ac   :  { %3295 = vmatmul.mubr.bf16.gmra.mrb[104].mxu0 %v4972_v40  ;;  %v5004_v40 = vcombine.low %v414_v17, %v418_v2  ;;  %v3804_v17 = vld [vmem:[%s8037_s4 + $0x60] sm:$0xff] }
 0x1ad   :  { %3302 = vmatprep.mubr.bf16.mxu0 %v4981_v42  ;;  %v5013_v42 = vcombine.high %v422_v35, %v426_v36  ;;  %3866 = vperm.xlu0 %5855, %v3800_v51   ;;  %v3823_v35 = vld [vmem:[%s8037_s4 + $0xf8] sm:$0xff] }
 0x1ae   :  { %3022 = vmatmul.mubr.bf16.gmra.mrb[112].mxu1 %v4986_v27  ;;  %3861 = vperm.xlu1 %5856, %v3799_v12   ;;  %v3803_v27 = vld [vmem:[%s8037_s4 + $0x58] sm:$0xff] }
 0x1af   :  { %3029 = vmatprep.mubr.bf16.mxu1 %v4995_v11  ;;  %v215_v51 = vld [vmem:[%s8034_s1 + $0x158] sm:$0xff] }
 0x1b1   :  { %3956 = vperm.xlu0 %5855, %v3818_v56  }
 0x1b4   :  { %3303 = vmatmul.mubr.bf16.gmra.mrb[108].mxu0 %v4980_v0  ;;  %v3817_v0 = vld [vmem:[%s8037_s4 + $0xc8] sm:$0xff] }
 0x1b5   :  { %3310 = vmatprep.mubr.bf16.mxu0 %v4989_v54  ;;  %v4767_v54 = vcombine.high %v175_v14, %v179_v49  ;;  %3951 = vperm.xlu1 %5856, %v3817_v0   ;;  %v219_v0 = vld [vmem:[%s8034_s1 + $0x178] sm:$0xff] }
 0x1b6   :  { %3030 = vmatmul.mubr.bf16.gmra.mrb[116].mxu1 %v4994_v28  ;;  %3876 = vperm.xlu0 %5855, %v3802_v20  }
 0x1b7   :  { %3037 = vmatprep.mubr.bf16.mxu1 %v5003_v3  ;;  %v199_v3 = vld [vmem:[%s8034_s1 + $0xd8] sm:$0xff] }
 0x1b8   :  { %v4791_v5 = vcombine.high %v199_v3, %v203_v30  ;;  %v4790_v12 = vcombine.low %v199_v3, %v203_v30 }
 0x1b9   :  { %3871 = vperm.xlu1 %5856, %v3801_v18  }
 0x1bc   :  { %3311 = vmatmul.mubr.bf16.gmra.mrb[112].mxu0 %v4988_v6  ;;  %v2555_v6 = vpop.f32.mrb[23].mxu1 }
 0x1bd   :  { %3318 = vmatprep.mubr.bf16.mxu0 %v4997_v10  ;;  %3961 = vperm.xlu1 %5856, %v3819_v22   ;;  %v3820_v10 = vld [vmem:[%s8037_s4 + $0xe0] sm:$0xff]  ;;  %v7337_v11 = vpop.f32.mrb[24].mxu1  ;;  %v4806_v22 = vcombine.low %v215_v51, %v219_v0  ;;  %v4815_v6 = vcombine.high %v223_v59, %v227_v60 }
 0x1be   :  { %3038 = vmatmul.mubr.bf16.gmra.mrb[120].mxu1 %v5002_v43  ;;  %3966 = vperm.xlu0 %5855, %v3820_v10   ;;  %v2560_v13 = vpop.f32.mrb[25].mxu1  ;;  %v211_v43 = vld [vmem:[%s8034_s1 + $0x138] sm:$0xff] }
 0x1bf   :  { %3045 = vmatprep.mubr.bf16.mxu1 %v5011_v44  ;;  %v7348_v2 = vpop.f32.mrb[26].mxu1  ;;  %v231_v10 = vld [vmem:[%s8034_s1 + $0x1d8] sm:$0xff] }
 0x1c0   :  { %v2563_v21 = vpop.f32.mrb[27].mxu1 }
 0x1c1   :  { %3881 = vperm.xlu1 %5856, %v3803_v27   ;;  %v235_v27 = vld [vmem:[%s8034_s1 + $0x1f8] sm:$0xff] }
 0x1c2   :  { %3886 = vperm.xlu0 %5855, %v3804_v17   ;;  %v4823_v17 = vcombine.high %v231_v10, %v235_v27 }
 0x1c4   :  { %3319 = vmatmul.mubr.bf16.gmra.mrb[116].mxu0 %v4996_v33  ;;  %v4783_v33 = vcombine.high %v191_v29, %v195_v1  ;;  %v4814_v1 = vcombine.low %v223_v59, %v227_v60 }
 0x1c5   :  { %3326 = vmatprep.mubr.bf16.mxu0 %v5005_v26  ;;  %3971 = vperm.xlu1 %5856, %v3821_v31   ;;  %v7359_v26 = vpop.f32.mrb[28].mxu1 }
 0x1c6   :  { %3046 = vmatmul.mubr.bf16.gmra.mrb[124].mxu1 %v5010_v55  ;;  %3976 = vperm.xlu0 %5855, %v3822_v24   ;;  %v2568_v28 = vpop.f32.mrb[29].mxu1  ;;  %v4807_v55 = vcombine.high %v215_v51, %v219_v0 }
 0x1c7   :  { %v7370_v34 = vpop.f32.mrb[30].mxu1  ;;  %v4822_v28 = vcombine.low %v231_v10, %v235_v27  ;;  %v275_v10 = vld [vmem:[%s8034_s1 + $0x338] sm:$0xff] }
 0x1c8   :  { %v2571_v36 = vpop.f32.mrb[31].mxu1 }
 0x1c9   :  { %3891 = vperm.xlu1 %5856, %v3805_v25   ;;  %v7381_v8 = vpop.f32.mrb[32].mxu1  ;;  %v251_v36 = vld [vmem:[%s8034_s1 + $0x278] sm:$0xff] }
 0x1ca   :  { %3896 = vperm.xlu0 %5855, %v3806_v4   ;;  %v2576_v41 = vpop.f32.mrb[33].mxu1 }
 0x1cb   :  { %v7389_v44 = vpop.f32.mrb[34].mxu1 }
 0x1cc   :  { %3327 = vmatmul.mubr.bf16.gmra.mrb[120].mxu0 %v5004_v40  ;;  %v3807_v40 = vld [vmem:[%s8037_s4 + $0x78] sm:$0xff]  ;;  %v2579_v45 = vpop.f32.mrb[35].mxu1 }
 0x1cd   :  { %3334 = vmatprep.mubr.bf16.mxu0 %v5013_v42  ;;  %3981 = vperm.xlu1 %5856, %v3823_v35   ;;  %v207_v42 = vld [vmem:[%s8034_s1 + $0x118] sm:$0xff]  ;;  %v7391_v14 = vpop.f32.mrb[36].mxu1 }
 0x1ce   :  { %4663 = vperm.xlu0 %5855, %v4660_v39   ;;  %v4799_v48 = vcombine.high %v207_v42, %v211_v43  ;;  %v2584_v49 = vpop.f32.mrb[37].mxu1  ;;  %v247_v35 = vld [vmem:[%s8034_s1 + $0x258] sm:$0xff] }
 0x1cf   :  { %v7399_v53 = vpop.f32.mrb[38].mxu1  ;;  %v259_v45 = vld [vmem:[%s8034_s1 + $0x2b8] sm:$0xff]  ;;  %v4838_v49 = vcombine.low %v247_v35, %v251_v36 }
 0x1d1   :  { %3901 = vperm.xlu1 %5856, %v3807_v40   ;;  %v4839_v40 = vcombine.high %v247_v35, %v251_v36  ;;  %v287_v36 = vld [vmem:[%s8034_s1 + $0x398] sm:$0xff] }
 0x1d4   :  { %3335 = vmatmul.mubr.bf16.gmra.mrb[124].mxu0 %v5012_v16  ;;  %v2587_v16 = vpop.f32.mrb[39].mxu1 }
 0x1d5   :  { %3375 = vmatprep.mubr.bf16.mxu0 %v4767_v54  ;;  %v4798_v54 = vcombine.low %v207_v42, %v211_v43  ;;  %v7401_v56 = vpop.f32.mrb[40].mxu1  ;;  %v255_v43 = vld [vmem:[%s8034_s1 + $0x298] sm:$0xff] }
 0x1d6   :  { %v2592_v18 = vpop.f32.mrb[41].mxu1  ;;  %v4847_v51 = vcombine.high %v255_v43, %v259_v45  ;;  %v4846_v60 = vcombine.low %v255_v43, %v259_v45 }
 0x1d7   :  { %v7409_v61 = vpop.f32.mrb[42].mxu1 }
 0x1d8   :  { %v2595_v20 = vpop.f32.mrb[43].mxu1 }
 0x1dc   :  { %3376 = vmatmul.mubr.bf16.vlgmr.msra.gmra.mrb[0].mxu0 %v4766_v7  ;;  %v7411_v7 = vpop.f32.mrb[44].mxu1 }
 0x1dd   :  { %3383 = vmatprep.mubr.bf16.mxu0 %v4775_v9  ;;  %v2600_v9 = vpop.f32.mrb[45].mxu1 }
 0x1de   :  { %v7419_v13 = vpop.f32.mrb[46].mxu1  ;;  %v271_v9 = vld [vmem:[%s8034_s1 + $0x318] sm:$0xff] }
 0x1df   :  { %v2603_v29 = vpop.f32.mrb[47].mxu1 }
 0x1e0   :  { %v7421_v31 = vpop.f32.mrb[48].mxu1 }
 0x1e1   :  { %v2608_v21 = vpop.f32.mrb[49].mxu1 }
 0x1e2   :  { %v7429_v24 = vpop.f32.mrb[50].mxu1  ;;  %v279_v21 = vld [vmem:[%s8034_s1 + $0x358] sm:$0xff] }
 0x1e3   :  { %v2611_v25 = vpop.f32.mrb[51].mxu1 }
 0x1e4   :  { %3384 = vmatmul.mubr.bf16.gmra.mrb[4].mxu0 %v4774_v23  ;;  %v239_v23 = vld [vmem:[%s8034_s1 + $0x218] sm:$0xff]  ;;  %v7431_v30 = vpop.f32.mrb[52].mxu1 }
 0x1e5   :  { %3391 = vmatprep.mubr.bf16.mxu0 %v4783_v33  ;;  %v243_v33 = vld [vmem:[%s8034_s1 + $0x238] sm:$0xff]  ;;  %v2616_v4 = vpop.f32.mrb[53].mxu1 }
 0x1e6   :  { %v4831_v3 = vcombine.high %v239_v23, %v243_v33  ;;  %v4830_v39 = vcombine.low %v239_v23, %v243_v33  ;;  %v283_v23 = vld [vmem:[%s8034_s1 + $0x378] sm:$0xff]  ;;  %v4862_v33 = vcombine.low %v271_v9, %v275_v10 }
 0x1e7   :  { %v4871_v25 = vcombine.high %v279_v21, %v283_v23 }
 0x1ec   :  { %3392 = vmatmul.mubr.bf16.gmra.mrb[8].mxu0 %v4782_v37  ;;  %v7439_v37 = vpop.f32.mrb[54].mxu1 }
 0x1ed   :  { %3399 = vmatprep.mubr.bf16.mxu0 %v4791_v5  ;;  %v2619_v5 = vpop.f32.mrb[55].mxu1 }
 0x1ee   :  { %v7441_v41 = vpop.f32.mrb[56].mxu1  ;;  %v291_v5 = vld [vmem:[%s8034_s1 + $0x3b8] sm:$0xff] }
 0x1ef   :  { %v2624_v42 = vpop.f32.mrb[57].mxu1 }
 0x1f4   :  { %3400 = vmatmul.mubr.bf16.gmra.mrb[12].mxu0 %v4790_v12  ;;  %v7449_v12 = vpop.f32.mrb[58].mxu1 }
 0x1f5   :  { %3407 = vmatprep.mubr.bf16.mxu0 %v4799_v48  ;;  %v2627_v48 = vpop.f32.mrb[59].mxu1 }
 0x1f6   :  { %v7451_v0 = vpop.f32.mrb[60].mxu1 }
 0x1f7   :  { %v2632_v16 = vpop.f32.mrb[61].mxu1 }
 0x1f8   :  { %v7459_v18 = vpop.f32.mrb[62].mxu1  ;;  %v4878_v16 = vcombine.low %v287_v36, %v291_v5 }
 0x1f9   :  { %8042 = vst [vmem:[#allocation5_spill] sm:$0xff] %v7459_v18  ;;  %v2635_v59 = vpop.f32.mrb[63].mxu1 }
 0x1fc   :  { %3408 = vmatmul.mubr.bf16.gmra.mrb[16].mxu0 %v4798_v54  ;;  %v263_v54 = vld [vmem:[%s8034_s1 + $0x2d8] sm:$0xff] }
 0x1fd   :  { %3415 = vmatprep.mubr.bf16.mxu0 %v4807_v55  ;;  %v267_v55 = vld [vmem:[%s8034_s1 + $0x2f8] sm:$0xff] }
 0x1fe   :  { %v4855_v20 = vcombine.high %v263_v54, %v267_v55  ;;  %v4854_v27 = vcombine.low %v263_v54, %v267_v55 }
 0x204   :  { %3416 = vmatmul.mubr.bf16.gmra.mrb[20].mxu0 %v4806_v22  ;;  %v7461_v22 = vpop.f32.mrb[64].mxu1 }
 0x205   :  { %3423 = vmatprep.mubr.bf16.mxu0 %v4815_v6  ;;  %8043 = vst [vmem:[#allocation6_spill] sm:$0xff] %v7461_v22  ;;  %v2640_v6 = vpop.f32.mrb[65].mxu1 }
 0x206   :  { %v7469_v29 = vpop.f32.mrb[66].mxu1  ;;  %v303_v6 = vld [vmem:[%s8034_s1 + $0x418] sm:$0xff] }
 0x207   :  { %8044 = vst [vmem:[#allocation7_spill] sm:$0xff] %v7469_v29 }
 0x20c   :  { %3424 = vmatmul.mubr.bf16.gmra.mrb[24].mxu0 %v4814_v1  ;;  %v4863_v1 = vcombine.high %v271_v9, %v275_v10  ;;  %v307_v9 = vld [vmem:[%s8034_s1 + $0x438] sm:$0xff] }
 0x20d   :  { %3431 = vmatprep.mubr.bf16.mxu0 %v4823_v17  ;;  %v2643_v17 = vpop.f32.mrb[67].mxu1 }
 0x214   :  { %3432 = vmatmul.mubr.bf16.gmra.mrb[28].mxu0 %v4822_v28 }
 0x215   :  { %3439 = vmatprep.mubr.bf16.mxu0 %v4831_v3 }
 0x21c   :  { %3440 = vmatmul.mubr.bf16.gmra.mrb[32].mxu0 %v4830_v39  ;;  %v4870_v39 = vcombine.low %v279_v21, %v283_v23 }
 0x21d   :  { %3447 = vmatprep.mubr.bf16.mxu0 %v4839_v40  ;;  %v4879_v40 = vcombine.high %v287_v36, %v291_v5 }
 0x224   :  { %3448 = vmatmul.mubr.bf16.gmra.mrb[36].mxu0 %v4838_v49  ;;  %v295_v49 = vld [vmem:[%s8034_s1 + $0x3d8] sm:$0xff] }
 0x225   :  { %3455 = vmatprep.mubr.bf16.mxu0 %v4847_v51  ;;  %v299_v51 = vld [vmem:[%s8034_s1 + $0x3f8] sm:$0xff] }
 0x226   :  { %v4887_v54 = vcombine.high %v295_v49, %v299_v51  ;;  %v4886_v10 = vcombine.low %v295_v49, %v299_v51 }
 0x229   :  { %v7477_v28 = vpop.f32.mrb[68].mxu1 }
 0x22a   :  { %8045 = vst [vmem:[#allocation8_spill] sm:$0xff] %v7477_v28  ;;  %v2937_v3 = vpop.f32.mrb[69].mxu1 }
 0x22b   :  { %v7479_v4 = vpop.f32.mrb[70].mxu1  ;;  %v4894_v3 = vcombine.low %v303_v6, %v307_v9 }
 0x22c   :  { %3456 = vmatmul.mubr.bf16.gmra.mrb[40].mxu0 %v4846_v60  ;;  %8046 = vst [vmem:[#allocation9_spill] sm:$0xff] %v7479_v4  ;;  %v2940_v35 = vpop.f32.mrb[71].mxu1 }
 0x22d   :  { %3463 = vmatprep.mubr.bf16.mxu0 %v4855_v20 }
 0x231   :  { %v7487_v42 = vpop.f32.mrb[72].mxu1 }
 0x232   :  { %8047 = vst [vmem:[#allocation10_spill] sm:$0xff] %v7487_v42  ;;  %v2945_v43 = vpop.f32.mrb[73].mxu1 }
 0x233   :  { %v7489_v45 = vpop.f32.mrb[74].mxu1  ;;  %v319_v43 = vld [vmem:[%s8034_s1 + $0x498] sm:$0xff] }
 0x234   :  { %3464 = vmatmul.mubr.bf16.gmra.mrb[44].mxu0 %v4854_v27  ;;  %8048 = vst [vmem:[#allocation11_spill] sm:$0xff] %v7489_v45  ;;  %v2948_v48 = vpop.f32.mrb[75].mxu1  ;;  %v4895_v27 = vcombine.high %v303_v6, %v307_v9  ;;  %v327_v6 = vld [vmem:[%s8034_s1 + $0x4d8] sm:$0xff]  ;;  %v5923_v45 = vld [vmem:[#allocation2 + $0x4] ss:$16 sps:$4 sm:$0xff]  }
 0x235   :  { %3471 = vmatprep.mubr.bf16.mxu0 %v4863_v1  ;;  %v323_v48 = vld [vmem:[%s8034_s1 + $0x4b8] sm:$0xff]  ;;  %4336 = vmatprep.mubr.bf16.mxu1 %v5923_v45 }
 0x236   :  { %v4911_v51 = vcombine.high %v319_v43, %v323_v48  ;;  %v331_v9 = vld [vmem:[%s8034_s1 + $0x4f8] sm:$0xff] }
 0x239   :  { %v7497_v55 = vpop.f32.mrb[76].mxu1 }
 0x23a   :  { %8049 = vst [vmem:[#allocation12_spill] sm:$0xff] %v7497_v55  ;;  %v2953_v59 = vpop.f32.mrb[77].mxu1 }
 0x23b   :  { %v7499_v60 = vpop.f32.mrb[78].mxu1 }
 0x23c   :  { %3472 = vmatmul.mubr.bf16.gmra.mrb[48].mxu0 %v4862_v33  ;;  %8050 = vst [vmem:[#allocation13_spill] sm:$0xff] %v7499_v60  ;;  %v2956_v20 = vpop.f32.mrb[79].mxu1  ;;  %v311_v33 = vld [vmem:[%s8034_s1 + $0x458] sm:$0xff] }
 0x23d   :  { %3479 = vmatprep.mubr.bf16.mxu0 %v4871_v25  ;;  %v315_v25 = vld [vmem:[%s8034_s1 + $0x478] sm:$0xff] }
 0x23e   :  { %v4903_v35 = vcombine.high %v311_v33, %v315_v25  ;;  %v4902_v49 = vcombine.low %v311_v33, %v315_v25 }
 0x241   :  { %v7507_v1 = vpop.f32.mrb[80].mxu1 }
 0x242   :  { %8051 = vst [vmem:[#allocation14_spill] sm:$0xff] %v7507_v1  ;;  %v2961_v17 = vpop.f32.mrb[81].mxu1 }
 0x243   :  { %v7509_v21 = vpop.f32.mrb[82].mxu1 }
 0x244   :  { %3480 = vmatmul.mubr.bf16.gmra.mrb[52].mxu0 %v4870_v39  ;;  %8052 = vst [vmem:[#allocation15_spill] sm:$0xff] %v7509_v21  ;;  %v2964_v23 = vpop.f32.mrb[83].mxu1 }
 0x245   :  { %3487 = vmatprep.mubr.bf16.mxu0 %v4879_v40 }
 0x249   :  { %v7517_v36 = vpop.f32.mrb[84].mxu1 }
 0x24a   :  { %8053 = vst [vmem:[#allocation16_spill] sm:$0xff] %v7517_v36  ;;  %v2969_v5 = vpop.f32.mrb[85].mxu1 }
 0x24b   :  { %v7519_v39 = vpop.f32.mrb[86].mxu1  ;;  %v4918_v5 = vcombine.low %v327_v6, %v331_v9 }
 0x24c   :  { %3488 = vmatmul.mubr.bf16.gmra.mrb[56].mxu0 %v4878_v16  ;;  %8054 = vst [vmem:[#allocation17_spill] sm:$0xff] %v7519_v39  ;;  %v2972_v40 = vpop.f32.mrb[87].mxu1 }
 0x24d   :  { %3495 = vmatprep.mubr.bf16.mxu0 %v4887_v54 }
 0x251   :  { %v7527_v16 = vpop.f32.mrb[88].mxu1 }
 0x252   :  { %8055 = vst [vmem:[#allocation18_spill] sm:$0xff] %v7527_v16  ;;  %v2977_v54 = vpop.f32.mrb[89].mxu1  ;;  %v387_v16 = vld [vmem:[%s8034_s1 + $0x6b8] sm:$0xff] }
 0x253   :  { %v7529_v59 = vpop.f32.mrb[90].mxu1  ;;  %v343_v54 = vld [vmem:[%s8034_s1 + $0x558] sm:$0xff] }
 0x254   :  { %3496 = vmatmul.mubr.bf16.gmra.mrb[60].mxu0 %v4886_v10  ;;  %8056 = vst [vmem:[#allocation19_spill] sm:$0xff] %v7529_v59  ;;  %v2980_v20 = vpop.f32.mrb[91].mxu1  ;;  %v4910_v10 = vcombine.low %v319_v43, %v323_v48  ;;  %v383_v59 = vld [vmem:[%s8034_s1 + $0x698] sm:$0xff] }
 0x255   :  { %3503 = vmatprep.mubr.bf16.mxu0 %v4895_v27  ;;  %v4919_v27 = vcombine.high %v327_v6, %v331_v9  ;;  %v347_v20 = vld [vmem:[%s8034_s1 + $0x578] sm:$0xff] }
 0x259   :  { %v7537_v17 = vpop.f32.mrb[92].mxu1 }
 0x25a   :  { %8057 = vst [vmem:[#allocation20_spill] sm:$0xff] %v7537_v17  ;;  %v2985_v23 = vpop.f32.mrb[93].mxu1 }
 0x25b   :  { %v7539_v33 = vpop.f32.mrb[94].mxu1 }
 0x25c   :  { %3504 = vmatmul.mubr.bf16.gmra.mrb[64].mxu0 %v4894_v3  ;;  %8058 = vst [vmem:[#allocation21_spill] sm:$0xff] %v7539_v33  ;;  %v2988_v25 = vpop.f32.mrb[95].mxu1  ;;  %v335_v3 = vld [vmem:[%s8034_s1 + $0x518] sm:$0xff] }
 0x25d   :  { %3511 = vmatprep.mubr.bf16.mxu0 %v4903_v35  ;;  %v339_v35 = vld [vmem:[%s8034_s1 + $0x538] sm:$0xff] }
 0x25e   :  { %v4927_v40 = vcombine.high %v335_v3, %v339_v35 }
 0x261   :  { %v7547_v43 = vpop.f32.mrb[96].mxu1 }
 0x262   :  { %8059 = vst [vmem:[#allocation22_spill] sm:$0xff] %v7547_v43  ;;  %v2993_v48 = vpop.f32.mrb[97].mxu1 }
 0x263   :  { %v4934_v48 = vcombine.low %v343_v54, %v347_v20 }
 0x264   :  { %3512 = vmatmul.mubr.bf16.gmra.mrb[68].mxu0 %v4902_v49  ;;  %v7549_v49 = vpop.f32.mrb[98].mxu1 }
 0x265   :  { %3519 = vmatprep.mubr.bf16.mxu0 %v4911_v51  ;;  %8060 = vst [vmem:[#allocation23_spill] sm:$0xff] %v7549_v49  ;;  %v2996_v51 = vpop.f32.mrb[99].mxu1 }
 0x269   :  { %v7557_v6 = vpop.f32.mrb[100].mxu1 }
 0x26a   :  { %8061 = vst [vmem:[#allocation24_spill] sm:$0xff] %v7557_v6  ;;  %v3001_v9 = vpop.f32.mrb[101].mxu1 }
 0x26b   :  { %v7559_v23 = vpop.f32.mrb[102].mxu1 }
 0x26c   :  { %3520 = vmatmul.mubr.bf16.gmra.mrb[72].mxu0 %v4910_v10  ;;  %v4926_v10 = vcombine.low %v335_v3, %v339_v35  ;;  %8062 = vst [vmem:[#allocation25_spill] sm:$0xff] %v7559_v23  ;;  %v3004_v25 = vpop.f32.mrb[103].mxu1 }
 0x26d   :  { %3527 = vmatprep.mubr.bf16.mxu0 %v4919_v27  ;;  %v4935_v27 = vcombine.high %v343_v54, %v347_v20  ;;  %v7579_v20 = vpop.permute.xlu0 %574 }
 0x271   :  { %v7567_v3 = vpop.f32.mrb[104].mxu1 }
 0x272   :  { %8063 = vst [vmem:[#allocation26_spill] sm:$0xff] %v7567_v3  ;;  %v3009_v35 = vpop.f32.mrb[105].mxu1  ;;  %v495_v3 = vpop.permute.xlu1 %494 }
 0x273   :  { %v7569_v6 = vpop.f32.mrb[106].mxu1 }
 0x274   :  { %3528 = vmatmul.mubr.bf16.gmra.mrb[76].mxu0 %v4918_v5  ;;  %v351_v5 = vld [vmem:[%s8034_s1 + $0x598] sm:$0xff]  ;;  %8064 = vst [vmem:[#allocation27_spill] sm:$0xff] %v7569_v6  ;;  %v3012_v9 = vpop.f32.mrb[107].mxu1 }
 0x275   :  { %3535 = vmatprep.mubr.bf16.mxu0 %v4927_v40  ;;  %v355_v40 = vld [vmem:[%s8034_s1 + $0x5b8] sm:$0xff] }
 0x276   :  { %v4943_v51 = vcombine.high %v351_v5, %v355_v40  ;;  %v4942_v25 = vcombine.low %v351_v5, %v355_v40  ;;  %v371_v5 = vld [vmem:[%s8034_s1 + $0x638] sm:$0xff]  ;;  %v7589_v40 = vpop.permute.xlu0 %579 }
 0x279   :  { %v7577_v54 = vpop.f32.mrb[108].mxu1 }
 0x27a   :  { %8065 = vst [vmem:[#allocation28_spill] sm:$0xff] %v7577_v54  ;;  %v3017_v35 = vpop.f32.mrb[109].mxu1  ;;  %v500_v54 = vpop.permute.xlu1 %499 }
 0x27b   :  { %v7581_v6 = vpop.f32.mrb[110].mxu1 }
 0x27c   :  { %3536 = vmatmul.mubr.bf16.gmra.mrb[80].mxu0 %v4926_v10  ;;  %v359_v10 = vld [vmem:[%s8034_s1 + $0x5d8] sm:$0xff]  ;;  %8066 = vst [vmem:[#allocation29_spill] sm:$0xff] %v7581_v6 }
 0x27d   :  { %3543 = vmatprep.mubr.bf16.mxu0 %v4935_v27  ;;  %v363_v27 = vld [vmem:[%s8034_s1 + $0x5f8] sm:$0xff] }
 0x27e   :  { %v4951_v23 = vcombine.high %v359_v10, %v363_v27  ;;  %v4950_v9 = vcombine.low %v359_v10, %v363_v27  ;;  %v379_v10 = vld [vmem:[%s8034_s1 + $0x678] sm:$0xff]  ;;  %v7603_v27 = vpop.permute.xlu1 %589 }
 0x282   :  { %v510_v17 = vpop.permute.xlu1 %509 }
 0x283   :  { %v2522_v45 = vadd.f32 %v7220_v62, %v510_v17  ;;  %v415_v62 = vld [vmem:[%s8034_s1 + $0x798] sm:$0xff] }
 0x284   :  { %3544 = vmatmul.mubr.bf16.gmra.mrb[84].mxu0 %v4934_v48  ;;  %v3020_v48 = vpop.f32.mrb[111].mxu1 }
 0x285   :  { %3551 = vmatprep.mubr.bf16.mxu0 %v4943_v51  ;;  %v367_v51 = vld [vmem:[%s8034_s1 + $0x618] sm:$0xff]  ;;  %v7591_v35 = vpop.f32.mrb[112].mxu1 }
 0x286   :  { %v4959_v49 = vcombine.high %v367_v51, %v371_v5  ;;  %8067 = vst [vmem:[#allocation30_spill] sm:$0xff] %v7591_v35  ;;  %v3025_v43 = vpop.f32.mrb[113].mxu1  ;;  %v375_v48 = vld [vmem:[%s8034_s1 + $0x658] sm:$0xff]  ;;  %v4958_v33 = vcombine.low %v367_v51, %v371_v5  ;;  %v4975_v5 = vcombine.high %v383_v59, %v387_v16 }
 0x287   :  { %v7593_v6 = vpop.f32.mrb[114].mxu1  ;;  %v4967_v35 = vcombine.high %v375_v48, %v379_v10  ;;  %v4966_v51 = vcombine.low %v375_v48, %v379_v10  ;;  %v395_v48 = vld [vmem:[%s8034_s1 + $0x6f8] sm:$0xff] }
 0x288   :  { %8068 = vst [vmem:[#allocation31_spill] sm:$0xff] %v7593_v6 }
 0x28c   :  { %3552 = vmatmul.mubr.bf16.gmra.mrb[88].mxu0 %v4942_v25  ;;  %v7595_v25 = vpop.permute.xlu0 %584 }
 0x28d   :  { %3559 = vmatprep.mubr.bf16.mxu0 %v4951_v23  ;;  %v3028_v23 = vpop.f32.mrb[115].mxu1 }
 0x28e   :  { %v7605_v43 = vpop.f32.mrb[116].mxu1 }
 0x28f   :  { %8069 = vst [vmem:[#allocation32_spill] sm:$0xff] %v7605_v43  ;;  %v3033_v6 = vpop.f32.mrb[117].mxu1  ;;  %v7619_v43 = vpop.permute.xlu1 %599 }
 0x293   :  { %v520_v36 = vpop.permute.xlu1 %519 }
 0x294   :  { %3560 = vmatmul.mubr.bf16.gmra.mrb[92].mxu0 %v4950_v9  ;;  %v7607_v9 = vpop.f32.mrb[118].mxu1 }
 0x295   :  { %3567 = vmatprep.mubr.bf16.mxu0 %v4959_v49  ;;  %8070 = vst [vmem:[#allocation33_spill] sm:$0xff] %v7607_v9  ;;  %v505_v49 = vpop.permute.xlu0 %504  ;;  %v3036_v23 = vpop.f32.mrb[119].mxu1 }
 0x296   :  { %v7615_v39 = vpop.f32.mrb[120].mxu1  ;;  %v391_v23 = vld [vmem:[%s8034_s1 + $0x6d8] sm:$0xff]  ;;  %v2519_v22 = vadd.f32 %v7209_v58, %v505_v49 }
 0x297   :  { %8071 = vst [vmem:[#allocation34_spill] sm:$0xff] %v7615_v39  ;;  %v3041_v9 = vpop.f32.mrb[121].mxu1  ;;  %v4974_v39 = vcombine.low %v383_v59, %v387_v16  ;;  %v4983_v21 = vcombine.high %v391_v23, %v395_v48  ;;  %v403_v16 = vld [vmem:[%s8034_s1 + $0x738] sm:$0xff]  ;;  %v7642_v59 = vpop.permute.xlu1 %609 }
 0x299   :  { %v7617_v6 = vpop.permute.xlu0 %594 }
 0x29b   :  { %v530_v29 = vpop.permute.xlu1 %529 }
 0x29c   :  { %3568 = vmatmul.mubr.bf16.gmra.mrb[96].mxu0 %v4958_v33  ;;  %v7621_v33 = vpop.f32.mrb[122].mxu1 }
 0x29d   :  { %3575 = vmatprep.mubr.bf16.mxu0 %v4967_v35  ;;  %8072 = vst [vmem:[#allocation35_spill] sm:$0xff] %v7621_v33  ;;  %v3044_v35 = vpop.f32.mrb[123].mxu1  ;;  %v515_v10 = vpop.permute.xlu0 %514  ;;  %v399_v33 = vld [vmem:[%s8034_s1 + $0x718] sm:$0xff] }
 0x29e   :  { %v7629_v9 = vpop.f32.mrb[124].mxu1  ;;  %v2511_v35 = vadd.f32 %v7181_v46, %v495_v3  ;;  %v4991_v55 = vcombine.high %v399_v33, %v403_v16 }
 0x29f   :  { %8073 = vst [vmem:[#allocation36_spill] sm:$0xff] %v7629_v9  ;;  %v3049_v1 = vpop.f32.mrb[125].mxu1 }
 0x2a0   :  { %v7631_v60 = vpop.f32.mrb[126].mxu1 }
 0x2a1   :  { %8074 = vst [vmem:[#allocation37_spill] sm:$0xff] %v7631_v60  ;;  %v2514_v60 = vadd.f32 %v7192_v50, %v500_v54  ;;  %v407_v50 = vld [vmem:[%s8034_s1 + $0x758] sm:$0xff] }
 0x2a4   :  { %3576 = vmatmul.mubr.bf16.gmra.mrb[100].mxu0 %v4966_v51  ;;  %v3052_v51 = vpop.f32.mrb[127].mxu1 }
 0x2a5   :  { %3583 = vmatprep.mubr.bf16.mxu0 %v4975_v5  ;;  %v7633_v5 = vpop.permute.xlu0 %604 }
 0x2a9   :  { %v525_v42 = vpop.permute.xlu0 %524 }
 0x2ac   :  { %3584 = vmatmul.mubr.bf16.gmra.mrb[104].mxu0 %v4974_v39 }
 0x2ad   :  { %3591 = vmatprep.mubr.bf16.mxu0 %v4983_v21  ;;  %v4982_v21 = vcombine.low %v391_v23, %v395_v48 }
 0x2af   :  { %v3377_v1 = vpop.f32.mrb[0].mxu0 }
 0x2b0   :  { %v5468_v39 = vadd.f32 %v3377_v1, %v2511_v35  ;;  %v3379_v51 = vpop.f32.mrb[1].mxu0  ;;  %v7655_v1 = vpop.permute.xlu0 %614 }
 0x2b1   :  { %v3380_v9 = vpop.f32.mrb[2].mxu0  ;;  %v2527_v51 = vadd.f32 %v7237_v15, %v515_v10 }
 0x2b2   :  { %v5470_v46 = vadd.f32 %v3380_v9, %v2514_v60  ;;  %v3382_v3 = vpop.f32.mrb[3].mxu0  ;;  %v3632_v4 = vmax.f32 %v5468_v39, 0.0  ;;  %v411_v60 = vld [vmem:[%s8034_s1 + $0x778] sm:$0xff]  ;;  %v4990_v9 = vcombine.low %v399_v33, %v403_v16  ;;  %v2530_v33 = vadd.f32 %v7248_v19, %v520_v36 }
 0x2b3   :  { %v423_v19 = vld [vmem:[%s8034_s1 + $0x7d8] sm:$0xff] }
 0x2b4   :  { %v3633_v28 = vmax.f32 %v5470_v46, 0.0  ;;  %3592 = vmatmul.mubr.bf16.gmra.mrb[108].mxu0 %v4982_v21  ;;  %v535_v16 = vpop.permute.xlu0 %534  ;;  %v427_v36 = vld [vmem:[%s8034_s1 + $0x7f8] sm:$0xff] }
 0x2b5   :  { %3599 = vmatprep.mubr.bf16.mxu0 %v4991_v55  ;;  %v4999_v55 = vcombine.high %v407_v50, %v411_v60 }
 0x2b6   :  { %v7646_v18 = vpack.c.bf16 %v3633_v28, %v3632_v4  ;;  %v7657_v4 = vpop.permute.xlu1 %619 }
 0x2b7   :  { %v3385_v54 = vpop.f32.mrb[4].mxu0 }
 0x2b8   :  { %v5472_v23 = vadd.f32 %v3385_v54, %v2519_v22  ;;  %v3387_v48 = vpop.f32.mrb[5].mxu0  ;;  %v419_v22 = vld [vmem:[%s8034_s1 + $0x7b8] sm:$0xff]  ;;  %v4998_v54 = vcombine.low %v407_v50, %v411_v60 }
 0x2b9   :  { %v3388_v35 = vpop.f32.mrb[6].mxu0  ;;  %v5007_v15 = vcombine.high %v415_v62, %v419_v22 }
 0x2ba   :  { %v5474_v58 = vadd.f32 %v3388_v35, %v2522_v45  ;;  %v3390_v28 = vpop.f32.mrb[7].mxu0  ;;  %v3634_v49 = vmax.f32 %v5472_v23, 0.0  ;;  %v540_v45 = vpop.permute.xlu1 %539 }
 0x2bc   :  { %v3635_v39 = vmax.f32 %v5474_v58, 0.0  ;;  %3600 = vmatmul.mubr.bf16.gmra.mrb[112].mxu0 %v4990_v9  ;;  %v7670_v58 = vpop.permute.xlu0 %624 }
 0x2bd   :  { %3607 = vmatprep.mubr.bf16.mxu0 %v4999_v55  ;;  %v2535_v55 = vadd.f32 %v7265_v32, %v525_v42  ;;  %v5006_v32 = vcombine.low %v415_v62, %v419_v22  ;;  %v5014_v62 = vcombine.low %v423_v19, %v427_v36 }
 0x2be   :  { %v7660_v21 = vpack.c.bf16 %v3635_v39, %v3634_v49  ;;  %v7680_v50 = vpop.permute.xlu1 %629  ;;  %v2538_v49 = vadd.f32 %v7276_v38, %v530_v29  ;;  %v2546_v38 = vadd.f32 %v7304_v52, %v540_v45 }
 0x2bf   :  { %v3393_v17 = vpop.f32.mrb[8].mxu0 }
 0x2c0   :  { %v5476_v46 = vadd.f32 %v3393_v17, %v2527_v51  ;;  %v3395_v3 = vpop.f32.mrb[9].mxu0  ;;  %v5015_v17 = vcombine.high %v423_v19, %v427_v36 }
 0x2c1   :  { %v3396_v23 = vpop.f32.mrb[10].mxu0  ;;  %v545_v3 = vpop.permute.xlu0 %544 }
 0x2c2   :  { %v5478_v10 = vadd.f32 %v3396_v23, %v2530_v33  ;;  %v3398_v48 = vpop.f32.mrb[11].mxu0  ;;  %v3636_v9 = vmax.f32 %v5476_v46, 0.0 }
 0x2c4   :  { %v3637_v35 = vmax.f32 %v5478_v10, 0.0  ;;  %3608 = vmatmul.mubr.bf16.gmra.mrb[116].mxu0 %v4998_v54  ;;  %v2543_v10 = vadd.f32 %v7293_v47, %v535_v16  ;;  %v2551_v47 = vadd.f32 %v7315_v57, %v545_v3 }
 0x2c5   :  { %3615 = vmatprep.mubr.bf16.mxu0 %v5007_v15  ;;  %v550_v15 = vpop.permute.xlu1 %549 }
 0x2c6   :  { %v7672_v28 = vpack.c.bf16 %v3637_v35, %v3636_v9  ;;  %v2554_v52 = vadd.f32 %v7326_v63, %v550_v15 }
 0x2c7   :  { %v3401_v60 = vpop.f32.mrb[12].mxu0 }
 0x2c8   :  { %v5480_v39 = vadd.f32 %v3401_v60, %v2535_v55  ;;  %v3403_v51 = vpop.f32.mrb[13].mxu0  ;;  %v7687_v55 = vpop.permute.xlu0 %634 }
 0x2c9   :  { %v3404_v42 = vpop.f32.mrb[14].mxu0 }
 0x2ca   :  { %v5482_v33 = vadd.f32 %v3404_v42, %v2538_v49  ;;  %v3406_v46 = vpop.f32.mrb[15].mxu0  ;;  %v3638_v54 = vmax.f32 %v5480_v39, 0.0  ;;  %v7689_v39 = vpop.permute.xlu1 %639 }
 0x2cc   :  { %v3639_v23 = vmax.f32 %v5482_v33, 0.0  ;;  %3616 = vmatmul.mubr.bf16.gmra.mrb[120].mxu0 %v5006_v32  ;;  %v555_v45 = vpop.permute.xlu0 %554 }
 0x2cd   :  { %3623 = vmatprep.mubr.bf16.mxu0 %v5015_v17 }
 0x2ce   :  { %v7684_v48 = vpack.c.bf16 %v3639_v23, %v3638_v54  ;;  %v560_v36 = vpop.permute.xlu1 %559 }
 0x2cf   :  { %v3409_v9 = vpop.f32.mrb[16].mxu0  ;;  %v2562_v63 = vadd.f32 %v7348_v2, %v560_v36 }
 0x2d0   :  { %v5484_v29 = vadd.f32 %v3409_v9, %v2543_v10  ;;  %v3411_v35 = vpop.f32.mrb[17].mxu0  ;;  %v2559_v9 = vadd.f32 %v7337_v11, %v555_v45 }
 0x2d1   :  { %v3412_v22 = vpop.f32.mrb[18].mxu0 }
 0x2d2   :  { %v5486_v60 = vadd.f32 %v3412_v22, %v2546_v38  ;;  %v3414_v49 = vpop.f32.mrb[19].mxu0  ;;  %v3640_v51 = vmax.f32 %v5484_v29, 0.0  ;;  %v7696_v38 = vpop.permute.xlu0 %644 }
 0x2d3   :  { %v7700_v57 = vpop.permute.xlu1 %649 }
 0x2d4   :  { %v3641_v32 = vmax.f32 %v5486_v60, 0.0  ;;  %3624 = vmatmul.mubr.bf16.gmra.mrb[124].mxu0 %v5014_v62 }
 0x2d6   :  { %v7692_v16 = vpack.c.bf16 %v3641_v32, %v3640_v51  ;;  %v565_v32 = vpop.permute.xlu0 %564 }
 0x2d7   :  { %v3417_v42 = vpop.f32.mrb[20].mxu0  ;;  %v2567_v11 = vadd.f32 %v7359_v26, %v565_v32  ;;  %v2578_v26 = vadd.f32 %v7389_v44, %v7589_v40 }
 0x2d8   :  { %v5488_v17 = vadd.f32 %v3417_v42, %v2551_v47  ;;  %v3419_v19 = vpop.f32.mrb[21].mxu0  ;;  %v570_v47 = vpop.permute.xlu1 %569 }
 0x2d9   :  { %v3420_v33 = vpop.f32.mrb[22].mxu0  ;;  %v2570_v45 = vadd.f32 %v7370_v34, %v570_v47 }
 0x2da   :  { %v5490_v46 = vadd.f32 %v3420_v33, %v2554_v52  ;;  %v3422_v54 = vpop.f32.mrb[23].mxu0  ;;  %v3642_v23 = vmax.f32 %v5488_v17, 0.0 }
 0x2dc   :  { %v3643_v10 = vmax.f32 %v5490_v46, 0.0 }
 0x2de   :  { %v7698_v29 = vpack.c.bf16 %v3643_v10, %v3642_v23  ;;  %v2575_v23 = vadd.f32 %v7381_v8, %v7579_v20  ;;  %v2586_v8 = vadd.f32 %v7399_v53, %v7603_v27 }
 0x2df   :  { %v3425_v3 = vpop.f32.mrb[24].mxu0 }
 0x2e0   :  { %v5492_v15 = vadd.f32 %v3425_v3, %v2559_v9  ;;  %v3427_v35 = vpop.f32.mrb[25].mxu0 }
 0x2e1   :  { %v3428_v62 = vpop.f32.mrb[26].mxu0 }
 0x2e2   :  { %v5494_v22 = vadd.f32 %v3428_v62, %v2562_v63  ;;  %v3430_v60 = vpop.f32.mrb[27].mxu0  ;;  %v3644_v49 = vmax.f32 %v5492_v15, 0.0 }
 0x2e3   :  { %v2583_v60 = vadd.f32 %v7391_v14, %v7595_v25  ;;  %v2594_v25 = vadd.f32 %v7409_v61, %v7619_v43 }
 0x2e4   :  { %v3645_v51 = vmax.f32 %v5494_v22, 0.0 }
 0x2e6   :  { %v7704_v42 = vpack.c.bf16 %v3645_v51, %v3644_v49 }
 0x2e7   :  { %v3433_v52 = vpop.f32.mrb[28].mxu0 }
 0x2e8   :  { %v5496_v17 = vadd.f32 %v3433_v52, %v2567_v11  ;;  %v3435_v19 = vpop.f32.mrb[29].mxu0 }
 0x2e9   :  { %v3436_v33 = vpop.f32.mrb[30].mxu0 }
 0x2ea   :  { %v5498_v2 = vadd.f32 %v3436_v33, %v2570_v45  ;;  %v3438_v36 = vpop.f32.mrb[31].mxu0  ;;  %v3646_v46 = vmax.f32 %v5496_v17, 0.0  ;;  %v2591_v45 = vadd.f32 %v7401_v56, %v7617_v6  ;;  %v2602_v6 = vadd.f32 %v7419_v13, %v7642_v59 }
 0x2eb   :  { %v2610_v13 = vadd.f32 %v7429_v24, %v7657_v4  ;;  %v2618_v24 = vadd.f32 %v7439_v37, %v7680_v50  ;;  %v2626_v37 = vadd.f32 %v7449_v12, %v7689_v39  ;;  %v8075_v12 = vld [vmem:[#allocation5_spill] sm:$0xff] }
 0x2ec   :  { %v3647_v54 = vmax.f32 %v5498_v2, 0.0  ;;  %v2634_v39 = vadd.f32 %v8075_v12, %v7700_v57  ;;  %v5930_v12 = vld [vmem:[#allocation2 + $0x64] ss:$16 sps:$4 sm:$0xff]  }
 0x2ee   :  { %v7709_v10 = vpack.c.bf16 %v3647_v54, %v3646_v46  ;;  %v2599_v46 = vadd.f32 %v7411_v7, %v7633_v5  ;;  %v2607_v7 = vadd.f32 %v7421_v31, %v7655_v1  ;;  %v2615_v31 = vadd.f32 %v7431_v30, %v7670_v58 }
 0x2ef   :  { %v3441_v9 = vpop.f32.mrb[32].mxu0  ;;  %v2623_v58 = vadd.f32 %v7441_v41, %v7687_v55  ;;  %v2631_v41 = vadd.f32 %v7451_v0, %v7696_v38 }
 0x2f0   :  { %v5500_v3 = vadd.f32 %v3441_v9, %v2575_v23  ;;  %v3443_v63 = vpop.f32.mrb[33].mxu0 }
 0x2f1   :  { %v3444_v15 = vpop.f32.mrb[34].mxu0 }
 0x2f2   :  { %v5502_v34 = vadd.f32 %v3444_v15, %v2578_v26  ;;  %v3446_v35 = vpop.f32.mrb[35].mxu0  ;;  %v3648_v62 = vmax.f32 %v5500_v3, 0.0  ;;  %v7728_v26 = vpop.permute.xlu0 %734 }
 0x2f3   :  { %v7730_v15 = vpop.permute.xlu1 %739 }
 0x2f4   :  { %v3649_v22 = vmax.f32 %v5502_v34, 0.0 }
 0x2f6   :  { %v3768_v49 = vpack.c.bf16 %v3649_v22, %v3648_v62 }
 0x2f7   :  { %v3449_v51 = vpop.f32.mrb[36].mxu0 }
 0x2f8   :  { %v5504_v20 = vadd.f32 %v3449_v51, %v2583_v60  ;;  %v3451_v32 = vpop.f32.mrb[37].mxu0  ;;  %5144 = vmatprep.subr.bf16.mxu1 %v3768_v49  ;;  %v660_v49 = vpop.permute.xlu1 %659 }
 0x2f9   :  { %v3452_v47 = vpop.f32.mrb[38].mxu0  ;;  %5145 = vmatpush3.bf16.msra.mxu1 %v7646_v18 }
 0x2fa   :  { %v5506_v44 = vadd.f32 %v3452_v47, %v2586_v8  ;;  %v3454_v40 = vpop.f32.mrb[39].mxu0  ;;  %v3650_v11 = vmax.f32 %v5504_v20, 0.0 }
 0x2fc   :  { %v3651_v52 = vmax.f32 %v5506_v44, 0.0  ;;  %v7743_v44 = vpop.permute.xlu1 %749 }
 0x2fe   :  { %v3769_v17 = vpack.c.bf16 %v3651_v52, %v3650_v11 }
 0x2ff   :  { %v3457_v14 = vpop.f32.mrb[40].mxu0 }
 0x300   :  { %v5508_v19 = vadd.f32 %v3457_v14, %v2591_v45  ;;  %v3459_v53 = vpop.f32.mrb[41].mxu0  ;;  %5146 = vmatprep.subr.bf16.mxu1 %v3769_v17  ;;  %v670_v14 = vpop.permute.xlu1 %669 }
 0x301   :  { %v3460_v27 = vpop.f32.mrb[42].mxu0  ;;  %5147 = vmatpush3.bf16.msra.mxu1 %v7660_v21 }
 0x302   :  { %v5510_v33 = vadd.f32 %v3460_v27, %v2594_v25  ;;  %v3462_v18 = vpop.f32.mrb[43].mxu0  ;;  %v3652_v2 = vmax.f32 %v5508_v19, 0.0 }
 0x304   :  { %v3653_v36 = vmax.f32 %v5510_v33, 0.0 }
 0x306   :  { %v3770_v54 = vpack.c.bf16 %v3653_v36, %v3652_v2  ;;  %v7753_v36 = vpop.permute.xlu1 %759 }
 0x307   :  { %v3465_v56 = vpop.f32.mrb[44].mxu0 }
 0x308   :  { %v5512_v23 = vadd.f32 %v3465_v56, %v2599_v46  ;;  %v3467_v61 = vpop.f32.mrb[45].mxu0  ;;  %5148 = vmatprep.subr.bf16.mxu1 %v3770_v54 }
 0x309   :  { %v3468_v43 = vpop.f32.mrb[46].mxu0  ;;  %5149 = vmatpush3.bf16.msra.mxu1 %v7672_v28  ;;  %v655_v28 = vpop.permute.xlu0 %654 }
 0x30a   :  { %v5514_v9 = vadd.f32 %v3468_v43, %v2602_v6  ;;  %v3470_v21 = vpop.f32.mrb[47].mxu0  ;;  %v3654_v3 = vmax.f32 %v5512_v23, 0.0  ;;  %v680_v43 = vpop.permute.xlu1 %679 }
 0x30c   :  { %v3655_v63 = vmax.f32 %v5514_v9, 0.0 }
 0x30d   :  { %v7739_v20 = vpop.permute.xlu0 %744 }
 0x30e   :  { %v3771_v5 = vpack.c.bf16 %v3655_v63, %v3654_v3  ;;  %v8076_v3 = vld [vmem:[#allocation6_spill] sm:$0xff] }
 0x30f   :  { %v3473_v34 = vpop.f32.mrb[48].mxu0  ;;  %v2639_v63 = vadd.f32 %v8076_v3, %v655_v28  ;;  %v8083_v3 = vld [vmem:[#allocation13_spill] sm:$0xff] }
 0x310   :  { %v5516_v59 = vadd.f32 %v3473_v34, %v2607_v7  ;;  %v3475_v35 = vpop.f32.mrb[49].mxu0  ;;  %5150 = vmatprep.subr.bf16.mxu1 %v3771_v5  ;;  %v8077_v5 = vld [vmem:[#allocation7_spill] sm:$0xff] }
 0x311   :  { %v3476_v62 = vpop.f32.mrb[50].mxu0  ;;  %5151 = vmatpush3.bf16.msra.mxu1 %v7684_v48  ;;  %v665_v30 = vpop.permute.xlu0 %664  ;;  %v2642_v57 = vadd.f32 %v8077_v5, %v660_v49  ;;  %v5932_v5 = vld [vmem:[#allocation2 + $0x60] ss:$16 sps:$4 sm:$0xff]  }
 0x312   :  { %v5518_v22 = vadd.f32 %v3476_v62, %v2610_v13  ;;  %v3478_v60 = vpop.f32.mrb[51].mxu0  ;;  %v3656_v51 = vmax.f32 %v5516_v59, 0.0  ;;  %v5921_v59 = vld [vmem:[#allocation2] ss:$16 sps:$4 sm:$0xff]   ;;  %v7764_v35 = vpop.permute.xlu1 %769  ;;  %v5924_v62 = vld [vmem:[#allocation2 + $0x24] ss:$16 sps:$4 sm:$0xff]  }
 0x314   :  { %v3657_v8 = vmax.f32 %v5518_v22, 0.0 }
 0x315   :  { %v7751_v33 = vpop.permute.xlu0 %754 }
 0x316   :  { %v3772_v1 = vpack.c.bf16 %v3657_v8, %v3656_v51 }
 0x317   :  { %v3481_v32 = vpop.f32.mrb[52].mxu0 }
 0x318   :  { %v5520_v4 = vadd.f32 %v3481_v32, %v2615_v31  ;;  %v3483_v47 = vpop.f32.mrb[53].mxu0  ;;  %5152 = vmatprep.subr.bf16.mxu1 %v3772_v1  ;;  %v8078_v31 = vld [vmem:[#allocation8_spill] sm:$0xff]  ;;  %v690_v32 = vpop.permute.xlu1 %689 }
 0x319   :  { %v3484_v48 = vpop.f32.mrb[54].mxu0  ;;  %5153 = vmatpush3.bf16.msra.mxu1 %v7692_v16  ;;  %v5535_v1 = vadd.f32 %v8078_v31, %v665_v30  ;;  %v8080_v30 = vld [vmem:[#allocation10_spill] sm:$0xff] }
 0x31a   :  { %v5522_v40 = vadd.f32 %v3484_v48, %v2618_v24  ;;  %v3486_v11 = vpop.f32.mrb[55].mxu0  ;;  %v3658_v52 = vmax.f32 %v5520_v4, 0.0  ;;  %v8079_v4 = vld [vmem:[#allocation9_spill] sm:$0xff] }
 0x31b   :  { %v5537_v47 = vadd.f32 %v8079_v4, %v670_v14  ;;  %v5926_v11 = vld [vmem:[#allocation2 + $0x20] ss:$16 sps:$4 sm:$0xff]  }
 0x31c   :  { %v3659_v45 = vmax.f32 %v5522_v40, 0.0 }
 0x31e   :  { %v3773_v17 = vpack.c.bf16 %v3659_v45, %v3658_v52  ;;  %v5927_v52 = vld [vmem:[#allocation2 + $0x44] ss:$16 sps:$4 sm:$0xff]  }
 0x31f   :  { %v3489_v25 = vpop.f32.mrb[56].mxu0 }
 0x320   :  { %v5524_v50 = vadd.f32 %v3489_v25, %v2623_v58  ;;  %v3491_v19 = vpop.f32.mrb[57].mxu0  ;;  %5154 = vmatprep.subr.bf16.mxu1 %v3773_v17 }
 0x321   :  { %v3492_v53 = vpop.f32.mrb[58].mxu0  ;;  %5155 = vmatpush3.bf16.msra.mxu1 %v7698_v29  ;;  %v675_v29 = vpop.permute.xlu0 %674 }
 0x322   :  { %v5526_v16 = vadd.f32 %v3492_v53, %v2626_v37  ;;  %v3494_v27 = vpop.f32.mrb[59].mxu0  ;;  %v3660_v18 = vmax.f32 %v5524_v50, 0.0  ;;  %v7773_v50 = vpop.permute.xlu1 %779  ;;  %v5539_v19 = vadd.f32 %v8080_v30, %v675_v29  ;;  %v8086_v30 = vld [vmem:[#allocation16_spill] sm:$0xff] }
 0x324   :  { %v3661_v2 = vmax.f32 %v5526_v16, 0.0  ;;  %v8081_v16 = vld [vmem:[#allocation11_spill] sm:$0xff] }
 0x325   :  { %v7761_v38 = vpop.permute.xlu0 %764  ;;  %v5541_v27 = vadd.f32 %v8081_v16, %v680_v43 }
 0x326   :  { %v3774_v55 = vpack.c.bf16 %v3661_v2, %v3660_v18 }
 0x327   :  { %v3497_v46 = vpop.f32.mrb[60].mxu0 }
 0x328   :  { %v5528_v54 = vadd.f32 %v3497_v46, %v2631_v41  ;;  %v3499_v56 = vpop.f32.mrb[61].mxu0  ;;  %5156 = vmatprep.subr.bf16.mxu1 %v3774_v55  ;;  %v5929_v41 = vld [vmem:[#allocation2 + $0x40] ss:$16 sps:$4 sm:$0xff]  }
 0x329   :  { %v3500_v6 = vpop.f32.mrb[62].mxu0  ;;  %5157 = vmatpush3.bf16.msra.mxu1 %v7704_v42  ;;  %v685_v8 = vpop.permute.xlu0 %684 }
 0x32a   :  { %v5530_v23 = vadd.f32 %v3500_v6, %v2634_v39  ;;  %v3502_v61 = vpop.f32.mrb[63].mxu0  ;;  %v3662_v9 = vmax.f32 %v5528_v54, 0.0  ;;  %v700_v56 = vpop.permute.xlu1 %699 }
 0x32b   :  { %v8082_v61 = vld [vmem:[#allocation12_spill] sm:$0xff] }
 0x32c   :  { %v3663_v21 = vmax.f32 %v5530_v23, 0.0  ;;  %v5543_v29 = vadd.f32 %v8082_v61, %v685_v8 }
 0x32d   :  { %v7771_v17 = vpop.permute.xlu0 %774 }
 0x32e   :  { %v3775_v0 = vpack.c.bf16 %v3663_v21, %v3662_v9 }
 0x32f   :  { %v3505_v7 = vpop.f32.mrb[64].mxu0 }
 0x330   :  { %v5532_v34 = vadd.f32 %v3505_v7, %v2639_v63  ;;  %v3507_v13 = vpop.f32.mrb[65].mxu0  ;;  %5158 = vmatprep.subr.bf16.mxu1 %v3775_v0  ;;  %v5545_v63 = vadd.f32 %v8083_v3, %v690_v32  ;;  %v8085_v32 = vld [vmem:[#allocation15_spill] sm:$0xff] }
 0x331   :  { %v3508_v42 = vpop.f32.mrb[66].mxu0  ;;  %5159 = vmatpush3.bf16.msra.mxu1 %v7709_v10  ;;  %v695_v55 = vpop.permute.xlu0 %694  ;;  %v5933_v13 = vld [vmem:[#allocation2 + $0x84] ss:$16 sps:$4 sm:$0xff]  }
 0x332   :  { %v5534_v22 = vadd.f32 %v3508_v42, %v2642_v57  ;;  %v3510_v60 = vpop.f32.mrb[67].mxu0  ;;  %v3664_v51 = vmax.f32 %v5532_v34, 0.0  ;;  %v7785_v57 = vpop.permute.xlu1 %789 }
 0x334   :  { %v3665_v28 = vmax.f32 %v5534_v22, 0.0  ;;  %4337 = vmatmul.mubr.bf16.vlgmr.msra.gmra.mrb[128].mxu1 %v5921_v59 }
 0x335   :  { %4344 = vmatprep.mubr.bf16.mxu1 %v5924_v62  ;;  %v7782_v21 = vpop.permute.xlu0 %784 }
 0x336   :  { %v7768_v49 = vpack.c.bf16 %v3665_v28, %v3664_v51  ;;  %v8084_v51 = vld [vmem:[#allocation14_spill] sm:$0xff]  ;;  %v710_v31 = vpop.permute.xlu1 %709 }
 0x337   :  { %v3513_v24 = vpop.f32.mrb[68].mxu0  ;;  %v5547_v28 = vadd.f32 %v8084_v51, %v695_v55  ;;  %v5938_v55 = vld [vmem:[#allocation2 + $0xa0] ss:$16 sps:$4 sm:$0xff]  }
 0x338   :  { %v5536_v48 = vadd.f32 %v5535_v1, %v3513_v24  ;;  %v3515_v40 = vpop.f32.mrb[69].mxu0  ;;  %v5549_v24 = vadd.f32 %v8085_v32, %v700_v56  ;;  %v8090_v32 = vld [vmem:[#allocation20_spill] sm:$0xff] }
 0x339   :  { %v3516_v10 = vpop.f32.mrb[70].mxu0  ;;  %v705_v60 = vpop.permute.xlu0 %704 }
 0x33a   :  { %v5538_v45 = vadd.f32 %v5537_v47, %v3516_v10  ;;  %v3518_v58 = vpop.f32.mrb[71].mxu0  ;;  %v3666_v25 = vmax.f32 %v5536_v48, 0.0  ;;  %v5935_v48 = vld [vmem:[#allocation2 + $0x80] ss:$16 sps:$4 sm:$0xff]  }
 0x33c   :  { %v3667_v37 = vmax.f32 %v5538_v45, 0.0  ;;  %4345 = vmatmul.mubr.bf16.gmra.mrb[132].mxu1 %v5926_v11  ;;  %v5936_v11 = vld [vmem:[#allocation2 + $0xa4] ss:$16 sps:$4 sm:$0xff]  }
 0x33d   :  { %4352 = vmatprep.mubr.bf16.mxu1 %v5927_v52  ;;  %v7791_v45 = vpop.permute.xlu0 %794 }
 0x33e   :  { %v7776_v53 = vpack.c.bf16 %v3667_v37, %v3666_v25  ;;  %v7793_v37 = vpop.permute.xlu1 %799 }
 0x33f   :  { %v3521_v14 = vpop.f32.mrb[72].mxu0 }
 0x340   :  { %v5540_v18 = vadd.f32 %v5539_v19, %v3521_v14  ;;  %v3523_v2 = vpop.f32.mrb[73].mxu0  ;;  %v5551_v19 = vadd.f32 %v8086_v30, %v705_v60  ;;  %v5945_v30 = vld [vmem:[#allocation2 + $0x104] ss:$16 sps:$4 sm:$0xff]  }
 0x341   :  { %v3524_v46 = vpop.f32.mrb[74].mxu0 }
 0x342   :  { %v5542_v39 = vadd.f32 %v5541_v27, %v3524_v46  ;;  %v3526_v54 = vpop.f32.mrb[75].mxu0  ;;  %v3668_v6 = vmax.f32 %v5540_v18, 0.0  ;;  %v8087_v27 = vld [vmem:[#allocation17_spill] sm:$0xff]  ;;  %v715_v46 = vpop.permute.xlu0 %714 }
 0x343   :  { %v5553_v18 = vadd.f32 %v8087_v27, %v710_v31 }
 0x344   :  { %v3669_v23 = vmax.f32 %v5542_v39, 0.0  ;;  %4353 = vmatmul.mubr.bf16.gmra.mrb[136].mxu1 %v5929_v41  ;;  %v5939_v39 = vld [vmem:[#allocation2 + $0xc4] ss:$16 sps:$4 sm:$0xff]  }
 0x345   :  { %4360 = vmatprep.mubr.bf16.mxu1 %v5930_v12 }
 0x346   :  { %v7780_v9 = vpack.c.bf16 %v3669_v23, %v3668_v6  ;;  %v720_v6 = vpop.permute.xlu1 %719 }
 0x347   :  { %v3529_v43 = vpop.f32.mrb[76].mxu0 }
 0x348   :  { %v5544_v0 = vadd.f32 %v5543_v29, %v3529_v43  ;;  %v3531_v7 = vpop.f32.mrb[77].mxu0  ;;  %v8088_v29 = vld [vmem:[#allocation18_spill] sm:$0xff] }
 0x349   :  { %v3532_v34 = vpop.f32.mrb[78].mxu0  ;;  %v5555_v43 = vadd.f32 %v8088_v29, %v715_v46  ;;  %v8089_v7 = vld [vmem:[#allocation19_spill] sm:$0xff] }
 0x34a   :  { %v5546_v59 = vadd.f32 %v5545_v63, %v3532_v34  ;;  %v3534_v42 = vpop.f32.mrb[79].mxu0  ;;  %v3670_v62 = vmax.f32 %v5544_v0, 0.0  ;;  %v7802_v63 = vpop.permute.xlu0 %804 }
 0x34b   :  { %v7805_v42 = vpop.permute.xlu1 %809 }
 0x34c   :  { %v3671_v22 = vmax.f32 %v5546_v59, 0.0  ;;  %4361 = vmatmul.mubr.bf16.gmra.mrb[140].mxu1 %v5932_v5  ;;  %v5557_v5 = vadd.f32 %v8089_v7, %v720_v6  ;;  %v5941_v59 = vld [vmem:[#allocation2 + $0xc0] ss:$16 sps:$4 sm:$0xff]  }
 0x34d   :  { %4368 = vmatprep.mubr.bf16.mxu1 %v5933_v13  ;;  %v5947_v6 = vld [vmem:[#allocation2 + $0x100] ss:$16 sps:$4 sm:$0xff]  }
 0x34e   :  { %v7788_v8 = vpack.c.bf16 %v3671_v22, %v3670_v62  ;;  %v5942_v22 = vld [vmem:[#allocation2 + $0xe4] ss:$16 sps:$4 sm:$0xff]  }
 0x34f   :  { %v3537_v1 = vpop.f32.mrb[80].mxu0 }
 0x350   :  { %v5548_v4 = vadd.f32 %v5547_v28, %v3537_v1  ;;  %v3539_v47 = vpop.f32.mrb[81].mxu0  ;;  %v725_v1 = vpop.permute.xlu0 %724 }
 0x351   :  { %v3540_v40 = vpop.f32.mrb[82].mxu0  ;;  %v730_v47 = vpop.permute.xlu1 %729 }
 0x352   :  { %v5550_v10 = vadd.f32 %v5549_v24, %v3540_v40  ;;  %v3542_v52 = vpop.f32.mrb[83].mxu0  ;;  %v3672_v58 = vmax.f32 %v5548_v4, 0.0  ;;  %v5559_v24 = vadd.f32 %v8090_v32, %v725_v1  ;;  %v8091_v40 = vld [vmem:[#allocation21_spill] sm:$0xff] }
 0x354   :  { %v3673_v25 = vmax.f32 %v5550_v10, 0.0  ;;  %4369 = vmatmul.mubr.bf16.gmra.mrb[144].mxu1 %v5935_v48 }
 0x355   :  { %4376 = vmatprep.mubr.bf16.mxu1 %v5936_v11  ;;  %v5561_v11 = vadd.f32 %v8091_v40, %v730_v47 }
 0x356   :  { %v7796_v14 = vpack.c.bf16 %v3673_v25, %v3672_v58  ;;  %v5944_v58 = vld [vmem:[#allocation2 + $0xe0] ss:$16 sps:$4 sm:$0xff]  }
 0x357   :  { %v3545_v16 = vpop.f32.mrb[84].mxu0 }
 0x358   :  { %v5552_v2 = vadd.f32 %v5551_v19, %v3545_v16  ;;  %v3547_v41 = vpop.f32.mrb[85].mxu0 }
 0x359   :  { %v3548_v12 = vpop.f32.mrb[86].mxu0 }
 0x35a   :  { %v5554_v54 = vadd.f32 %v5553_v18, %v3548_v12  ;;  %v3550_v56 = vpop.f32.mrb[87].mxu0  ;;  %v3674_v23 = vmax.f32 %v5552_v2, 0.0  ;;  %v8092_v2 = vld [vmem:[#allocation22_spill] sm:$0xff]  ;;  %v8093_v12 = vld [vmem:[#allocation23_spill] sm:$0xff] }
 0x35b   :  { %v5563_v41 = vadd.f32 %v8092_v2, %v7728_v26 }
 0x35c   :  { %v3675_v61 = vmax.f32 %v5554_v54, 0.0  ;;  %4377 = vmatmul.mubr.bf16.gmra.mrb[148].mxu1 %v5938_v55 }
 0x35d   :  { %4384 = vmatprep.mubr.bf16.mxu1 %v5939_v39  ;;  %v5565_v39 = vadd.f32 %v8093_v12, %v7730_v15 }
 0x35e   :  { %v7800_v3 = vpack.c.bf16 %v3675_v61, %v3674_v23  ;;  %v5948_v61 = vld [vmem:[#allocation2 + $0x124] ss:$16 sps:$4 sm:$0xff]  }
 0x35f   :  { %v3553_v0 = vpop.f32.mrb[88].mxu0 }
 0x360   :  { %v5556_v34 = vadd.f32 %v5555_v43, %v3553_v0  ;;  %v3555_v13 = vpop.f32.mrb[89].mxu0 }
 0x361   :  { %v3556_v62 = vpop.f32.mrb[90].mxu0 }
 0x362   :  { %v5558_v60 = vadd.f32 %v5557_v5, %v3556_v62  ;;  %v3558_v51 = vpop.f32.mrb[91].mxu0  ;;  %v3676_v28 = vmax.f32 %v5556_v34, 0.0  ;;  %v8094_v5 = vld [vmem:[#allocation24_spill] sm:$0xff] }
 0x363   :  { %v5567_v26 = vadd.f32 %v8094_v5, %v7739_v20  ;;  %v8096_v20 = vld [vmem:[#allocation26_spill] sm:$0xff] }
 0x364   :  { %v3677_v31 = vmax.f32 %v5558_v60, 0.0  ;;  %4385 = vmatmul.mubr.bf16.gmra.mrb[152].mxu1 %v5941_v59  ;;  %v8095_v59 = vld [vmem:[#allocation25_spill] sm:$0xff]  ;;  %v5571_v47 = vadd.f32 %v8096_v20, %v7751_v33  ;;  %v8098_v33 = vld [vmem:[#allocation28_spill] sm:$0xff] }
 0x365   :  { %4392 = vmatprep.mubr.bf16.mxu1 %v5942_v22  ;;  %v5569_v62 = vadd.f32 %v8095_v59, %v7743_v44  ;;  %v5950_v60 = vld [vmem:[#allocation2 + $0x120] ss:$16 sps:$4 sm:$0xff]   ;;  %v5960_v59 = vld [vmem:[#allocation2 + $0x1a4] ss:$16 sps:$4 sm:$0xff]  }
 0x366   :  { %v7808_v4 = vpack.c.bf16 %v3677_v31, %v3676_v28  ;;  %v5951_v28 = vld [vmem:[#allocation2 + $0x144] ss:$16 sps:$4 sm:$0xff]   ;;  %v5962_v20 = vld [vmem:[#allocation2 + $0x1a0] ss:$16 sps:$4 sm:$0xff]  }
 0x367   :  { %v3561_v48 = vpop.f32.mrb[92].mxu0  ;;  %v8097_v44 = vld [vmem:[#allocation27_spill] sm:$0xff] }
 0x368   :  { %v5560_v10 = vadd.f32 %v5559_v24, %v3561_v48  ;;  %v3563_v52 = vpop.f32.mrb[93].mxu0 }
 0x369   :  { %v3564_v25 = vpop.f32.mrb[94].mxu0 }
 0x36a   :  { %v5562_v19 = vadd.f32 %v5561_v11, %v3564_v25  ;;  %v3566_v16 = vpop.f32.mrb[95].mxu0  ;;  %v3678_v27 = vmax.f32 %v5560_v10, 0.0  ;;  %v5573_v11 = vadd.f32 %v8097_v44, %v7753_v36  ;;  %v5954_v25 = vld [vmem:[#allocation2 + $0x164] ss:$16 sps:$4 sm:$0xff]  }
 0x36b   :  { %v8099_v36 = vld [vmem:[#allocation29_spill] sm:$0xff] }
 0x36c   :  { %v3679_v18 = vmax.f32 %v5562_v19, 0.0  ;;  %4393 = vmatmul.mubr.bf16.gmra.mrb[156].mxu1 %v5944_v58  ;;  %v5953_v58 = vld [vmem:[#allocation2 + $0x140] ss:$16 sps:$4 sm:$0xff]  }
 0x36d   :  { %4400 = vmatprep.mubr.bf16.mxu1 %v5945_v30 }
 0x36e   :  { %v7813_v55 = vpack.c.bf16 %v3679_v18, %v3678_v27  ;;  %v5575_v18 = vadd.f32 %v8098_v33, %v7761_v38  ;;  %v8100_v38 = vld [vmem:[#allocation30_spill] sm:$0xff] }
 0x36f   :  { %v3569_v46 = vpop.f32.mrb[96].mxu0 }
 0x370   :  { %v5564_v54 = vadd.f32 %v5563_v41, %v3569_v46  ;;  %v3571_v56 = vpop.f32.mrb[97].mxu0  ;;  %v5577_v46 = vadd.f32 %v8099_v36, %v7764_v35  ;;  %v8101_v35 = vld [vmem:[#allocation31_spill] sm:$0xff] }
 0x371   :  { %v3572_v23 = vpop.f32.mrb[98].mxu0  ;;  %v5957_v56 = vld [vmem:[#allocation2 + $0x184] ss:$16 sps:$4 sm:$0xff]   ;;  %v5581_v5 = vadd.f32 %v8101_v35, %v7773_v50  ;;  %v5980_v35 = vld [vmem:[#allocation2 + $0x68] ss:$16 sps:$4 sm:$0xff]  }
 0x372   :  { %v5566_v29 = vadd.f32 %v5565_v39, %v3572_v23  ;;  %v3574_v43 = vpop.f32.mrb[99].mxu0  ;;  %v3680_v0 = vmax.f32 %v5564_v54, 0.0  ;;  %v5956_v54 = vld [vmem:[#allocation2 + $0x160] ss:$16 sps:$4 sm:$0xff]  }
 0x373   :  { %v5579_v43 = vadd.f32 %v8100_v38, %v7771_v17  ;;  %v8102_v17 = vld [vmem:[#allocation32_spill] sm:$0xff]  ;;  %v8103_v50 = vld [vmem:[#allocation33_spill] sm:$0xff] }
 0x374   :  { %v3681_v7 = vmax.f32 %v5566_v29, 0.0  ;;  %4401 = vmatmul.mubr.bf16.gmra.mrb[160].mxu1 %v5947_v6  ;;  %v5969_v38 = vld [vmem:[#allocation2 + $0x8] ss:$16 sps:$4 sm:$0xff]  }
 0x375   :  { %4408 = vmatprep.mubr.bf16.mxu1 %v5948_v61 }
 0x376   :  { %v3784_v34 = vpack.c.bf16 %v3681_v7, %v3680_v0 }
 0x377   :  { %v3577_v13 = vpop.f32.mrb[100].mxu0 }
 0x378   :  { %v5568_v15 = vadd.f32 %v5567_v26, %v3577_v13  ;;  %v3579_v22 = vpop.f32.mrb[101].mxu0  ;;  %5256 = vmatprep.subr.bf16.mxu1 %v3784_v34  ;;  %v5959_v13 = vld [vmem:[#allocation2 + $0x180] ss:$16 sps:$4 sm:$0xff]  }
 0x379   :  { %v3580_v51 = vpop.f32.mrb[102].mxu0  ;;  %5257 = vmatpush3.bf16.msra.mxu1 %v7768_v49 }
 0x37a   :  { %v5570_v31 = vadd.f32 %v5569_v62, %v3580_v51  ;;  %v3582_v1 = vpop.f32.mrb[103].mxu0  ;;  %v3682_v32 = vmax.f32 %v5568_v15, 0.0  ;;  %v5583_v51 = vadd.f32 %v8102_v17, %v7782_v21  ;;  %v8104_v21 = vld [vmem:[#allocation34_spill] sm:$0xff] }
 0x37b   :  { %v5585_v1 = vadd.f32 %v8103_v50, %v7785_v57  ;;  %v8105_v57 = vld [vmem:[#allocation35_spill] sm:$0xff]  ;;  %v5998_v17 = vld [vmem:[#allocation2 + $0x128] ss:$16 sps:$4 sm:$0xff]  }
 0x37c   :  { %v3683_v24 = vmax.f32 %v5570_v31, 0.0  ;;  %4409 = vmatmul.mubr.bf16.gmra.mrb[164].mxu1 %v5950_v60 }
 0x37d   :  { %4416 = vmatprep.mubr.bf16.mxu1 %v5951_v28 }
 0x37e   :  { %v3785_v48 = vpack.c.bf16 %v3683_v24, %v3682_v32 }
 0x37f   :  { %v3585_v40 = vpop.f32.mrb[104].mxu0 }
 0x380   :  { %v5572_v10 = vadd.f32 %v5571_v47, %v3585_v40  ;;  %v3587_v52 = vpop.f32.mrb[105].mxu0  ;;  %5258 = vmatprep.subr.bf16.mxu1 %v3785_v48  ;;  %v5963_v47 = vld [vmem:[#allocation2 + $0x1c4] ss:$16 sps:$4 sm:$0xff]  }
 0x381   :  { %v3588_v49 = vpop.f32.mrb[106].mxu0  ;;  %5259 = vmatpush3.bf16.msra.mxu1 %v7776_v53 }
 0x382   :  { %v5574_v30 = vadd.f32 %v5573_v11, %v3588_v49  ;;  %v3590_v19 = vpop.f32.mrb[107].mxu0  ;;  %v3684_v16 = vmax.f32 %v5572_v10, 0.0  ;;  %v5587_v10 = vadd.f32 %v8104_v21, %v7791_v45  ;;  %v5589_v49 = vadd.f32 %v8105_v57, %v7793_v37  ;;  %v8106_v45 = vld [vmem:[#allocation36_spill] sm:$0xff]  ;;  %v8107_v37 = vld [vmem:[#allocation37_spill] sm:$0xff] }
 0x383   :  { %v5965_v19 = vld [vmem:[#allocation2 + $0x1c0] ss:$16 sps:$4 sm:$0xff]  }
 0x384   :  { %v3685_v27 = vmax.f32 %v5574_v30, 0.0  ;;  %4417 = vmatmul.mubr.bf16.gmra.mrb[168].mxu1 %v5953_v58 }
 0x385   :  { %4424 = vmatprep.mubr.bf16.mxu1 %v5954_v25 }
 0x386   :  { %v3786_v2 = vpack.c.bf16 %v3685_v27, %v3684_v16  ;;  %v5966_v16 = vld [vmem:[#allocation2 + $0x1e4] ss:$16 sps:$4 sm:$0xff]  }
 0x387   :  { %v3593_v41 = vpop.f32.mrb[108].mxu0 }
 0x388   :  { %v5576_v12 = vadd.f32 %v5575_v18, %v3593_v41  ;;  %v3595_v39 = vpop.f32.mrb[109].mxu0  ;;  %5260 = vmatprep.subr.bf16.mxu1 %v3786_v2  ;;  %v5591_v41 = vadd.f32 %v8106_v45, %v7802_v63  ;;  %v6013_v45 = vld [vmem:[#allocation2 + $0x1c8] ss:$16 sps:$4 sm:$0xff]  }
 0x389   :  { %v3596_v53 = vpop.f32.mrb[110].mxu0  ;;  %5261 = vmatpush3.bf16.msra.mxu1 %v7780_v9 }
 0x38a   :  { %v5578_v6 = vadd.f32 %v5577_v46, %v3596_v53  ;;  %v3598_v23 = vpop.f32.mrb[111].mxu0  ;;  %v3686_v61 = vmax.f32 %v5576_v12, 0.0  ;;  %v5593_v12 = vadd.f32 %v8107_v37, %v7805_v42  ;;  %v5968_v53 = vld [vmem:[#allocation2 + $0x1e0] ss:$16 sps:$4 sm:$0xff]   ;;  %v5972_v42 = vld [vmem:[#allocation2 + $0x2c] ss:$16 sps:$4 sm:$0xff]  }
 0x38c   :  { %v3687_v29 = vmax.f32 %v5578_v6, 0.0  ;;  %4425 = vmatmul.mubr.bf16.gmra.mrb[172].mxu1 %v5956_v54 }
 0x38d   :  { %4432 = vmatprep.mubr.bf16.mxu1 %v5957_v56  ;;  %v5971_v56 = vld [vmem:[#allocation2 + $0xc] ss:$16 sps:$4 sm:$0xff]  }
 0x38e   :  { %v3787_v0 = vpack.c.bf16 %v3687_v29, %v3686_v61 }
 0x38f   :  { %v3601_v7 = vpop.f32.mrb[112].mxu0 }
 0x390   :  { %v5580_v26 = vadd.f32 %v5579_v43, %v3601_v7  ;;  %v3603_v34 = vpop.f32.mrb[113].mxu0  ;;  %5262 = vmatprep.subr.bf16.mxu1 %v3787_v0  ;;  %v5974_v43 = vld [vmem:[#allocation2 + $0x28] ss:$16 sps:$4 sm:$0xff]   ;;  %v5975_v0 = vld [vmem:[#allocation2 + $0x4c] ss:$16 sps:$4 sm:$0xff]  }
 0x391   :  { %v3604_v9 = vpop.f32.mrb[114].mxu0  ;;  %5263 = vmatpush3.bf16.msra.mxu1 %v7788_v8  ;;  %v5978_v7 = vld [vmem:[#allocation2 + $0x6c] ss:$16 sps:$4 sm:$0xff]  }
 0x392   :  { %v5582_v62 = vadd.f32 %v5581_v5, %v3604_v9  ;;  %v3606_v15 = vpop.f32.mrb[115].mxu0  ;;  %v3688_v22 = vmax.f32 %v5580_v26, 0.0  ;;  %v5981_v5 = vld [vmem:[#allocation2 + $0x8c] ss:$16 sps:$4 sm:$0xff]   ;;  %v5983_v26 = vld [vmem:[#allocation2 + $0x88] ss:$16 sps:$4 sm:$0xff]  }
 0x393   :  { %v5984_v34 = vld [vmem:[#allocation2 + $0xac] ss:$16 sps:$4 sm:$0xff]   ;;  %v5989_v9 = vld [vmem:[#allocation2 + $0xc8] ss:$16 sps:$4 sm:$0xff]  }
 0x394   :  { %v3689_v60 = vmax.f32 %v5582_v62, 0.0  ;;  %4433 = vmatmul.mubr.bf16.gmra.mrb[176].mxu1 %v5959_v13  ;;  %v5987_v13 = vld [vmem:[#allocation2 + $0xcc] ss:$16 sps:$4 sm:$0xff]   ;;  %v5992_v62 = vld [vmem:[#allocation2 + $0xe8] ss:$16 sps:$4 sm:$0xff]  }
 0x395   :  { %4440 = vmatprep.mubr.bf16.mxu1 %v5960_v59  ;;  %v5990_v59 = vld [vmem:[#allocation2 + $0xec] ss:$16 sps:$4 sm:$0xff]  }
 0x396   :  { %v3788_v28 = vpack.c.bf16 %v3689_v60, %v3688_v22  ;;  %v5993_v15 = vld [vmem:[#allocation2 + $0x10c] ss:$16 sps:$4 sm:$0xff]   ;;  %v5995_v22 = vld [vmem:[#allocation2 + $0x108] ss:$16 sps:$4 sm:$0xff]  }
 0x397   :  { %v3609_v31 = vpop.f32.mrb[116].mxu0  ;;  %v5996_v60 = vld [vmem:[#allocation2 + $0x12c] ss:$16 sps:$4 sm:$0xff]  }
 0x398   :  { %v5584_v32 = vadd.f32 %v5583_v51, %v3609_v31  ;;  %v3611_v24 = vpop.f32.mrb[117].mxu0  ;;  %5264 = vmatprep.subr.bf16.mxu1 %v3788_v28  ;;  %v5999_v51 = vld [vmem:[#allocation2 + $0x14c] ss:$16 sps:$4 sm:$0xff]   ;;  %v6001_v28 = vld [vmem:[#allocation2 + $0x148] ss:$16 sps:$4 sm:$0xff]  }
 0x399   :  { %v3612_v8 = vpop.f32.mrb[118].mxu0  ;;  %5265 = vmatpush3.bf16.msra.mxu1 %v7796_v14  ;;  %v6002_v31 = vld [vmem:[#allocation2 + $0x16c] ss:$16 sps:$4 sm:$0xff]  }
 0x39a   :  { %v5586_v48 = vadd.f32 %v5585_v1, %v3612_v8  ;;  %v3614_v40 = vpop.f32.mrb[119].mxu0  ;;  %v3690_v44 = vmax.f32 %v5584_v32, 0.0  ;;  %v6004_v32 = vld [vmem:[#allocation2 + $0x168] ss:$16 sps:$4 sm:$0xff]   ;;  %v6005_v8 = vld [vmem:[#allocation2 + $0x18c] ss:$16 sps:$4 sm:$0xff]  }
 0x39c   :  { %v3691_v11 = vmax.f32 %v5586_v48, 0.0  ;;  %4441 = vmatmul.mubr.bf16.gmra.mrb[180].mxu1 %v5962_v20 }
 0x39d   :  { %4448 = vmatprep.mubr.bf16.mxu1 %v5963_v47 }
 0x39e   :  { %v3789_v52 = vpack.c.bf16 %v3691_v11, %v3690_v44  ;;  %v6007_v11 = vld [vmem:[#allocation2 + $0x188] ss:$16 sps:$4 sm:$0xff]  }
 0x39f   :  { %v3617_v58 = vpop.f32.mrb[120].mxu0 }
 0x3a0   :  { %v5588_v25 = vadd.f32 %v5587_v10, %v3617_v58  ;;  %v3619_v30 = vpop.f32.mrb[121].mxu0  ;;  %5266 = vmatprep.subr.bf16.mxu1 %v3789_v52  ;;  %v6008_v52 = vld [vmem:[#allocation2 + $0x1ac] ss:$16 sps:$4 sm:$0xff]  }
 0x3a1   :  { %v3620_v14 = vpop.f32.mrb[122].mxu0  ;;  %5267 = vmatpush3.bf16.msra.mxu1 %v7800_v3  ;;  %v6010_v30 = vld [vmem:[#allocation2 + $0x1a8] ss:$16 sps:$4 sm:$0xff]  }
 0x3a2   :  { %v5590_v27 = vadd.f32 %v5589_v49, %v3620_v14  ;;  %v3622_v33 = vpop.f32.mrb[123].mxu0  ;;  %v3692_v18 = vmax.f32 %v5588_v25, 0.0 }
 0x3a4   :  { %v3693_v2 = vmax.f32 %v5590_v27, 0.0  ;;  %4449 = vmatmul.mubr.bf16.gmra.mrb[184].mxu1 %v5965_v19 }
 0x3a5   :  { %4456 = vmatprep.mubr.bf16.mxu1 %v5966_v16  ;;  %v6011_v16 = vld [vmem:[#allocation2 + $0x1cc] ss:$16 sps:$4 sm:$0xff]  }
 0x3a6   :  { %v3790_v36 = vpack.c.bf16 %v3693_v2, %v3692_v18 }
 0x3a7   :  { %v3625_v46 = vpop.f32.mrb[124].mxu0 }
 0x3a8   :  { %v5592_v39 = vadd.f32 %v5591_v41, %v3625_v46  ;;  %v3627_v54 = vpop.f32.mrb[125].mxu0  ;;  %5268 = vmatprep.subr.bf16.mxu1 %v3790_v36  ;;  %v6014_v46 = vld [vmem:[#allocation2 + $0x1ec] ss:$16 sps:$4 sm:$0xff]  }
 0x3a9   :  { %v3628_v3 = vpop.f32.mrb[126].mxu0  ;;  %5269 = vmatpush3.bf16.msra.mxu1 %v7808_v4  ;;  %v5977_v4 = vld [vmem:[#allocation2 + $0x48] ss:$16 sps:$4 sm:$0xff]  }
 0x3aa   :  { %v5594_v6 = vadd.f32 %v5593_v12, %v3628_v3  ;;  %v3630_v23 = vpop.f32.mrb[127].mxu0  ;;  %v3694_v61 = vmax.f32 %v5592_v39, 0.0 }
 0x3ac   :  { %v3695_v29 = vmax.f32 %v5594_v6, 0.0  ;;  %4457 = vmatmul.mubr.bf16.gmra.mrb[188].mxu1 %v5968_v53  ;;  %v6016_v53 = vld [vmem:[#allocation2 + $0x1e8] ss:$16 sps:$4 sm:$0xff]  }
 0x3ad   :  { %4497 = vmatprep.mubr.bf16.mxu1 %v5971_v56 }
 0x3ae   :  { %v3791_v63 = vpack.c.bf16 %v3695_v29, %v3694_v61 }
 0x3b0   :  { %5270 = vmatprep.subr.bf16.mxu1 %v3791_v63 }
 0x3b1   :  { %5271 = vmatpush3.bf16.msra.mxu1 %v7813_v55  ;;  %v5986_v55 = vld [vmem:[#allocation2 + $0xa8] ss:$16 sps:$4 sm:$0xff]  }
 0x3b4   :  { %4498 = vmatmul.mubr.bf16.vlgmr.msra.gmra.mrb[192].mxu1 %v5969_v38 }
 0x3b5   :  { %4505 = vmatprep.mubr.bf16.mxu1 %v5972_v42 }
 0x3bc   :  { %4506 = vmatmul.mubr.bf16.gmra.mrb[196].mxu1 %v5974_v43 }
 0x3bd   :  { %4513 = vmatprep.mubr.bf16.mxu1 %v5975_v0 }
 0x3c4   :  { %4514 = vmatmul.mubr.bf16.gmra.mrb[200].mxu1 %v5977_v4 }
 0x3c5   :  { %4521 = vmatprep.mubr.bf16.mxu1 %v5978_v7 }
 0x3cc   :  { %4522 = vmatmul.mubr.bf16.gmra.mrb[204].mxu1 %v5980_v35 }
 0x3cd   :  { %4529 = vmatprep.mubr.bf16.mxu1 %v5981_v5 }
 0x3d4   :  { %4530 = vmatmul.mubr.bf16.gmra.mrb[208].mxu1 %v5983_v26 }
 0x3d5   :  { %4537 = vmatprep.mubr.bf16.mxu1 %v5984_v34 }
 0x3dc   :  { %4538 = vmatmul.mubr.bf16.gmra.mrb[212].mxu1 %v5986_v55 }
 0x3dd   :  { %4545 = vmatprep.mubr.bf16.mxu1 %v5987_v13 }
 0x3e4   :  { %4546 = vmatmul.mubr.bf16.gmra.mrb[216].mxu1 %v5989_v9 }
 0x3e5   :  { %4553 = vmatprep.mubr.bf16.mxu1 %v5990_v59 }
 0x3ec   :  { %4554 = vmatmul.mubr.bf16.gmra.mrb[220].mxu1 %v5992_v62 }
 0x3ed   :  { %4561 = vmatprep.mubr.bf16.mxu1 %v5993_v15 }
 0x3f4   :  { %4562 = vmatmul.mubr.bf16.gmra.mrb[224].mxu1 %v5995_v22 }
 0x3f5   :  { %4569 = vmatprep.mubr.bf16.mxu1 %v5996_v60 }
 0x3fc   :  { %4570 = vmatmul.mubr.bf16.gmra.mrb[228].mxu1 %v5998_v17 }
 0x3fd   :  { %4577 = vmatprep.mubr.bf16.mxu1 %v5999_v51 }
 0x404   :  { %4578 = vmatmul.mubr.bf16.gmra.mrb[232].mxu1 %v6001_v28 }
 0x405   :  { %4585 = vmatprep.mubr.bf16.mxu1 %v6002_v31 }
 0x407   :  { %v5160_v50 = vpop.f32.mrb[128].mxu1 }
 0x408   :  { %v5161_v1 = vpop.f32.mrb[129].mxu1 }
 0x409   :  { %v7853_v24 = vadd.f32 %v5161_v1, %v5160_v50  ;;  %v5163_v20 = vpop.f32.mrb[130].mxu1 }
 0x40a   :  { %v5164_v47 = vpop.f32.mrb[131].mxu1 }
 0x40b   :  { %v7855_v48 = vadd.f32 %v5164_v47, %v5163_v20 }
 0x40c   :  { %4586 = vmatmul.mubr.bf16.gmra.mrb[236].mxu1 %v6004_v32 }
 0x40d   :  { %4593 = vmatprep.mubr.bf16.mxu1 %v6005_v8 }
 0x40f   :  { %v5166_v40 = vpop.f32.mrb[132].mxu1 }
 0x410   :  { %v5167_v44 = vpop.f32.mrb[133].mxu1 }
 0x411   :  { %v7857_v21 = vadd.f32 %v5167_v44, %v5166_v40  ;;  %v5169_v10 = vpop.f32.mrb[134].mxu1 }
 0x412   :  { %v5170_v58 = vpop.f32.mrb[135].mxu1 }
 0x413   :  { %v7859_v57 = vadd.f32 %v5170_v58, %v5169_v10 }
 0x414   :  { %4594 = vmatmul.mubr.bf16.gmra.mrb[240].mxu1 %v6007_v11 }
 0x415   :  { %4601 = vmatprep.mubr.bf16.mxu1 %v6008_v52 }
 0x417   :  { %v5172_v49 = vpop.f32.mrb[136].mxu1 }
 0x418   :  { %v5173_v25 = vpop.f32.mrb[137].mxu1 }
 0x419   :  { %v7861_v19 = vadd.f32 %v5173_v25, %v5172_v49  ;;  %v5175_v14 = vpop.f32.mrb[138].mxu1 }
 0x41a   :  { %v5176_v27 = vpop.f32.mrb[139].mxu1 }
 0x41b   :  { %v7863_v33 = vadd.f32 %v5176_v27, %v5175_v14  ;;  %v7901_v27 = vpop.permute.xlu0 %3906 }
 0x41c   :  { %4602 = vmatmul.mubr.bf16.gmra.mrb[244].mxu1 %v6010_v30 }
 0x41d   :  { %4609 = vmatprep.mubr.bf16.mxu1 %v6011_v16 }
 0x41f   :  { %v5178_v18 = vpop.f32.mrb[140].mxu1 }
 0x420   :  { %v5179_v2 = vpop.f32.mrb[141].mxu1 }
 0x421   :  { %v7865_v41 = vadd.f32 %v5179_v2, %v5178_v18  ;;  %v5181_v36 = vpop.f32.mrb[142].mxu1  ;;  %v7903_v2 = vpop.permute.xlu1 %3911 }
 0x422   :  { %v5182_v37 = vpop.f32.mrb[143].mxu1 }
 0x423   :  { %v7867_v12 = vadd.f32 %v5182_v37, %v5181_v36 }
 0x424   :  { %4610 = vmatmul.mubr.bf16.gmra.mrb[248].mxu1 %v6013_v45 }
 0x425   :  { %4617 = vmatprep.mubr.bf16.mxu1 %v6014_v46 }
 0x427   :  { %v5184_v39 = vpop.f32.mrb[144].mxu1 }
 0x428   :  { %v5185_v54 = vpop.f32.mrb[145].mxu1 }
 0x429   :  { %v7869_v3 = vadd.f32 %v5185_v54, %v5184_v39  ;;  %v5187_v56 = vpop.f32.mrb[146].mxu1  ;;  %v3827_v54 = vpop.permute.xlu0 %3826 }
 0x42a   :  { %v5188_v6 = vpop.f32.mrb[147].mxu1 }
 0x42b   :  { %v7871_v23 = vadd.f32 %v5188_v6, %v5187_v56 }
 0x42c   :  { %4618 = vmatmul.mubr.bf16.gmra.mrb[252].mxu1 %v6016_v53  ;;  %v3832_v53 = vpop.permute.xlu1 %3831 }
 0x42f   :  { %v5190_v61 = vpop.f32.mrb[148].mxu1 }
 0x430   :  { %v5191_v29 = vpop.f32.mrb[149].mxu1 }
 0x431   :  { %v7873_v63 = vadd.f32 %v5191_v29, %v5190_v61  ;;  %v5193_v38 = vpop.f32.mrb[150].mxu1 }
 0x432   :  { %v5194_v42 = vpop.f32.mrb[151].mxu1 }
 0x433   :  { %v7875_v43 = vadd.f32 %v5194_v42, %v5193_v38  ;;  %v7911_v38 = vpop.permute.xlu0 %3916 }
 0x437   :  { %v5196_v0 = vpop.f32.mrb[152].mxu1 }
 0x438   :  { %v5197_v4 = vpop.f32.mrb[153].mxu1 }
 0x439   :  { %v7877_v7 = vadd.f32 %v5197_v4, %v5196_v0  ;;  %v5199_v35 = vpop.f32.mrb[154].mxu1  ;;  %v7915_v4 = vpop.permute.xlu1 %3921 }
 0x43a   :  { %v5200_v5 = vpop.f32.mrb[155].mxu1 }
 0x43b   :  { %v7879_v26 = vadd.f32 %v5200_v5, %v5199_v35  ;;  %v3837_v5 = vpop.permute.xlu0 %3836 }
 0x43f   :  { %v5202_v34 = vpop.f32.mrb[156].mxu1 }
 0x440   :  { %v5203_v55 = vpop.f32.mrb[157].mxu1 }
 0x441   :  { %v7881_v13 = vadd.f32 %v5203_v55, %v5202_v34  ;;  %v5205_v9 = vpop.f32.mrb[158].mxu1 }
 0x442   :  { %v5206_v59 = vpop.f32.mrb[159].mxu1 }
 0x443   :  { %v7883_v62 = vadd.f32 %v5206_v59, %v5205_v9  ;;  %v3842_v59 = vpop.permute.xlu1 %3841 }
 0x447   :  { %v5208_v15 = vpop.f32.mrb[160].mxu1 }
 0x448   :  { %v5209_v22 = vpop.f32.mrb[161].mxu1 }
 0x449   :  { %v7885_v60 = vadd.f32 %v5209_v22, %v5208_v15  ;;  %v5211_v17 = vpop.f32.mrb[162].mxu1 }
 0x44a   :  { %v5212_v51 = vpop.f32.mrb[163].mxu1 }
 0x44b   :  { %v7887_v28 = vadd.f32 %v5212_v51, %v5211_v17  ;;  %v7921_v17 = vpop.permute.xlu0 %3926 }
 0x44f   :  { %v5214_v31 = vpop.f32.mrb[164].mxu1 }
 0x450   :  { %v5215_v50 = vpop.f32.mrb[165].mxu1 }
 0x451   :  { %v7889_v1 = vadd.f32 %v5215_v50, %v5214_v31  ;;  %v5217_v32 = vpop.f32.mrb[166].mxu1  ;;  %v7923_v31 = vpop.permute.xlu1 %3931 }
 0x452   :  { %v5218_v20 = vpop.f32.mrb[167].mxu1 }
 0x453   :  { %v7891_v8 = vadd.f32 %v5218_v20, %v5217_v32 }
 0x457   :  { %v5220_v47 = vpop.f32.mrb[168].mxu1 }
 0x458   :  { %v5221_v40 = vpop.f32.mrb[169].mxu1 }
 0x459   :  { %v7893_v44 = vadd.f32 %v5221_v40, %v5220_v47  ;;  %v5223_v11 = vpop.f32.mrb[170].mxu1 }
 0x45a   :  { %v5224_v10 = vpop.f32.mrb[171].mxu1 }
 0x45b   :  { %v7895_v52 = vadd.f32 %v5224_v10, %v5223_v11  ;;  %v3847_v11 = vpop.permute.xlu0 %3846  ;;  %v3852_v10 = vpop.permute.xlu1 %3851 }
 0x45f   :  { %v5226_v58 = vpop.f32.mrb[172].mxu1 }
 0x460   :  { %v5227_v49 = vpop.f32.mrb[173].mxu1 }
 0x461   :  { %v7897_v25 = vadd.f32 %v5227_v49, %v5226_v58  ;;  %v5229_v30 = vpop.f32.mrb[174].mxu1 }
 0x462   :  { %v5230_v14 = vpop.f32.mrb[175].mxu1 }
 0x463   :  { %v7899_v16 = vadd.f32 %v5230_v14, %v5229_v30  ;;  %v4339_v30 = vadd.f32 %v7853_v24, %v3827_v54 }
 0x467   :  { %v5232_v18 = vpop.f32.mrb[176].mxu1 }
 0x468   :  { %v5233_v45 = vpop.f32.mrb[177].mxu1 }
 0x469   :  { %v7905_v36 = vadd.f32 %v5233_v45, %v5232_v18  ;;  %v5235_v46 = vpop.f32.mrb[178].mxu1  ;;  %v7930_v45 = vpop.permute.xlu0 %3936 }
 0x46a   :  { %v5236_v37 = vpop.f32.mrb[179].mxu1 }
 0x46b   :  { %v7907_v39 = vadd.f32 %v5236_v37, %v5235_v46  ;;  %v4342_v37 = vadd.f32 %v7855_v48, %v3832_v53 }
 0x46d   :  { %v3857_v54 = vpop.permute.xlu0 %3856 }
 0x46f   :  { %v5238_v56 = vpop.f32.mrb[180].mxu1 }
 0x470   :  { %v5239_v6 = vpop.f32.mrb[181].mxu1 }
 0x471   :  { %v7909_v61 = vadd.f32 %v5239_v6, %v5238_v56  ;;  %v5241_v29 = vpop.f32.mrb[182].mxu1 }
 0x472   :  { %v5242_v42 = vpop.f32.mrb[183].mxu1 }
 0x473   :  { %v7913_v0 = vadd.f32 %v5242_v42, %v5241_v29  ;;  %v7933_v29 = vpop.permute.xlu1 %3941  ;;  %v4659_v42 = vld [vmem:[%s8038_s5 + $0x8] sm:$0xff] }
 0x474   :  { %4730 = vmatprep.mubr.f32.mxu1 %v4659_v42 }
 0x477   :  { %v5244_v35 = vpop.f32.mrb[184].mxu1 }
 0x478   :  { %v5245_v34 = vpop.f32.mrb[185].mxu1 }
 0x479   :  { %v7917_v55 = vadd.f32 %v5245_v34, %v5244_v35  ;;  %v5247_v9 = vpop.f32.mrb[186].mxu1 }
 0x47a   :  { %v5248_v15 = vpop.f32.mrb[187].mxu1 }
 0x47b   :  { %v7919_v22 = vadd.f32 %v5248_v15, %v5247_v9 }
 0x47f   :  { %v5250_v51 = vpop.f32.mrb[188].mxu1 }
 0x480   :  { %v5251_v50 = vpop.f32.mrb[189].mxu1 }
 0x481   :  { %v7925_v32 = vadd.f32 %v5251_v50, %v5250_v51  ;;  %v5253_v20 = vpop.f32.mrb[190].mxu1  ;;  %v4347_v51 = vadd.f32 %v7857_v21, %v3837_v5  ;;  %v4355_v21 = vadd.f32 %v7861_v19, %v3847_v11 }
 0x482   :  { %v5254_v47 = vpop.f32.mrb[191].mxu1 }
 0x483   :  { %v7927_v40 = vadd.f32 %v5254_v47, %v5253_v20  ;;  %v3862_v20 = vpop.permute.xlu1 %3861 }
 0x487   :  { %v5272_v58 = vpop.f32.mrb[192].mxu1 }
 0x488   :  { %v5273_v49 = vpop.f32.mrb[193].mxu1 }
 0x489   :  { %v5274_v14 = vadd.f32 %v5273_v49, %v5272_v58  ;;  %v5275_v18 = vpop.f32.mrb[194].mxu1  ;;  %v4350_v58 = vadd.f32 %v7859_v57, %v3842_v59  ;;  %v4358_v57 = vadd.f32 %v7863_v33, %v3852_v10  ;;  %v4366_v33 = vadd.f32 %v7867_v12, %v3862_v20 }
 0x48a   :  { %v5276_v46 = vpop.f32.mrb[195].mxu1 }
 0x48b   :  { %v4500_v56 = vadd.f32 %v5274_v14, %v4339_v30  ;;  %v5277_v6 = vadd.f32 %v5276_v46, %v5275_v18  ;;  %v7942_v18 = vpop.permute.xlu0 %3946 }
 0x48d   :  { %v4503_v35 = vadd.f32 %v5277_v6, %v4342_v37  ;;  %v4626_v34 = vmax.f32 %v4500_v56, 0.0  ;;  %v7944_v6 = vpop.permute.xlu1 %3951 }
 0x48f   :  { %v4627_v9 = vmax.f32 %v4503_v35, 0.0  ;;  %v5278_v24 = vpop.f32.mrb[196].mxu1 }
 0x490   :  { %v5279_v15 = vpop.f32.mrb[197].mxu1 }
 0x491   :  { %v7939_v50 = vpack.c.bf16 %v4627_v9, %v4626_v34  ;;  %v5280_v48 = vadd.f32 %v5279_v15, %v5278_v24  ;;  %v5281_v53 = vpop.f32.mrb[198].mxu1  ;;  %v3867_v15 = vpop.permute.xlu0 %3866 }
 0x492   :  { %v5282_v47 = vpop.f32.mrb[199].mxu1 }
 0x493   :  { %v4508_v49 = vadd.f32 %v5280_v48, %v4347_v51  ;;  %v5283_v30 = vadd.f32 %v5282_v47, %v5281_v53  ;;  %v3872_v48 = vpop.permute.xlu1 %3871 }
 0x494   :  { %v4374_v12 = vadd.f32 %v7871_v23, %v3872_v48 }
 0x495   :  { %v4511_v14 = vadd.f32 %v5283_v30, %v4350_v58  ;;  %v4628_v46 = vmax.f32 %v4508_v49, 0.0  ;;  %v4363_v30 = vadd.f32 %v7865_v41, %v3857_v54  ;;  %v4371_v41 = vadd.f32 %v7869_v3, %v3867_v15 }
 0x497   :  { %v4629_v37 = vmax.f32 %v4511_v14, 0.0  ;;  %v5284_v56 = vpop.f32.mrb[200].mxu1 }
 0x498   :  { %v5285_v42 = vpop.f32.mrb[201].mxu1 }
 0x499   :  { %v7947_v5 = vpack.c.bf16 %v4629_v37, %v4628_v46  ;;  %v5286_v35 = vadd.f32 %v5285_v42, %v5284_v56  ;;  %v5287_v34 = vpop.f32.mrb[202].mxu1  ;;  %v7953_v46 = vpop.permute.xlu0 %3956 }
 0x49a   :  { %v5288_v9 = vpop.f32.mrb[203].mxu1  ;;  %v7956_v42 = vpop.permute.xlu1 %3961 }
 0x49b   :  { %v4516_v59 = vadd.f32 %v5286_v35, %v4355_v21  ;;  %v5289_v24 = vadd.f32 %v5288_v9, %v5287_v34 }
 0x49d   :  { %v4519_v51 = vadd.f32 %v5289_v24, %v4358_v57  ;;  %v4630_v53 = vmax.f32 %v4516_v59, 0.0  ;;  %v3877_v57 = vpop.permute.xlu0 %3876 }
 0x49e   :  { %v4379_v3 = vadd.f32 %v7873_v63, %v3877_v57 }
 0x49f   :  { %v4631_v47 = vmax.f32 %v4519_v51, 0.0  ;;  %v5290_v58 = vpop.f32.mrb[204].mxu1 }
 0x4a0   :  { %v5291_v49 = vpop.f32.mrb[205].mxu1 }
 0x4a1   :  { %v7951_v14 = vpack.c.bf16 %v4631_v47, %v4630_v53  ;;  %v5292_v19 = vadd.f32 %v5291_v49, %v5290_v58  ;;  %v5293_v11 = vpop.f32.mrb[206].mxu1  ;;  %v3882_v53 = vpop.permute.xlu1 %3881 }
 0x4a2   :  { %v5294_v37 = vpop.f32.mrb[207].mxu1  ;;  %v4382_v23 = vadd.f32 %v7875_v43, %v3882_v53 }
 0x4a3   :  { %v4524_v10 = vadd.f32 %v5292_v19, %v4363_v30  ;;  %v5295_v56 = vadd.f32 %v5294_v37, %v5293_v11  ;;  %v7962_v30 = vpop.permute.xlu0 %3966 }
 0x4a5   :  { %v4527_v21 = vadd.f32 %v5295_v56, %v4366_v33  ;;  %v4632_v35 = vmax.f32 %v4524_v10, 0.0  ;;  %v7964_v33 = vpop.permute.xlu1 %3971 }
 0x4a7   :  { %v4633_v34 = vmax.f32 %v4527_v21, 0.0  ;;  %v5296_v9 = vpop.f32.mrb[208].mxu1 }
 0x4a8   :  { %v5297_v59 = vpop.f32.mrb[209].mxu1 }
 0x4a9   :  { %v7959_v54 = vpack.c.bf16 %v4633_v34, %v4632_v35  ;;  %v5298_v24 = vadd.f32 %v5297_v59, %v5296_v9  ;;  %v5299_v51 = vpop.f32.mrb[210].mxu1  ;;  %v3887_v9 = vpop.permute.xlu0 %3886 }
 0x4aa   :  { %v5300_v47 = vpop.f32.mrb[211].mxu1 }
 0x4ab   :  { %v4532_v20 = vadd.f32 %v5298_v24, %v4371_v41  ;;  %v5301_v58 = vadd.f32 %v5300_v47, %v5299_v51  ;;  %v3892_v41 = vpop.permute.xlu1 %3891 }
 0x4ac   :  { %v4390_v43 = vadd.f32 %v7879_v26, %v3892_v41 }
 0x4ad   :  { %v4535_v49 = vadd.f32 %v5301_v58, %v4374_v12  ;;  %v4634_v19 = vmax.f32 %v4532_v20, 0.0  ;;  %v4387_v20 = vadd.f32 %v7877_v7, %v3887_v9 }
 0x4af   :  { %v4635_v11 = vmax.f32 %v4535_v49, 0.0  ;;  %v5302_v37 = vpop.f32.mrb[212].mxu1  ;;  %v7973_v49 = vpop.permute.xlu0 %3976 }
 0x4b0   :  { %v5303_v10 = vpop.f32.mrb[213].mxu1 }
 0x4b1   :  { %v7967_v15 = vpack.c.bf16 %v4635_v11, %v4634_v19  ;;  %v5304_v56 = vadd.f32 %v5303_v10, %v5302_v37  ;;  %v5305_v21 = vpop.f32.mrb[214].mxu1  ;;  %v7976_v37 = vpop.permute.xlu1 %3981 }
 0x4b2   :  { %v5306_v35 = vpop.f32.mrb[215].mxu1 }
 0x4b3   :  { %v4540_v48 = vadd.f32 %v5304_v56, %v4379_v3  ;;  %v5307_v34 = vadd.f32 %v5306_v35, %v5305_v21  ;;  %v3897_v35 = vpop.permute.xlu0 %3896 }
 0x4b4   :  { %v4395_v7 = vadd.f32 %v7881_v13, %v3897_v35 }
 0x4b5   :  { %v4543_v59 = vadd.f32 %v5307_v34, %v4382_v23  ;;  %v4636_v24 = vmax.f32 %v4540_v48, 0.0 }
 0x4b7   :  { %v4637_v51 = vmax.f32 %v4543_v59, 0.0  ;;  %v5308_v47 = vpop.f32.mrb[216].mxu1  ;;  %v3902_v59 = vpop.permute.xlu1 %3901 }
 0x4b8   :  { %v5309_v12 = vpop.f32.mrb[217].mxu1  ;;  %v4398_v26 = vadd.f32 %v7883_v62, %v3902_v59 }
 0x4b9   :  { %v7971_v58 = vpack.c.bf16 %v4637_v51, %v4636_v24  ;;  %v5310_v63 = vadd.f32 %v5309_v12, %v5308_v47  ;;  %v5311_v57 = vpop.f32.mrb[218].mxu1 }
 0x4ba   :  { %v5312_v19 = vpop.f32.mrb[219].mxu1 }
 0x4bb   :  { %v4548_v53 = vadd.f32 %v5310_v63, %v4387_v20  ;;  %v5313_v11 = vadd.f32 %v5312_v19, %v5311_v57  ;;  %v4403_v19 = vadd.f32 %v7885_v60, %v7901_v27 }
 0x4bd   :  { %v4551_v10 = vadd.f32 %v5313_v11, %v4390_v43  ;;  %v4638_v3 = vmax.f32 %v4548_v53, 0.0 }
 0x4bf   :  { %v4639_v56 = vmax.f32 %v4551_v10, 0.0  ;;  %v5314_v21 = vpop.f32.mrb[220].mxu1  ;;  %v4406_v10 = vadd.f32 %v7887_v28, %v7903_v2 }
 0x4c0   :  { %v5315_v23 = vpop.f32.mrb[221].mxu1 }
 0x4c1   :  { %v7979_v48 = vpack.c.bf16 %v4639_v56, %v4638_v3  ;;  %v5316_v34 = vadd.f32 %v5315_v23, %v5314_v21  ;;  %v5317_v9 = vpop.f32.mrb[222].mxu1 }
 0x4c2   :  { %v5318_v24 = vpop.f32.mrb[223].mxu1 }
 0x4c3   :  { %v4556_v41 = vadd.f32 %v5316_v34, %v4395_v7  ;;  %v5319_v51 = vadd.f32 %v5318_v24, %v5317_v9  ;;  %v4411_v34 = vadd.f32 %v7889_v1, %v7911_v38  ;;  %v4414_v24 = vadd.f32 %v7891_v8, %v7915_v4 }
 0x4c4   :  { %v4419_v1 = vadd.f32 %v7893_v44, %v7921_v17  ;;  %v4422_v8 = vadd.f32 %v7895_v52, %v7923_v31  ;;  %v4427_v44 = vadd.f32 %v7897_v25, %v7930_v45  ;;  %v4430_v52 = vadd.f32 %v7899_v16, %v7933_v29 }
 0x4c5   :  { %v4559_v47 = vadd.f32 %v5319_v51, %v4398_v26  ;;  %v4640_v12 = vmax.f32 %v4556_v41, 0.0  ;;  %v4435_v25 = vadd.f32 %v7905_v36, %v7942_v18  ;;  %v4438_v16 = vadd.f32 %v7907_v39, %v7944_v6 }
 0x4c6   :  { %v4443_v36 = vadd.f32 %v7909_v61, %v7953_v46  ;;  %v4446_v39 = vadd.f32 %v7913_v0, %v7956_v42  ;;  %v4451_v61 = vadd.f32 %v7917_v55, %v7962_v30  ;;  %v4454_v0 = vadd.f32 %v7919_v22, %v7964_v33 }
 0x4c7   :  { %v4641_v20 = vmax.f32 %v4559_v47, 0.0  ;;  %v5320_v63 = vpop.f32.mrb[224].mxu1  ;;  %v4459_v55 = vadd.f32 %v7925_v32, %v7973_v49  ;;  %v4462_v22 = vadd.f32 %v7927_v40, %v7976_v37  ;;  %v4658_v32 = vld [vmem:[%s8038_s5] sm:$0xff]  ;;  %v4664_v37 = vpop.permute.xlu0 %4663 }
 0x4c8   :  { %v5321_v57 = vpop.f32.mrb[225].mxu1 }
 0x4c9   :  { %v7984_v43 = vpack.c.bf16 %v4641_v20, %v4640_v12  ;;  %v5322_v13 = vadd.f32 %v5321_v57, %v5320_v63  ;;  %v5323_v53 = vpop.f32.mrb[226].mxu1 }
 0x4ca   :  { %v5324_v11 = vpop.f32.mrb[227].mxu1 }
 0x4cb   :  { %v4564_v3 = vadd.f32 %v5322_v13, %v4403_v19  ;;  %v5325_v62 = vadd.f32 %v5324_v11, %v5323_v53 }
 0x4cd   :  { %v4567_v56 = vadd.f32 %v5325_v62, %v4406_v10  ;;  %v4642_v21 = vmax.f32 %v4564_v3, 0.0 }
 0x4cf   :  { %v4643_v35 = vmax.f32 %v4567_v56, 0.0  ;;  %v5326_v23 = vpop.f32.mrb[228].mxu1 }
 0x4d0   :  { %v5327_v7 = vpop.f32.mrb[229].mxu1 }
 0x4d1   :  { %v5328_v9 = vadd.f32 %v5327_v7, %v5326_v23  ;;  %v5329_v60 = vpop.f32.mrb[230].mxu1  ;;  %v5403_v27 = vpack.c.bf16 %v4643_v35, %v4642_v21 }
 0x4d2   :  { %v5330_v59 = vpop.f32.mrb[231].mxu1 }
 0x4d3   :  { %v4572_v26 = vadd.f32 %v5328_v9, %v4411_v34  ;;  %v5331_v41 = vadd.f32 %v5330_v59, %v5329_v60  ;;  %5404 = vmatprep.subr.bf16.mxu1 %v5403_v27 }
 0x4d4   :  { %5406 = vmatpush3.bf16.msra.mxu1 %v7939_v50 }
 0x4d5   :  { %v4575_v28 = vadd.f32 %v5331_v41, %v4414_v24  ;;  %v4644_v2 = vmax.f32 %v4572_v26, 0.0 }
 0x4d7   :  { %v4645_v51 = vmax.f32 %v4575_v28, 0.0  ;;  %v5332_v47 = vpop.f32.mrb[232].mxu1 }
 0x4d8   :  { %v5333_v12 = vpop.f32.mrb[233].mxu1 }
 0x4d9   :  { %v5334_v38 = vadd.f32 %v5333_v12, %v5332_v47  ;;  %v5335_v20 = vpop.f32.mrb[234].mxu1  ;;  %v5407_v63 = vpack.c.bf16 %v4645_v51, %v4644_v2 }
 0x4da   :  { %v5336_v57 = vpop.f32.mrb[235].mxu1 }
 0x4db   :  { %v4580_v4 = vadd.f32 %v5334_v38, %v4419_v1  ;;  %v5337_v19 = vadd.f32 %v5336_v57, %v5335_v20  ;;  %5408 = vmatprep.subr.bf16.mxu1 %v5407_v63 }
 0x4dc   :  { %5410 = vmatpush3.bf16.msra.mxu1 %v7947_v5 }
 0x4dd   :  { %v4583_v50 = vadd.f32 %v5337_v19, %v4422_v8  ;;  %v4646_v13 = vmax.f32 %v4580_v4, 0.0 }
 0x4df   :  { %v4647_v53 = vmax.f32 %v4583_v50, 0.0  ;;  %v5338_v11 = vpop.f32.mrb[236].mxu1 }
 0x4e0   :  { %v5339_v10 = vpop.f32.mrb[237].mxu1 }
 0x4e1   :  { %v5340_v17 = vadd.f32 %v5339_v10, %v5338_v11  ;;  %v5341_v3 = vpop.f32.mrb[238].mxu1  ;;  %v5411_v62 = vpack.c.bf16 %v4647_v53, %v4646_v13 }
 0x4e2   :  { %v5342_v56 = vpop.f32.mrb[239].mxu1 }
 0x4e3   :  { %v4588_v31 = vadd.f32 %v5340_v17, %v4427_v44  ;;  %v5343_v21 = vadd.f32 %v5342_v56, %v5341_v3  ;;  %5412 = vmatprep.subr.bf16.mxu1 %v5411_v62 }
 0x4e4   :  { %5414 = vmatpush3.bf16.msra.mxu1 %v7951_v14 }
 0x4e5   :  { %v4591_v5 = vadd.f32 %v5343_v21, %v4430_v52  ;;  %v4648_v35 = vmax.f32 %v4588_v31, 0.0 }
 0x4e7   :  { %v4649_v23 = vmax.f32 %v4591_v5, 0.0  ;;  %v5344_v7 = vpop.f32.mrb[240].mxu1 }
 0x4e8   :  { %v5345_v34 = vpop.f32.mrb[241].mxu1 }
 0x4e9   :  { %v5346_v45 = vadd.f32 %v5345_v34, %v5344_v7  ;;  %v5347_v9 = vpop.f32.mrb[242].mxu1  ;;  %v5415_v60 = vpack.c.bf16 %v4649_v23, %v4648_v35 }
 0x4ea   :  { %v5348_v27 = vpop.f32.mrb[243].mxu1 }
 0x4eb   :  { %v4596_v29 = vadd.f32 %v5346_v45, %v4435_v25  ;;  %v5349_v59 = vadd.f32 %v5348_v27, %v5347_v9  ;;  %5416 = vmatprep.subr.bf16.mxu1 %v5415_v60 }
 0x4ec   :  { %5418 = vmatpush3.bf16.msra.mxu1 %v7959_v54 }
 0x4ed   :  { %v4599_v14 = vadd.f32 %v5349_v59, %v4438_v16  ;;  %v4650_v24 = vmax.f32 %v4596_v29, 0.0 }
 0x4ef   :  { %v4651_v26 = vmax.f32 %v4599_v14, 0.0  ;;  %v5350_v41 = vpop.f32.mrb[244].mxu1 }
 0x4f0   :  { %v5351_v28 = vpop.f32.mrb[245].mxu1 }
 0x4f1   :  { %v5352_v18 = vadd.f32 %v5351_v28, %v5350_v41  ;;  %v5353_v2 = vpop.f32.mrb[246].mxu1  ;;  %v5419_v51 = vpack.c.bf16 %v4651_v26, %v4650_v24 }
 0x4f2   :  { %v5354_v47 = vpop.f32.mrb[247].mxu1 }
 0x4f3   :  { %v4604_v6 = vadd.f32 %v5352_v18, %v4443_v36  ;;  %v5355_v12 = vadd.f32 %v5354_v47, %v5353_v2  ;;  %5420 = vmatprep.subr.bf16.mxu1 %v5419_v51 }
 0x4f4   :  { %5422 = vmatpush3.bf16.msra.mxu1 %v7967_v15 }
 0x4f5   :  { %v4607_v54 = vadd.f32 %v5355_v12, %v4446_v39  ;;  %v4652_v1 = vmax.f32 %v4604_v6, 0.0 }
 0x4f7   :  { %v4653_v38 = vmax.f32 %v4607_v54, 0.0  ;;  %v5356_v20 = vpop.f32.mrb[248].mxu1 }
 0x4f8   :  { %v5357_v63 = vpop.f32.mrb[249].mxu1 }
 0x4f9   :  { %v5358_v46 = vadd.f32 %v5357_v63, %v5356_v20  ;;  %v5359_v57 = vpop.f32.mrb[250].mxu1  ;;  %v5423_v8 = vpack.c.bf16 %v4653_v38, %v4652_v1 }
 0x4fa   :  { %v5360_v4 = vpop.f32.mrb[251].mxu1 }
 0x4fb   :  { %v4612_v42 = vadd.f32 %v5358_v46, %v4451_v61  ;;  %v5361_v19 = vadd.f32 %v5360_v4, %v5359_v57  ;;  %5424 = vmatprep.subr.bf16.mxu1 %v5423_v8 }
 0x4fc   :  { %5426 = vmatpush3.bf16.msra.mxu1 %v7971_v58 }
 0x4fd   :  { %v4615_v15 = vadd.f32 %v5361_v19, %v4454_v0  ;;  %v4654_v50 = vmax.f32 %v4612_v42, 0.0 }
 0x4ff   :  { %v4655_v13 = vmax.f32 %v4615_v15, 0.0  ;;  %v5362_v53 = vpop.f32.mrb[252].mxu1 }
 0x500   :  { %v5363_v11 = vpop.f32.mrb[253].mxu1 }
 0x501   :  { %v5364_v30 = vadd.f32 %v5363_v11, %v5362_v53  ;;  %v5365_v10 = vpop.f32.mrb[254].mxu1  ;;  %v5427_v44 = vpack.c.bf16 %v4655_v13, %v4654_v50 }
 0x502   :  { %v5366_v17 = vpop.f32.mrb[255].mxu1 }
 0x503   :  { %v4620_v33 = vadd.f32 %v5364_v30, %v4459_v55  ;;  %v5367_v3 = vadd.f32 %v5366_v17, %v5365_v10  ;;  %5428 = vmatprep.subr.bf16.mxu1 %v5427_v44 }
 0x504   :  { %5430 = vmatpush3.bf16.msra.mxu1 %v7979_v48  ;;  %v4736_v48 = vld [vmem:[%s8040_s7] sm:$0xff] }
 0x505   :  { %v4623_v58 = vadd.f32 %v5367_v3, %v4462_v22  ;;  %v4656_v62 = vmax.f32 %v4620_v33, 0.0 }
 0x507   :  { %v4657_v56 = vmax.f32 %v4623_v58, 0.0 }
 0x509   :  { %v5431_v52 = vpack.c.bf16 %v4657_v56, %v4656_v62 }
 0x50b   :  { %5432 = vmatprep.subr.bf16.mxu1 %v5431_v52 }
 0x50c   :  { %5434 = vmatpush3.bf16.msra.mxu1 %v7984_v43 }
 0x50f   :  { %4731 = vmatmul.mubr.f32.vlgmr.msra.gmra.mrb[0].mxu1 %v4658_v32 }
 0x5e2   :  { %v5400_v49 = vpop.f32.mrb[0].mxu1 }
 0x5e3   :  { %v5401_v31 = vpop.f32.mrb[1].mxu1 }
 0x5e4   :  { %v5402_v40 = vadd.f32 %v5401_v31, %v5400_v49 }
 0x5e6   :  { %v4733_v21 = vadd.f32 %v5402_v40, %v4664_v37 }
 0x5e8   :  { %v4737_v5 = vmul.f32 0.5, %v4733_v21 }
 0x5ea   :  { %v4738_v35 = vmul.f32 1.442695, %v4737_v5 }
 0x5ec   :  { %6017 = vpow2.f32 %v4738_v35 }
 0x5f6   :  { %v6018_v23 = vpop.eup %6017 }
 0x5f7   :  { %v4740_v7 = vmul.f32 %v6018_v23, %v4736_v48 }
 0x5f9   :  { %v4741_v43 = vmul.f32 %v4740_v7, %v4736_v48 }
 0x5fb   :  { %v4742_v34 = vadd.f32 %v4741_v43, %v4737_v5 }
 0x5fd   :  { %v4744_v25 = vsel %vm4743_vm0, %v4742_v34, 0.0 }
 0x5fe   :  { %v4745_v45 = vrot.slane %v4744_v25, 4 }
 0x600   :  { %v4746_v9 = vadd.f32 %v4745_v45, %v4744_v25 }
 0x602   :  { %v4747_v60 = vrot.slane %v4746_v9, 2 }
 0x604   :  { %v4748_v27 = vadd.f32 %v4747_v60, %v4746_v9 }
 0x606   :  { %v4749_v16 = vrot.slane %v4748_v27, 1 }
 0x608   :  { %v4750_v29 = vadd.f32 %v4749_v16, %v4748_v27 }
 0x60a   :  { %v4751_v59 = vadd.f32 14.703016, %v4750_v29 }
 0x60c   :  { %v4752_v14 = vmul.f32 -0.5, %v4751_v59 }
 0x60e   :  { %4754 = vst.msk [vmem:[%s8041_s8] sm:$0x1] %vm4753_vm1, %v4752_v14 }
 0x60f   :  { %4759 = vsyncpa [#allocation3], 1 }

</bundles_post_ra>
